<compile_context>
chip_gen: v5e
topology: v5e:2x2
jax: 0.10.0
libtpu: 0.0.40
codegen_flags: <defaults>
</compile_context>

<pallas_src>
import functools

import jax
import jax.numpy as jnp
from jax.experimental import pallas as pl
from jax.experimental.pallas import tpu as pltpu

IN_DIM, HID_DIM, OUT_DIM = 1220, 512, 250
OUT_PAD = 256                       # lane-dense N for layer 2 (multiple of 128)
_VMEM_LIMIT = 48 * 1024 * 1024      # explicit scoped-VMEM limit (fits v5e/v6e/v7x)


@functools.lru_cache(maxsize=None)
def _default_row_tile():
    """512-row tiles on v6e/v7x (per-step overhead amortization); 256 on v5e."""
    try:
        kind = jax.devices()[0].device_kind.lower()
    except Exception:
        return 512
    if "v5e" in kind or "v5 lite" in kind or "v5lite" in kind:
        return 256
    return 512


def _softplus(x):
    # Numerically stable softplus, matches torch.nn.Softplus (beta=1).
    return jnp.logaddexp(x, 0.0)


# ----------------------------- kernels ------------------------------------

def _fused_noise_kernel(x_ref, w1_ref, b1_ref, w2_ref, b2_ref, o_ref):
    """Whole MetaFeat forward (noise path, linear encoder folded in) in one kernel.

    w1_ref = [W1 | E1] (1220, 1024), w2_ref = [W2 | E2] (512, 512):
      h = relu(softplus(x@E1) + x@W1 + b1)
      o = relu(softplus(h@E2) + h@W2 + b2)
    One MXU pass per layer (concatenated RHS), f32 accumulation, bf16 operands.
    """
    x = x_ref[...].astype(jnp.bfloat16)                         # cast in VMEM only
    z1 = jnp.dot(x, w1_ref[...], preferred_element_type=jnp.float32)     # (tm, 1024)
    h = jnp.maximum(_softplus(z1[:, HID_DIM:]) + z1[:, :HID_DIM] + b1_ref[...], 0.0)
    hb = h.astype(jnp.bfloat16)
    z2 = jnp.dot(hb, w2_ref[...], preferred_element_type=jnp.float32)    # (tm, 512)
    y = jnp.maximum(_softplus(z2[:, OUT_PAD:]) + z2[:, :OUT_PAD] + b2_ref[...], 0.0)
    o_ref[...] = y.astype(o_ref.dtype)


def _fused_plain_kernel(x_ref, w1_ref, b1_ref, w2_ref, b2_ref, o_ref):
    """noise=False path: o = relu(relu(x@W1+b1) @ W2 + b2), one kernel."""
    x = x_ref[...].astype(jnp.bfloat16)
    h = jnp.dot(x, w1_ref[...], preferred_element_type=jnp.float32) + b1_ref[...]
    h = jnp.maximum(h, 0.0)
    y = jnp.dot(h.astype(jnp.bfloat16), w2_ref[...],
                preferred_element_type=jnp.float32) + b2_ref[...]
    o_ref[...] = jnp.maximum(y, 0.0).astype(o_ref.dtype)


def _linear_noise_relu_kernel(x_ref, n_ref, w_ref, b_ref, o_ref):
    """Fallback (arbitrary encoder): o = relu(softplus(n) + x@W + b)."""
    x = x_ref[...].astype(jnp.bfloat16)
    y = jnp.dot(x, w_ref[...], preferred_element_type=jnp.float32) + b_ref[...]
    y = _softplus(n_ref[...].astype(jnp.float32)) + y
    o_ref[...] = jnp.maximum(y, 0.0).astype(o_ref.dtype)


def _linear_relu_kernel(x_ref, w_ref, b_ref, o_ref):
    """Fallback: o = relu(x@W + b)."""
    x = x_ref[...].astype(jnp.bfloat16)
    y = jnp.dot(x, w_ref[...], preferred_element_type=jnp.float32) + b_ref[...]
    o_ref[...] = jnp.maximum(y, 0.0).astype(o_ref.dtype)


# ----------------------------- pallas wrapper -------------------------------

def _row_tiling(batch, bm):
    """(padded_batch, row_tile, grid_steps).

    Small batches: one whole block, rows padded up to a multiple of 8 so the
    (tm, 1220) LHS block has no masked sublanes.  Large batches: bm-row tiles.
    """
    if batch <= bm:
        tile = max(8, ((batch + 7) // 8) * 8)
        return tile, tile, 1
    pad_b = ((batch + bm - 1) // bm) * bm
    return pad_b, bm, pad_b // bm


def _rowblocked_call(kernel, row_args, const_args, out_cols,
                     out_dtype=jnp.float32, row_tile=None):
    """Run `kernel` with row_args tiled over a (parallel) batch grid and
    const_args (weights/biases) held fully VMEM-resident across all steps.
    Returns the row-padded output; caller performs ONE fused row/col slice."""
    batch = row_args[0].shape[0]
    bm = row_tile if row_tile is not None else _default_row_tile()
    pad_b, tm, steps = _row_tiling(batch, bm)
    if pad_b != batch:
        row_args = [jnp.pad(a, ((0, pad_b - batch), (0, 0))) for a in row_args]
    in_specs = (
        [pl.BlockSpec((tm, a.shape[1]), lambda i: (i, 0)) for a in row_args]
        + [pl.BlockSpec(a.shape, lambda i: (0, 0)) for a in const_args]
    )
    return pl.pallas_call(
        kernel,
        out_shape=jax.ShapeDtypeStruct((pad_b, out_cols), out_dtype),
        grid=(steps,),
        in_specs=in_specs,
        out_specs=pl.BlockSpec((tm, out_cols), lambda i: (i, 0)),
        compiler_params=pltpu.CompilerParams(
            dimension_semantics=("parallel",),       # megacore / v7x 2-TC sharding
            vmem_limit_bytes=_VMEM_LIMIT,
        ),
    )(*row_args, *const_args)


# ----------------------------- packing (do once) ----------------------------

def pack_params(params):
    """bf16 weights (K left at 1220 -- no x padding needed anywhere), f32 biases.
    Layer-2 N is zero-padded 250 -> 256 for a lane-dense output block."""
    w1 = params["w1"].astype(jnp.bfloat16)                                # (1220, 512)
    b1 = params["b1"].astype(jnp.float32).reshape(1, HID_DIM)
    w2 = jnp.pad(params["w2"].astype(jnp.float32),
                 ((0, 0), (0, OUT_PAD - OUT_DIM))).astype(jnp.bfloat16)   # (512, 256)
    b2 = jnp.pad(params["b2"].astype(jnp.float32),
                 (0, OUT_PAD - OUT_DIM)).reshape(1, OUT_PAD)
    return {"w1": w1, "b1": b1, "w2": w2, "b2": b2}


def pack_encoder_mats(E1, E2, packed):
    """Known-linear encoder: fold E1/E2 into concatenated weights [W || E] so
    each layer of the fused noise path is a single MXU matmul."""
    e1 = E1.astype(jnp.bfloat16)                                          # (1220, 512)
    e2 = jnp.pad(E2.astype(jnp.float32),
                 ((0, 0), (0, OUT_PAD - OUT_DIM))).astype(jnp.bfloat16)   # (512, 256)
    w1cat = jnp.concatenate([packed["w1"], e1], axis=1)                   # (1220, 1024)
    w2cat = jnp.concatenate([packed["w2"], e2], axis=1)                   # (512, 512)
    return (w1cat, w2cat)


# ----------------------------- forward --------------------------------------

def metafeat_forward(x, packed, encoder=None, noise=True, meta_train=True,
                     noise_layer=("conv1", "conv2"), encoder_mats=None,
                     row_tile=None):
    """Mirror of MetaFeat.forward.

    packed:       dict from pack_params().
    encoder:      arbitrary external callable (PyTorch semantics) -> fallback path.
    encoder_mats: (w1cat, w2cat) from pack_encoder_mats() when the encoder is a
                  known linear map -> fully fused single-kernel path.
    """
    batch = x.shape[0]

    if not noise:
        out = _rowblocked_call(
            _fused_plain_kernel, [x],
            [packed["w1"], packed["b1"], packed["w2"], packed["b2"]],
            OUT_PAD, row_tile=row_tile)
        return out[:batch, :OUT_DIM]          # single fused row/col slice

    if encoder_mats is not None and {"conv1", "conv2"} <= set(noise_layer):
        w1cat, w2cat = encoder_mats
        out = _rowblocked_call(
            _fused_noise_kernel, [x],
            [w1cat, packed["b1"], w2cat, packed["b2"]],
            OUT_PAD, row_tile=row_tile)
        return out[:batch, :OUT_DIM]

    # Fallback: arbitrary external encoder cannot be fused into the kernel.
    assert encoder is not None
    if "conv1" in noise_layer:
        n1 = encoder({"l1_m": x}, meta_train=meta_train)["l1_m"].astype(jnp.float32)
        h = _rowblocked_call(_linear_noise_relu_kernel, [x, n1],
                             [packed["w1"], packed["b1"]], HID_DIM,
                             out_dtype=jnp.bfloat16, row_tile=row_tile)
    else:
        h = _rowblocked_call(_linear_relu_kernel, [x],
                             [packed["w1"], packed["b1"]], HID_DIM,
                             out_dtype=jnp.bfloat16, row_tile=row_tile)
    h = h[:batch]                              # drop row padding for the encoder
    if "conv2" in noise_layer:
        # TODO(synk): assumes the external encoder accepts a bf16 hidden state.
        n2 = encoder({"l2_m": h}, meta_train=meta_train)["l2_m"].astype(jnp.float32)
        n2 = jnp.pad(n2, ((0, 0), (0, OUT_PAD - n2.shape[1])))
        y = _rowblocked_call(_linear_noise_relu_kernel, [h, n2],
                             [packed["w2"], packed["b2"]], OUT_PAD, row_tile=row_tile)
    else:
        y = _rowblocked_call(_linear_relu_kernel, [h],
                             [packed["w2"], packed["b2"]], OUT_PAD, row_tile=row_tile)
    return y[:batch, :OUT_DIM]


# ----------------------------- references (bf16-weight math) ----------------

def _bf(a):
    return a.astype(jnp.bfloat16).astype(jnp.float32)


def ref_fused_noise(x, params, E1, E2):
    xb = _bf(x)
    h = xb @ _bf(params["w1"]) + params["b1"]
    h = jnp.maximum(_softplus(xb @ _bf(E1)) + h, 0.0)
    hb = _bf(h)
    y = hb @ _bf(params["w2"]) + params["b2"]
    return jnp.maximum(_softplus(hb @ _bf(E2)) + y, 0.0)


def ref_plain(x, params):
    xb = _bf(x)
    h = jnp.maximum(xb @ _bf(params["w1"]) + params["b1"], 0.0)
    return jnp.maximum(_bf(h) @ _bf(params["w2"]) + params["b2"], 0.0)


def ref_general(x, params, encoder, meta_train=True):
    xb = _bf(x)
    h = xb @ _bf(params["w1"]) + params["b1"]
    n1 = encoder({"l1_m": x}, meta_train=meta_train)["l1_m"]
    h = jnp.maximum(_softplus(n1) + h, 0.0)
    hb = _bf(h)                                 # kernel emits the hidden in bf16
    n2 = encoder({"l2_m": hb.astype(jnp.bfloat16)}, meta_train=meta_train)["l2_m"]
    y = hb @ _bf(params["w2"]) + params["b2"]
    return jnp.maximum(_softplus(n2.astype(jnp.float32)) + y, 0.0)


# ----------------------------- main -----------------------------------------

if __name__ == "__main__":
    key = jax.random.PRNGKey(0)
    k_x, k_w1, k_b1, k_w2, k_b2, k_e1, k_e2 = jax.random.split(key, 7)

    B = 8
    x = jax.random.normal(k_x, (B, IN_DIM), dtype=jnp.float32)

    params = {
        "w1": jax.random.normal(k_w1, (IN_DIM, HID_DIM), dtype=jnp.float32) * 0.02,
        "b1": jax.random.normal(k_b1, (HID_DIM,), dtype=jnp.float32) * 0.02,
        "w2": jax.random.normal(k_w2, (HID_DIM, OUT_DIM), dtype=jnp.float32) * 0.02,
        "b2": jax.random.normal(k_b2, (OUT_DIM,), dtype=jnp.float32) * 0.02,
    }

    # TODO(synk): the `encoder` module is external to MetaFeat (no definition in
    # the spec); modeled as a deterministic per-layer linear map so both the
    # fused (linear-encoder) path and the generic fallback can be exercised.
    E1 = jax.random.normal(k_e1, (IN_DIM, HID_DIM), dtype=jnp.float32) * 0.02
    E2 = jax.random.normal(k_e2, (HID_DIM, OUT_DIM), dtype=jnp.float32) * 0.02

    packed = pack_params(params)
    enc_mats = pack_encoder_mats(E1, E2, packed)

    # 1) noise=True, fully fused single kernel (linear encoder folded into W||E).
    out1 = jax.block_until_ready(
        metafeat_forward(x, packed, noise=True, encoder_mats=enc_mats))
    ref1 = ref_fused_noise(x, params, E1, E2)
    assert out1.shape == (B, OUT_DIM)
    assert jnp.allclose(out1, ref1, atol=2e-3, rtol=2e-3)

    # 2) noise=False, fused two-layer single kernel.
    out2 = jax.block_until_ready(metafeat_forward(x, packed, noise=False))
    ref2 = ref_plain(x, params)
    assert out2.shape == (B, OUT_DIM)
    assert jnp.allclose(out2, ref2, atol=2e-3, rtol=2e-3)

    # 3) noise=True with an arbitrary external encoder callable (fallback path).
    def encoder(d, meta_train=True):
        if "l1_m" in d:
            return {"l1_m": d["l1_m"] @ E1}
        return {"l2_m": d["l2_m"].astype(jnp.float32) @ E2}

    out3 = jax.block_until_ready(
        metafeat_forward(x, packed, encoder=encoder, noise=True))
    ref3 = ref_general(x, params, encoder)
    assert out3.shape == (B, OUT_DIM)
    assert jnp.allclose(out3, ref3, atol=2e-3, rtol=2e-3)

    print("KERNEL_OK")
</pallas_src>

<mosaic_0001>
module attributes {stable_mosaic.version = 11 : i64} {
  func.func @_fused_noise_kernel(%arg0: i32, %arg1: memref<8x1220xf32, #tpu.memory_space<vmem>>, %arg2: memref<1220x1024xbf16, #tpu.memory_space<vmem>>, %arg3: memref<1x512xf32, #tpu.memory_space<vmem>>, %arg4: memref<512x512xbf16, #tpu.memory_space<vmem>>, %arg5: memref<1x256xf32, #tpu.memory_space<vmem>>, %arg6: memref<8x256xf32, #tpu.memory_space<vmem>>) attributes {dimension_semantics = [#tpu.dimension_semantics<parallel>], iteration_bounds = array<i64: 1>, scalar_prefetch = 0 : i64, scratch_operands = 0 : i64, tpu.core_type = #tpu.core_type<tc>, window_params = [{transform_indices = @transform_0, window_bounds = array<i64: 8, 1220>}, {pipeline_mode = #tpu.pipeline_mode<synchronous>, transform_indices = @transform_1, window_bounds = array<i64: 1220, 1024>}, {pipeline_mode = #tpu.pipeline_mode<synchronous>, transform_indices = @transform_2, window_bounds = array<i64: 1, 512>}, {pipeline_mode = #tpu.pipeline_mode<synchronous>, transform_indices = @transform_3, window_bounds = array<i64: 512, 512>}, {pipeline_mode = #tpu.pipeline_mode<synchronous>, transform_indices = @transform_4, window_bounds = array<i64: 1, 256>}, {transform_indices = @transform_5, window_bounds = array<i64: 8, 256>}]} {
    %c0 = arith.constant 0 : index
    %c0_0 = arith.constant 0 : index
    %0 = vector.load %arg1[%c0, %c0_0] : memref<8x1220xf32, #tpu.memory_space<vmem>>, vector<8x1220xf32>
    %1 = arith.truncf %0 : vector<8x1220xf32> to vector<8x1220xbf16>
    %c0_1 = arith.constant 0 : index
    %c0_2 = arith.constant 0 : index
    %2 = vector.load %arg2[%c0_1, %c0_2] : memref<1220x1024xbf16, #tpu.memory_space<vmem>>, vector<1220x1024xbf16>
    %cst = arith.constant dense<0.000000e+00> : vector<8x1024xf32>
    %3 = tpu.matmul %1, %2, %cst {dimension_numbers = #tpu.dot_dimension_numbers<[1], [0], [0], [1], [0, 0, 1, 1], [], []>} : vector<8x1220xbf16>, vector<1220x1024xbf16>, vector<8x1024xf32> -> vector<8x1024xf32>
    %4 = vector.extract_strided_slice %3 {offsets = [0, 512], sizes = [8, 512], strides = [1, 1]} : vector<8x1024xf32> to vector<8x512xf32>
    %cst_3 = arith.constant 0.000000e+00 : f32
    %5 = vector.broadcast %cst_3 : f32 to vector<8x512xf32>
    %6 = arith.maximumf %4, %5 : vector<8x512xf32>
    %7 = vector.broadcast %cst_3 : f32 to vector<8x512xf32>
    %8 = arith.subf %4, %7 : vector<8x512xf32>
    %9 = arith.cmpf one, %8, %8 : vector<8x512xf32>
    %10 = vector.broadcast %cst_3 : f32 to vector<8x512xf32>
    %11 = arith.addf %4, %10 : vector<8x512xf32>
    %12 = math.absf %8 : vector<8x512xf32>
    %cst_4 = arith.constant 0.000000e+00 : f32
    %13 = vector.broadcast %cst_4 : f32 to vector<8x512xf32>
    %14 = arith.subf %13, %12 : vector<8x512xf32>
    %15 = math.exp %14 : vector<8x512xf32>
    %16 = math.log1p %15 : vector<8x512xf32>
    %17 = arith.addf %6, %16 : vector<8x512xf32>
    %18 = arith.select %9, %11, %17 : vector<8x512xi1>, vector<8x512xf32>
    %19 = vector.extract_strided_slice %3 {offsets = [0, 0], sizes = [8, 512], strides = [1, 1]} : vector<8x1024xf32> to vector<8x512xf32>
    %20 = arith.addf %18, %19 : vector<8x512xf32>
    %c0_5 = arith.constant 0 : index
    %c0_6 = arith.constant 0 : index
    %21 = vector.load %arg3[%c0_5, %c0_6] : memref<1x512xf32, #tpu.memory_space<vmem>>, vector<1x512xf32>
    %22 = vector.broadcast %21 : vector<1x512xf32> to vector<8x512xf32>
    %23 = arith.addf %20, %22 : vector<8x512xf32>
    %cst_7 = arith.constant 0.000000e+00 : f32
    %24 = vector.broadcast %cst_7 : f32 to vector<8x512xf32>
    %25 = arith.maximumf %23, %24 : vector<8x512xf32>
    %26 = arith.truncf %25 : vector<8x512xf32> to vector<8x512xbf16>
    %c0_8 = arith.constant 0 : index
    %c0_9 = arith.constant 0 : index
    %27 = vector.load %arg4[%c0_8, %c0_9] : memref<512x512xbf16, #tpu.memory_space<vmem>>, vector<512x512xbf16>
    %cst_10 = arith.constant dense<0.000000e+00> : vector<8x512xf32>
    %28 = tpu.matmul %26, %27, %cst_10 {dimension_numbers = #tpu.dot_dimension_numbers<[1], [0], [0], [1], [0, 0, 1, 1], [], []>} : vector<8x512xbf16>, vector<512x512xbf16>, vector<8x512xf32> -> vector<8x512xf32>
    %29 = vector.extract_strided_slice %28 {offsets = [0, 256], sizes = [8, 256], strides = [1, 1]} : vector<8x512xf32> to vector<8x256xf32>
    %cst_11 = arith.constant 0.000000e+00 : f32
    %30 = vector.broadcast %cst_11 : f32 to vector<8x256xf32>
    %31 = arith.maximumf %29, %30 : vector<8x256xf32>
    %32 = vector.broadcast %cst_11 : f32 to vector<8x256xf32>
    %33 = arith.subf %29, %32 : vector<8x256xf32>
    %34 = arith.cmpf one, %33, %33 : vector<8x256xf32>
    %35 = vector.broadcast %cst_11 : f32 to vector<8x256xf32>
    %36 = arith.addf %29, %35 : vector<8x256xf32>
    %37 = math.absf %33 : vector<8x256xf32>
    %cst_12 = arith.constant 0.000000e+00 : f32
    %38 = vector.broadcast %cst_12 : f32 to vector<8x256xf32>
    %39 = arith.subf %38, %37 : vector<8x256xf32>
    %40 = math.exp %39 : vector<8x256xf32>
    %41 = math.log1p %40 : vector<8x256xf32>
    %42 = arith.addf %31, %41 : vector<8x256xf32>
    %43 = arith.select %34, %36, %42 : vector<8x256xi1>, vector<8x256xf32>
    %44 = vector.extract_strided_slice %28 {offsets = [0, 0], sizes = [8, 256], strides = [1, 1]} : vector<8x512xf32> to vector<8x256xf32>
    %45 = arith.addf %43, %44 : vector<8x256xf32>
    %c0_13 = arith.constant 0 : index
    %c0_14 = arith.constant 0 : index
    %46 = vector.load %arg5[%c0_13, %c0_14] : memref<1x256xf32, #tpu.memory_space<vmem>>, vector<1x256xf32>
    %47 = vector.broadcast %46 : vector<1x256xf32> to vector<8x256xf32>
    %48 = arith.addf %45, %47 : vector<8x256xf32>
    %cst_15 = arith.constant 0.000000e+00 : f32
    %49 = vector.broadcast %cst_15 : f32 to vector<8x256xf32>
    %50 = arith.maximumf %48, %49 : vector<8x256xf32>
    %c0_16 = arith.constant 0 : index
    %c0_17 = arith.constant 0 : index
    %51 = vector.load %arg6[%c0_16, %c0_17] : memref<8x256xf32, #tpu.memory_space<vmem>>, vector<8x256xf32>
    tpu.vector_store %arg6[%c0_16, %c0_17], %50 {strides = array<i32>} : memref<8x256xf32, #tpu.memory_space<vmem>>, vector<8x256xf32>,
    return
  }
  func.func @transform_0(%arg0: i32) -> (i32, i32) {
    %c0_i32 = arith.constant 0 : i32
    %c0_i32_0 = arith.constant 0 : i32
    return %arg0, %c0_i32 : i32, i32
  }
  func.func @transform_1(%arg0: i32) -> (i32, i32) {
    %c0_i32 = arith.constant 0 : i32
    %c0_i32_0 = arith.constant 0 : i32
    %c0_i32_1 = arith.constant 0 : i32
    return %c0_i32, %c0_i32_0 : i32, i32
  }
  func.func @transform_2(%arg0: i32) -> (i32, i32) {
    %c0_i32 = arith.constant 0 : i32
    %c0_i32_0 = arith.constant 0 : i32
    %c0_i32_1 = arith.constant 0 : i32
    return %c0_i32, %c0_i32_0 : i32, i32
  }
  func.func @transform_3(%arg0: i32) -> (i32, i32) {
    %c0_i32 = arith.constant 0 : i32
    %c0_i32_0 = arith.constant 0 : i32
    %c0_i32_1 = arith.constant 0 : i32
    return %c0_i32, %c0_i32_0 : i32, i32
  }
  func.func @transform_4(%arg0: i32) -> (i32, i32) {
    %c0_i32 = arith.constant 0 : i32
    %c0_i32_0 = arith.constant 0 : i32
    %c0_i32_1 = arith.constant 0 : i32
    return %c0_i32, %c0_i32_0 : i32, i32
  }
  func.func @transform_5(%arg0: i32) -> (i32, i32) {
    %c0_i32 = arith.constant 0 : i32
    %c0_i32_0 = arith.constant 0 : i32
    return %arg0, %c0_i32 : i32, i32
  }
}

</mosaic_0001>

<bundles_post_ra>
// kernel: tpu_custom_call.1
= control target key start
LH: loop header
LB: loop body
LE: loop exit
PB: predicated region body
PF: predicated region fallthrough
CT: control target
= control target key end

     0   :  { %10 = vsyncpa [#allocation3], 0  ;;  %s10216_s0 = inlined_call_operand.hbm [shape: f32[8,1220], index: 0, kind: input, shape index: {}]   ;;  %s10217_s1 = inlined_call_operand.hbm [shape: bf16[1220,1024], index: 1, kind: input, shape index: {}]   ;;  %s10218_s2 = inlined_call_operand.hbm [shape: f32[1,512], index: 2, kind: input, shape index: {}]   ;;  %s10219_s3 = inlined_call_operand.hbm [shape: bf16[512,512], index: 3, kind: input, shape index: {}]   ;;  %s10220_s4 = inlined_call_operand.hbm [shape: f32[1,256], index: 4, kind: input, shape index: {}]   ;;  %s10221_s5 = inlined_call_operand.hbm [shape: f32[8,256], index: 5, kind: output, shape index: {}]  }
   0x1   :  { %11 = vsyncpa [#allocation6], 0 }
   0x2   :  { %12 = vsyncpa [#allocation9], 0  ;;  %s29_s20 = sshll.u32 %s10217_s1, 4  ;;  %s30_s20 = int_to_ptr.hbm [resolvable:$true] %s29_s20 }
   0x3   :  { %13 = vsyncpa [#allocation4], 0  ;;  %s9873_s21 = smov [#allocation5]   ;;  %s53_s25 = sshll.u32 %s10219_s3, 4  ;;  %s54_s25 = int_to_ptr.hbm [resolvable:$true] %s53_s25 }
   0x4   :  { %s31_s22 = sshll.u32 %s9873_s21, 4  ;;  %s9874_s26 = smov 512   ;;  %s32_s22 = int_to_ptr.vmem [resolvable:$true] %s31_s22 }
   0x5   :  { %s9875_s27 = smov 32   ;;  %s9876_s28 = smov [#allocation8]  }
   0x6   :  { %37 = dma.hbm_to_vmem [thread:$0]  %s30_s20, 78336, %s32_s22, [#allocation6], %s9874_s26, %s9874_s26, %s9875_s27  }
   0x7   :  { %s55_s29 = sshll.u32 %s9876_s28, 4  ;;  %s9877_s30 = smov 256   ;;  %s56_s29 = int_to_ptr.vmem [resolvable:$true] %s55_s29 }
   0x8   :  { %s9878_s6 = smov 16   ;;  %s19_s8 = sshll.u32 %s10216_s0, 4  ;;  %s20_s8 = int_to_ptr.hbm [resolvable:$true] %s19_s8 }
   0x9   :  { %61 = dma.hbm_to_vmem [thread:$0]  %s54_s25, 16384, %s56_s29, [#allocation9], %s9877_s30, %s9877_s30, %s9878_s6  }
   0xa   :  { %s9879_s9 = smov [#allocation2]   ;;  %s43_s12 = sshll.u32 %s10218_s2, 4  ;;  %s44_s12 = int_to_ptr.hbm [resolvable:$true] %s43_s12 }
   0xb   :  { %s21_s10 = sshll.u32 %s9879_s9, 4  ;;  %s9880_s13 = smov [#allocation7]   ;;  %s22_s10 = int_to_ptr.vmem [resolvable:$true] %s21_s10 }
   0xc   :  { %24 = dma.hbm_to_vmem [thread:$0]  %s20_s8, 1280, %s22_s10, [#allocation3]  }
   0xd   :  { %s45_s14 = sshll.u32 %s9880_s13, 4  ;;  %s67_s17 = sshll.u32 %s10220_s4, 4  ;;  %s46_s14 = int_to_ptr.vmem [resolvable:$true] %s45_s14  ;;  %s68_s17 = int_to_ptr.hbm [resolvable:$true] %s67_s17 }
   0xe   :  { %48 = dma.hbm_to_vmem [thread:$0]  %s44_s12, 64, %s46_s14, [#allocation6]  }
   0xf   :  { %s9881_s0 = smov [#allocation10]  }
  0x10   :  { %s69_s18 = sshll.u32 %s9881_s0, 4  ;;  %s70_s18 = int_to_ptr.vmem [resolvable:$true] %s69_s18 }
  0x11   :  { %72 = dma.hbm_to_vmem [thread:$0]  %s68_s17, 32, %s70_s18, [#allocation9]  }
  0x12   :  { %9865 = dma.done.wait [#allocation3], 1280  }
  0x13   :  { %9866 = vsyncadd [#allocation3], 4294966016 }
  0x14   :  { %9867 = dma.done.wait [#allocation6], 78400  }
  0x15   :  { %9868 = vsyncadd [#allocation6], 4294888896 }
  0x16   :  { %9869 = dma.done.wait [#allocation9], 16416  }
  0x17   :  { %9870 = vsyncadd [#allocation9], 4294950880  ;;  %v6224_v0 = vld [vmem:[#allocation5 + $0x1c0] sm:$0xf]  ;;  %vm3790_vm0 = vcmask 1041408   ;;  %vm3786_vm1 = vcmask 556032  }
  0x18   :  { %v9010_v1 = vld [vmem:[#allocation5 + $0x1dc] sm:$0xf0]  ;;  %s9882_s2 = smov [#allocation11]   ;;  %s5986_s21 = sshll.u32 %s10221_s5, 4  ;;  %s5987_s21 = int_to_ptr.hbm [resolvable:$true] %s5986_s21 }
  0x19   :  { %v6480_v2 = vld [vmem:[#allocation5 + $0x3c0] sm:$0xf]  ;;  %v6225_v3 = vor.u32 %v9010_v1, %v6224_v0  ;;  %s5984_s4 = sshll.u32 %s9882_s2, 4  ;;  %s5985_s4 = int_to_ptr.vmem [resolvable:$true] %s5984_s4 }
  0x1a   :  { %v9074_v4 = vld [vmem:[#allocation5 + $0x3dc] sm:$0xf0] }
  0x1b   :  { %v6736_v5 = vld [vmem:[#allocation5 + $0x5c0] sm:$0xf]  ;;  %v6481_v7 = vor.u32 %v9074_v4, %v6480_v2  ;;  %3815 = vmatpush.bf16.msra.mxu0 %v6225_v3 }
  0x1c   :  { %v9138_v6 = vld [vmem:[#allocation5 + $0x5dc] sm:$0xf0] }
  0x1d   :  { %v6737_v8 = vor.u32 %v9138_v6, %v6736_v5  ;;  %v6992_v9 = vld [vmem:[#allocation5 + $0x7c0] sm:$0xf]  ;;  %3828 = vmatpush.bf16.msra.mxu1 %v6481_v7 }
  0x1e   :  { %v9202_v10 = vld [vmem:[#allocation5 + $0x7dc] sm:$0xf0] }
  0x1f   :  { %v6192_v11 = vld [vmem:[#allocation5 + $0x180] sm:$0xf]  ;;  %v6993_v12 = vor.u32 %v9202_v10, %v6992_v9  ;;  %3841 = vmatpush.bf16.msra.mxu2 %v6737_v8 }
  0x20   :  { %v9002_v13 = vld [vmem:[#allocation5 + $0x19c] sm:$0xf0] }
  0x21   :  { %v6448_v14 = vld [vmem:[#allocation5 + $0x380] sm:$0xf]  ;;  %v6193_v16 = vor.u32 %v9002_v13, %v6192_v11  ;;  %3854 = vmatpush.bf16.msra.mxu3 %v6993_v12 }
  0x22   :  { %v9066_v15 = vld [vmem:[#allocation5 + $0x39c] sm:$0xf0] }
  0x23   :  { %v6449_v17 = vor.u32 %v9066_v15, %v6448_v14  ;;  %v6704_v18 = vld [vmem:[#allocation5 + $0x580] sm:$0xf]  ;;  %3816 = vmatpush.bf16.msra.mxu0 %v6193_v16 }
  0x24   :  { %v9130_v19 = vld [vmem:[#allocation5 + $0x59c] sm:$0xf0] }
  0x25   :  { %v6960_v20 = vld [vmem:[#allocation5 + $0x780] sm:$0xf]  ;;  %v6705_v21 = vor.u32 %v9130_v19, %v6704_v18  ;;  %3829 = vmatpush.bf16.msra.mxu1 %v6449_v17 }
  0x26   :  { %v9194_v22 = vld [vmem:[#allocation5 + $0x79c] sm:$0xf0] }
  0x27   :  { %v6160_v23 = vld [vmem:[#allocation5 + $0x140] sm:$0xf]  ;;  %v6961_v25 = vor.u32 %v9194_v22, %v6960_v20  ;;  %3842 = vmatpush.bf16.msra.mxu2 %v6705_v21 }
  0x28   :  { %v8994_v24 = vld [vmem:[#allocation5 + $0x15c] sm:$0xf0] }
  0x29   :  { %v6416_v26 = vld [vmem:[#allocation5 + $0x340] sm:$0xf]  ;;  %v6161_v29 = vor.u32 %v8994_v24, %v6160_v23  ;;  %3855 = vmatpush.bf16.msra.mxu3 %v6961_v25 }
  0x2a   :  { %v9058_v27 = vld [vmem:[#allocation5 + $0x35c] sm:$0xf0] }
  0x2b   :  { %v6672_v28 = vld [vmem:[#allocation5 + $0x540] sm:$0xf]  ;;  %v6417_v33 = vor.u32 %v9058_v27, %v6416_v26  ;;  %3817 = vmatpush.bf16.msra.mxu0 %v6161_v29 }
  0x2c   :  { %v9122_v30 = vld [vmem:[#allocation5 + $0x55c] sm:$0xf0] }
  0x2d   :  { %v6928_v31 = vld [vmem:[#allocation5 + $0x740] sm:$0xf]  ;;  %v6673_v34 = vor.u32 %v9122_v30, %v6672_v28  ;;  %3830 = vmatpush.bf16.msra.mxu1 %v6417_v33 }
  0x2e   :  { %v9186_v32 = vld [vmem:[#allocation5 + $0x75c] sm:$0xf0] }
  0x2f   :  { %v6128_v35 = vld [vmem:[#allocation5 + $0x100] sm:$0xf]  ;;  %v6929_v38 = vor.u32 %v9186_v32, %v6928_v31  ;;  %3843 = vmatpush.bf16.msra.mxu2 %v6673_v34 }
  0x30   :  { %v8986_v36 = vld [vmem:[#allocation5 + $0x11c] sm:$0xf0] }
  0x31   :  { %v6384_v37 = vld [vmem:[#allocation5 + $0x300] sm:$0xf]  ;;  %v6129_v44 = vor.u32 %v8986_v36, %v6128_v35  ;;  %3856 = vmatpush.bf16.msra.mxu3 %v6929_v38 }
  0x32   :  { %v9050_v39 = vld [vmem:[#allocation5 + $0x31c] sm:$0xf0] }
  0x33   :  { %v6640_v40 = vld [vmem:[#allocation5 + $0x500] sm:$0xf]  ;;  %v6385_v45 = vor.u32 %v9050_v39, %v6384_v37  ;;  %3818 = vmatpush.bf16.msra.mxu0 %v6129_v44 }
  0x34   :  { %v9114_v41 = vld [vmem:[#allocation5 + $0x51c] sm:$0xf0] }
  0x35   :  { %v6896_v42 = vld [vmem:[#allocation5 + $0x700] sm:$0xf]  ;;  %v6641_v46 = vor.u32 %v9114_v41, %v6640_v40  ;;  %3831 = vmatpush.bf16.msra.mxu1 %v6385_v45 }
  0x36   :  { %v9178_v43 = vld [vmem:[#allocation5 + $0x71c] sm:$0xf0] }
  0x37   :  { %v6096_v47 = vld [vmem:[#allocation5 + $0xc0] sm:$0xf]  ;;  %v6897_v50 = vor.u32 %v9178_v43, %v6896_v42  ;;  %3844 = vmatpush.bf16.msra.mxu2 %v6641_v46 }
  0x38   :  { %v8978_v48 = vld [vmem:[#allocation5 + $0xdc] sm:$0xf0] }
  0x39   :  { %v6352_v49 = vld [vmem:[#allocation5 + $0x2c0] sm:$0xf]  ;;  %v6097_v56 = vor.u32 %v8978_v48, %v6096_v47  ;;  %3857 = vmatpush.bf16.msra.mxu3 %v6897_v50 }
  0x3a   :  { %v9042_v51 = vld [vmem:[#allocation5 + $0x2dc] sm:$0xf0] }
  0x3b   :  { %v6608_v52 = vld [vmem:[#allocation5 + $0x4c0] sm:$0xf]  ;;  %v6353_v57 = vor.u32 %v9042_v51, %v6352_v49  ;;  %3819 = vmatpush.bf16.msra.mxu0 %v6097_v56 }
  0x3c   :  { %v9106_v53 = vld [vmem:[#allocation5 + $0x4dc] sm:$0xf0] }
  0x3d   :  { %v6864_v54 = vld [vmem:[#allocation5 + $0x6c0] sm:$0xf]  ;;  %v6609_v58 = vor.u32 %v9106_v53, %v6608_v52  ;;  %3832 = vmatpush.bf16.msra.mxu1 %v6353_v57 }
  0x3e   :  { %v9170_v55 = vld [vmem:[#allocation5 + $0x6dc] sm:$0xf0] }
  0x3f   :  { %v6064_v59 = vld [vmem:[#allocation5 + $0x80] sm:$0xf]  ;;  %v6865_v62 = vor.u32 %v9170_v55, %v6864_v54  ;;  %3845 = vmatpush.bf16.msra.mxu2 %v6609_v58 }
  0x40   :  { %v8970_v60 = vld [vmem:[#allocation5 + $0x9c] sm:$0xf0] }
  0x41   :  { %v6320_v61 = vld [vmem:[#allocation5 + $0x280] sm:$0xf]  ;;  %v6065_v4 = vor.u32 %v8970_v60, %v6064_v59  ;;  %3858 = vmatpush.bf16.msra.mxu3 %v6865_v62 }
  0x42   :  { %v9034_v63 = vld [vmem:[#allocation5 + $0x29c] sm:$0xf0] }
  0x43   :  { %v6576_v0 = vld [vmem:[#allocation5 + $0x480] sm:$0xf]  ;;  %v6321_v5 = vor.u32 %v9034_v63, %v6320_v61  ;;  %3820 = vmatpush.bf16.msra.mxu0 %v6065_v4 }
  0x44   :  { %v9098_v1 = vld [vmem:[#allocation5 + $0x49c] sm:$0xf0] }
  0x45   :  { %v6832_v2 = vld [vmem:[#allocation5 + $0x680] sm:$0xf]  ;;  %v6577_v6 = vor.u32 %v9098_v1, %v6576_v0  ;;  %3833 = vmatpush.bf16.msra.mxu1 %v6321_v5  ;;  %v94_v5 = vld [vmem:[#allocation2] sm:$0xff] }
  0x46   :  { %v9162_v3 = vld [vmem:[#allocation5 + $0x69c] sm:$0xf0] }
  0x47   :  { %v6032_v7 = vld [vmem:[#allocation5 + $0x40] sm:$0xf]  ;;  %v6833_v10 = vor.u32 %v9162_v3, %v6832_v2  ;;  %3846 = vmatpush.bf16.msra.mxu2 %v6577_v6 }
  0x48   :  { %v8962_v8 = vld [vmem:[#allocation5 + $0x5c] sm:$0xf0] }
  0x49   :  { %v6288_v9 = vld [vmem:[#allocation5 + $0x240] sm:$0xf]  ;;  %v6033_v16 = vor.u32 %v8962_v8, %v6032_v7  ;;  %3859 = vmatpush.bf16.msra.mxu3 %v6833_v10  ;;  %v97_v10 = vld [vmem:[#allocation2 + $0x18] sm:$0xff] }
  0x4a   :  { %v9026_v11 = vld [vmem:[#allocation5 + $0x25c] sm:$0xf0] }
  0x4b   :  { %v6544_v12 = vld [vmem:[#allocation5 + $0x440] sm:$0xf]  ;;  %v6289_v19 = vor.u32 %v9026_v11, %v6288_v9  ;;  %3821 = vmatpush.bf16.msra.mxu0 %v6033_v16  ;;  %v9931_v9 = vpack.c.bf16 %v94_v5, %v94_v5  ;;  %v95_v11 = vld [vmem:[#allocation2 + $0x8] sm:$0xff]  ;;  %v9933_v16 = vpack.c.bf16 %v97_v10, %v97_v10 }
  0x4c   :  { %v9090_v13 = vld [vmem:[#allocation5 + $0x45c] sm:$0xf0] }
  0x4d   :  { %v6800_v14 = vld [vmem:[#allocation5 + $0x640] sm:$0xf]  ;;  %v6545_v20 = vor.u32 %v9090_v13, %v6544_v12  ;;  %3834 = vmatpush.bf16.msra.mxu1 %v6289_v19 }
  0x4e   :  { %v9154_v15 = vld [vmem:[#allocation5 + $0x65c] sm:$0xf0] }
  0x4f   :  { %v6000_v17 = vld [vmem:[#allocation5] sm:$0xf]  ;;  %v6801_v24 = vor.u32 %v9154_v15, %v6800_v14  ;;  %3847 = vmatpush.bf16.msra.mxu2 %v6545_v20 }
  0x50   :  { %v8954_v18 = vld [vmem:[#allocation5 + $0x1c] sm:$0xf0] }
  0x51   :  { %v6256_v21 = vld [vmem:[#allocation5 + $0x200] sm:$0xf]  ;;  %v6001_v31 = vor.u32 %v8954_v18, %v6000_v17  ;;  %3860 = vmatpush.bf16.msra.mxu3 %v6801_v24  ;;  %v9935_v17 = vpack.c.bf16 %v95_v11, %v95_v11 }
  0x52   :  { %v9018_v22 = vld [vmem:[#allocation5 + $0x21c] sm:$0xf0] }
  0x53   :  { %v6512_v23 = vld [vmem:[#allocation5 + $0x400] sm:$0xf]  ;;  %v6257_v35 = vor.u32 %v9018_v22, %v6256_v21  ;;  %3822 = vmatpush.bf16.msra.mxu0 %v6001_v31 }
  0x54   :  { %v9082_v25 = vld [vmem:[#allocation5 + $0x41c] sm:$0xf0] }
  0x55   :  { %v6768_v26 = vld [vmem:[#allocation5 + $0x600] sm:$0xf]  ;;  %v6513_v36 = vor.u32 %v9082_v25, %v6512_v23  ;;  %3835 = vmatpush.bf16.msra.mxu1 %v6257_v35 }
  0x56   :  { %v9146_v27 = vld [vmem:[#allocation5 + $0x61c] sm:$0xf0]  ;;  %3823 = vmatmul.bf16.vlgmr.msra.gmra.mxu0 %v9931_v9 }
  0x57   :  { %v7248_v28 = vld [vmem:[#allocation5 + $0x9c0] sm:$0xf]  ;;  %v6769_v39 = vor.u32 %v9146_v27, %v6768_v26  ;;  %3848 = vmatpush.bf16.msra.mxu2 %v6513_v36 }
  0x58   :  { %v9266_v29 = vld [vmem:[#allocation5 + $0x9dc] sm:$0xf0]  ;;  %3836 = vmatmul.bf16.vlgmr.msra.gmra.mxu1 %v9935_v17 }
  0x59   :  { %v7504_v30 = vld [vmem:[#allocation5 + $0xbc0] sm:$0xf]  ;;  %v7249_v40 = vor.u32 %v9266_v29, %v7248_v28  ;;  %3861 = vmatpush.bf16.msra.mxu3 %v6769_v39 }
  0x5a   :  { %v9330_v32 = vld [vmem:[#allocation5 + $0xbdc] sm:$0xf0] }
  0x5b   :  { %v7760_v33 = vld [vmem:[#allocation5 + $0xdc0] sm:$0xf]  ;;  %v7505_v41 = vor.u32 %v9330_v32, %v7504_v30  ;;  %3867 = vmatpush.bf16.msrb.mxu0 %v7249_v40 }
  0x5c   :  { %v9394_v34 = vld [vmem:[#allocation5 + $0xddc] sm:$0xf0]  ;;  %3862 = vmatmul.bf16.vlgmr.msra.gmra.mxu3 %v9933_v16 }
  0x5d   :  { %v8016_v37 = vld [vmem:[#allocation5 + $0xfc0] sm:$0xf]  ;;  %v7761_v42 = vor.u32 %v9394_v34, %v7760_v33  ;;  %3880 = vmatpush.bf16.msrb.mxu1 %v7505_v41 }
  0x5e   :  { %v9458_v38 = vld [vmem:[#allocation5 + $0xfdc] sm:$0xf0] }
  0x5f   :  { %v7216_v43 = vld [vmem:[#allocation5 + $0x980] sm:$0xf]  ;;  %v8017_v46 = vor.u32 %v9458_v38, %v8016_v37  ;;  %3893 = vmatpush.bf16.msrb.mxu2 %v7761_v42 }
  0x60   :  { %v9258_v44 = vld [vmem:[#allocation5 + $0x99c] sm:$0xf0] }
  0x61   :  { %v7472_v45 = vld [vmem:[#allocation5 + $0xb80] sm:$0xf]  ;;  %v7217_v52 = vor.u32 %v9258_v44, %v7216_v43  ;;  %3906 = vmatpush.bf16.msrb.mxu3 %v8017_v46 }
  0x62   :  { %v9322_v47 = vld [vmem:[#allocation5 + $0xb9c] sm:$0xf0] }
  0x63   :  { %v7728_v48 = vld [vmem:[#allocation5 + $0xd80] sm:$0xf]  ;;  %v7473_v54 = vor.u32 %v9322_v47, %v7472_v45  ;;  %3868 = vmatpush.bf16.msrb.mxu0 %v7217_v52 }
  0x64   :  { %v9386_v49 = vld [vmem:[#allocation5 + $0xd9c] sm:$0xf0] }
  0x65   :  { %v7984_v50 = vld [vmem:[#allocation5 + $0xf80] sm:$0xf]  ;;  %v7729_v55 = vor.u32 %v9386_v49, %v7728_v48  ;;  %3881 = vmatpush.bf16.msrb.mxu1 %v7473_v54 }
  0x66   :  { %v9450_v51 = vld [vmem:[#allocation5 + $0xf9c] sm:$0xf0] }
  0x67   :  { %v7184_v53 = vld [vmem:[#allocation5 + $0x940] sm:$0xf]  ;;  %v7985_v59 = vor.u32 %v9450_v51, %v7984_v50  ;;  %3894 = vmatpush.bf16.msrb.mxu2 %v7729_v55 }
  0x68   :  { %v9250_v56 = vld [vmem:[#allocation5 + $0x95c] sm:$0xf0] }
  0x69   :  { %v7440_v57 = vld [vmem:[#allocation5 + $0xb40] sm:$0xf]  ;;  %v7185_v2 = vor.u32 %v9250_v56, %v7184_v53  ;;  %3907 = vmatpush.bf16.msrb.mxu3 %v7985_v59 }
  0x6a   :  { %v96_v58 = vld [vmem:[#allocation2 + $0x10] sm:$0xff] }
  0x6b   :  { %v9314_v60 = vld [vmem:[#allocation5 + $0xb5c] sm:$0xf0]  ;;  %v9928_v63 = vpack.c.bf16 %v96_v58, %v96_v58  ;;  %3869 = vmatpush.bf16.msrb.mxu0 %v7185_v2 }
  0x6c   :  { %v7696_v61 = vld [vmem:[#allocation5 + $0xd40] sm:$0xf]  ;;  %v7441_v6 = vor.u32 %v9314_v60, %v7440_v57 }
  0x6d   :  { %v9378_v62 = vld [vmem:[#allocation5 + $0xd5c] sm:$0xf0]  ;;  %3849 = vmatmul.bf16.vlgmr.msra.gmra.mxu2 %v9928_v63 }
  0x6e   :  { %v7952_v0 = vld [vmem:[#allocation5 + $0xf40] sm:$0xf]  ;;  %v7697_v7 = vor.u32 %v9378_v62, %v7696_v61  ;;  %3882 = vmatpush.bf16.msrb.mxu1 %v7441_v6 }
  0x6f   :  { %v9442_v1 = vld [vmem:[#allocation5 + $0xf5c] sm:$0xf0] }
  0x70   :  { %v7152_v3 = vld [vmem:[#allocation5 + $0x900] sm:$0xf]  ;;  %v7953_v12 = vor.u32 %v9442_v1, %v7952_v0  ;;  %3895 = vmatpush.bf16.msrb.mxu2 %v7697_v7 }
  0x71   :  { %v9242_v4 = vld [vmem:[#allocation5 + $0x91c] sm:$0xf0] }
  0x72   :  { %v7408_v8 = vld [vmem:[#allocation5 + $0xb00] sm:$0xf]  ;;  %v7153_v20 = vor.u32 %v9242_v4, %v7152_v3  ;;  %3908 = vmatpush.bf16.msrb.mxu3 %v7953_v12  ;;  %v9006_v12 = vld [vmem:[#allocation5 + $0x1c4] sm:$0xf] }
  0x73   :  { %v9306_v13 = vld [vmem:[#allocation5 + $0xb1c] sm:$0xf0] }
  0x74   :  { %v7664_v14 = vld [vmem:[#allocation5 + $0xd00] sm:$0xf]  ;;  %v7409_v21 = vor.u32 %v9306_v13, %v7408_v8  ;;  %3870 = vmatpush.bf16.msrb.mxu0 %v7153_v20  ;;  %v6226_v13 = vld [vmem:[#allocation5 + $0x1e0] sm:$0xf0] }
  0x75   :  { %v9370_v15 = vld [vmem:[#allocation5 + $0xd1c] sm:$0xf0] }
  0x76   :  { %v7920_v18 = vld [vmem:[#allocation5 + $0xf00] sm:$0xf]  ;;  %v7665_v22 = vor.u32 %v9370_v15, %v7664_v14  ;;  %3883 = vmatpush.bf16.msrb.mxu1 %v7409_v21  ;;  %v9070_v14 = vld [vmem:[#allocation5 + $0x3c4] sm:$0xf] }
  0x77   :  { %v9434_v19 = vld [vmem:[#allocation5 + $0xf1c] sm:$0xf0] }
  0x78   :  { %v7120_v23 = vld [vmem:[#allocation5 + $0x8c0] sm:$0xf]  ;;  %v7921_v26 = vor.u32 %v9434_v19, %v7920_v18  ;;  %3896 = vmatpush.bf16.msrb.mxu2 %v7665_v22  ;;  %v6482_v19 = vld [vmem:[#allocation5 + $0x3e0] sm:$0xf0] }
  0x79   :  { %v9234_v24 = vld [vmem:[#allocation5 + $0x8dc] sm:$0xf0] }
  0x7a   :  { %v7376_v25 = vld [vmem:[#allocation5 + $0xac0] sm:$0xf]  ;;  %v7121_v32 = vor.u32 %v9234_v24, %v7120_v23  ;;  %3909 = vmatpush.bf16.msrb.mxu3 %v7921_v26  ;;  %v101_v26 = vld [vmem:[#allocation2 + $0x38] sm:$0xff] }
  0x7b   :  { %v9298_v27 = vld [vmem:[#allocation5 + $0xadc] sm:$0xf0] }
  0x7c   :  { %v7632_v28 = vld [vmem:[#allocation5 + $0xcc0] sm:$0xf]  ;;  %v7377_v33 = vor.u32 %v9298_v27, %v7376_v25  ;;  %3871 = vmatpush.bf16.msrb.mxu0 %v7121_v32  ;;  %v98_v25 = vld [vmem:[#allocation2 + $0x20] sm:$0xff]  ;;  %v6229_v27 = vor.u32 %v9006_v12, %v6226_v13  ;;  %v6485_v32 = vor.u32 %v9070_v14, %v6482_v19  ;;  %v8974_v12 = vld [vmem:[#allocation5 + $0xc4] sm:$0xf] }
  0x7d   :  { %v9362_v29 = vld [vmem:[#allocation5 + $0xcdc] sm:$0xf0]  ;;  %v6098_v13 = vld [vmem:[#allocation5 + $0xe0] sm:$0xf0] }
  0x7e   :  { %v7888_v30 = vld [vmem:[#allocation5 + $0xec0] sm:$0xf]  ;;  %v7633_v34 = vor.u32 %v9362_v29, %v7632_v28  ;;  %3884 = vmatpush.bf16.msrb.mxu1 %v7377_v33  ;;  %v8998_v33 = vld [vmem:[#allocation5 + $0x184] sm:$0xf] }
  0x7f   :  { %v9426_v31 = vld [vmem:[#allocation5 + $0xedc] sm:$0xf0]  ;;  %v9038_v14 = vld [vmem:[#allocation5 + $0x2c4] sm:$0xf] }
  0x80   :  { %v7088_v35 = vld [vmem:[#allocation5 + $0x880] sm:$0xf]  ;;  %v7889_v38 = vor.u32 %v9426_v31, %v7888_v30  ;;  %3897 = vmatpush.bf16.msrb.mxu2 %v7633_v34  ;;  %v99_v30 = vld [vmem:[#allocation2 + $0x28] sm:$0xff]  ;;  %v6194_v34 = vld [vmem:[#allocation5 + $0x1a0] sm:$0xf0] }
  0x81   :  { %v9226_v36 = vld [vmem:[#allocation5 + $0x89c] sm:$0xf0]  ;;  %v6738_v19 = vld [vmem:[#allocation5 + $0x5e0] sm:$0xf0] }
  0x82   :  { %v7344_v37 = vld [vmem:[#allocation5 + $0xa80] sm:$0xf]  ;;  %v7089_v44 = vor.u32 %v9226_v36, %v7088_v35  ;;  %3910 = vmatpush.bf16.msrb.mxu3 %v7889_v38  ;;  %v9062_v36 = vld [vmem:[#allocation5 + $0x384] sm:$0xf]  ;;  %v9946_v38 = vpack.c.bf16 %v98_v25, %v98_v25  ;;  %v103_v25 = vld [vmem:[#allocation2 + $0x48] sm:$0xff] }
  0x83   :  { %v9290_v39 = vld [vmem:[#allocation5 + $0xa9c] sm:$0xf0] }
  0x84   :  { %v7600_v40 = vld [vmem:[#allocation5 + $0xc80] sm:$0xf]  ;;  %v7345_v46 = vor.u32 %v9290_v39, %v7344_v37  ;;  %3872 = vmatpush.bf16.msrb.mxu0 %v7089_v44  ;;  %v6450_v37 = vld [vmem:[#allocation5 + $0x3a0] sm:$0xf0]  ;;  %v9948_v39 = vpack.c.bf16 %v101_v26, %v101_v26 }
  0x85   :  { %v9354_v41 = vld [vmem:[#allocation5 + $0xc9c] sm:$0xf0] }
  0x86   :  { %v7856_v42 = vld [vmem:[#allocation5 + $0xe80] sm:$0xf]  ;;  %v7601_v47 = vor.u32 %v9354_v41, %v7600_v40  ;;  %3885 = vmatpush.bf16.msrb.mxu1 %v7345_v46  ;;  %v9950_v41 = vpack.c.bf16 %v99_v30, %v99_v30  ;;  %v9030_v30 = vld [vmem:[#allocation5 + $0x284] sm:$0xf] }
  0x87   :  { %v9418_v43 = vld [vmem:[#allocation5 + $0xe9c] sm:$0xf0] }
  0x88   :  { %v7056_v45 = vld [vmem:[#allocation5 + $0x840] sm:$0xf]  ;;  %v7857_v51 = vor.u32 %v9418_v43, %v7856_v42  ;;  %3898 = vmatpush.bf16.msrb.mxu2 %v7601_v47  ;;  %v6197_v43 = vor.u32 %v8998_v33, %v6194_v34  ;;  %v6453_v47 = vor.u32 %v9062_v36, %v6450_v37  ;;  %v6706_v33 = vld [vmem:[#allocation5 + $0x5a0] sm:$0xf0]  ;;  %v9956_v36 = vpack.c.bf16 %v103_v25, %v103_v25 }
  0x89   :  { %v9218_v48 = vld [vmem:[#allocation5 + $0x85c] sm:$0xf0]  ;;  %v9318_v25 = vld [vmem:[#allocation5 + $0xb84] sm:$0xf] }
  0x8a   :  { %v7312_v49 = vld [vmem:[#allocation5 + $0xa40] sm:$0xf]  ;;  %v7057_v57 = vor.u32 %v9218_v48, %v7056_v45  ;;  %3911 = vmatpush.bf16.msrb.mxu3 %v7857_v51  ;;  %v6162_v51 = vld [vmem:[#allocation5 + $0x160] sm:$0xf0] }
  0x8b   :  { %v9940_v50 = vld [vmem:[#allocation5 + $0x1300] sm:$0x33] }
  0x8c   :  { %v9282_v52 = vld [vmem:[#allocation5 + $0xa5c] sm:$0xf0]  ;;  %v2554_v59 = vunpack.c.l.b16 %v9940_v50  ;;  %3873 = vmatpush.bf16.msrb.mxu0 %v7057_v57 }
  0x8d   :  { %v7568_v53 = vld [vmem:[#allocation5 + $0xc40] sm:$0xf]  ;;  %v7313_v60 = vor.u32 %v9282_v52, %v7312_v49  ;;  %v8990_v49 = vld [vmem:[#allocation5 + $0x144] sm:$0xf] }
  0x8e   :  { %v9346_v54 = vld [vmem:[#allocation5 + $0xc5c] sm:$0xf0]  ;;  %v3170_v11 = vpack.c.b16 %v2554_v59, %v2554_v59  ;;  %v9054_v52 = vld [vmem:[#allocation5 + $0x344] sm:$0xf] }
  0x8f   :  { %v7824_v55 = vld [vmem:[#allocation5 + $0xe40] sm:$0xf]  ;;  %v7569_v61 = vor.u32 %v9346_v54, %v7568_v53  ;;  %3886 = vmatpush.bf16.msrb.mxu1 %v7313_v60  ;;  %v6418_v53 = vld [vmem:[#allocation5 + $0x360] sm:$0xf0] }
  0x90   :  { %v9410_v56 = vld [vmem:[#allocation5 + $0xe5c] sm:$0xf0]  ;;  %v3792_v31 = vsel %vm3790_vm0, %v3170_v11, 0  ;;  %v6421_v60 = vor.u32 %v9054_v52, %v6418_v53 }
  0x91   :  { %v7024_v58 = vld [vmem:[#allocation5 + $0x800] sm:$0xf]  ;;  %v7825_v2 = vor.u32 %v9410_v56, %v7824_v55  ;;  %3899 = vmatpush.bf16.msrb.mxu2 %v7569_v61  ;;  %v6165_v56 = vor.u32 %v8990_v49, %v6162_v51  ;;  %v9118_v49 = vld [vmem:[#allocation5 + $0x544] sm:$0xf] }
  0x92   :  { %v9210_v62 = vld [vmem:[#allocation5 + $0x81c] sm:$0xf0]  ;;  %v6674_v51 = vld [vmem:[#allocation5 + $0x560] sm:$0xf0] }
  0x93   :  { %v7280_v0 = vld [vmem:[#allocation5 + $0xa00] sm:$0xf]  ;;  %v7025_v10 = vor.u32 %v9210_v62, %v7024_v58  ;;  %3912 = vmatpush.bf16.msrb.mxu3 %v7825_v2  ;;  %v8982_v62 = vld [vmem:[#allocation5 + $0x104] sm:$0xf] }
  0x94   :  { %v9274_v1 = vld [vmem:[#allocation5 + $0xa1c] sm:$0xf0]  ;;  %v6386_v2 = vld [vmem:[#allocation5 + $0x320] sm:$0xf0] }
  0x95   :  { %v7536_v3 = vld [vmem:[#allocation5 + $0xc00] sm:$0xf]  ;;  %v7281_v15 = vor.u32 %v9274_v1, %v7280_v0  ;;  %3874 = vmatpush.bf16.msrb.mxu0 %v7025_v10  ;;  %v6130_v0 = vld [vmem:[#allocation5 + $0x120] sm:$0xf0] }
  0x96   :  { %v9338_v4 = vld [vmem:[#allocation5 + $0xc1c] sm:$0xf0]  ;;  %v9046_v1 = vld [vmem:[#allocation5 + $0x304] sm:$0xf] }
  0x97   :  { %v7792_v5 = vld [vmem:[#allocation5 + $0xe00] sm:$0xf]  ;;  %v7537_v18 = vor.u32 %v9338_v4, %v7536_v3  ;;  %3887 = vmatpush.bf16.msrb.mxu1 %v7281_v15  ;;  %v6389_v11 = vor.u32 %v9046_v1, %v6386_v2  ;;  %v6354_v15 = vld [vmem:[#allocation5 + $0x2e0] sm:$0xf0] }
  0x98   :  { %v9402_v6 = vld [vmem:[#allocation5 + $0xe1c] sm:$0xf0]  ;;  %3875 = vmatmul.bf16.vlgmr.msrb.gmra.mxu0 %v9946_v38  ;;  %v6357_v26 = vor.u32 %v9038_v14, %v6354_v15  ;;  %v9110_v1 = vld [vmem:[#allocation5 + $0x504] sm:$0xf] }
  0x99   :  { %v8272_v7 = vld [vmem:[#allocation5 + $0x11c0] sm:$0xf]  ;;  %v7793_v22 = vor.u32 %v9402_v6, %v7792_v5  ;;  %3900 = vmatpush.bf16.msrb.mxu2 %v7537_v18  ;;  %v6133_v6 = vor.u32 %v8982_v62, %v6130_v0  ;;  %v9134_v18 = vld [vmem:[#allocation5 + $0x5c4] sm:$0xf] }
  0x9a   :  { %v9522_v8 = vld [vmem:[#allocation5 + $0x11dc] sm:$0xf0]  ;;  %3888 = vmatmul.bf16.vlgmr.msrb.gmra.mxu1 %v9950_v41  ;;  %v9198_v62 = vld [vmem:[#allocation5 + $0x7c4] sm:$0xf] }
  0x9b   :  { %v8240_v20 = vld [vmem:[#allocation5 + $0x1180] sm:$0xf]  ;;  %v8273_v23 = vor.u32 %v9522_v8, %v8272_v7  ;;  %3913 = vmatpush.bf16.msrb.mxu3 %v7793_v22  ;;  %3935 = vmatpush.bf16.msra.mxu1 %v3792_v31  ;;  %v6101_v22 = vor.u32 %v8974_v12, %v6098_v13  ;;  %v6322_v31 = vld [vmem:[#allocation5 + $0x2a0] sm:$0xf0] }
  0x9c   :  { %v100_v21 = vld [vmem:[#allocation2 + $0x30] sm:$0xff] }
  0x9d   :  { %v9514_v24 = vld [vmem:[#allocation5 + $0x119c] sm:$0xf0]  ;;  %v9944_v35 = vpack.c.bf16 %v100_v21, %v100_v21  ;;  %3919 = vmatpush.bf16.msra.mxu0 %v8273_v23  ;;  %3945 = vmatpush.bf16.msra.mxu2 %v6229_v27  ;;  %v6741_v27 = vor.u32 %v9134_v18, %v6738_v19  ;;  %v6994_v0 = vld [vmem:[#allocation5 + $0x7e0] sm:$0xf0] }
  0x9e   :  { %v8400_v28 = vld [vmem:[#allocation5 + $0x12c0] sm:$0xf]  ;;  %v8241_v40 = vor.u32 %v9514_v24, %v8240_v20  ;;  %3914 = vmatmul.bf16.vlgmr.msrb.gmra.mxu3 %v9948_v39  ;;  %v6642_v2 = vld [vmem:[#allocation5 + $0x520] sm:$0xf0] }
  0x9f   :  { %v9554_v29 = vld [vmem:[#allocation5 + $0x12dc] sm:$0xf0]  ;;  %3958 = vmatpush.bf16.msra.mxu3 %v6485_v32  ;;  %3901 = vmatmul.bf16.vlgmr.msrb.gmra.mxu2 %v9944_v35  ;;  %v9126_v32 = vld [vmem:[#allocation5 + $0x584] sm:$0xf]  ;;  %v6645_v13 = vor.u32 %v9110_v1, %v6642_v2 }
  0xa0   :  { %v8401_v42 = vor.u32 %v9554_v29, %v8400_v28  ;;  %v8208_v44 = vld [vmem:[#allocation5 + $0x1140] sm:$0xf]  ;;  %v8966_v28 = vld [vmem:[#allocation5 + $0x84] sm:$0xf] }
  0xa1   :  { %v9506_v45 = vld [vmem:[#allocation5 + $0x115c] sm:$0xf0]  ;;  %3920 = vmatpush.bf16.msra.mxu0 %v8241_v40  ;;  %3946 = vmatpush.bf16.msra.mxu2 %v6197_v43  ;;  %v6066_v29 = vld [vmem:[#allocation5 + $0xa0] sm:$0xf0]  ;;  %v6325_v43 = vor.u32 %v9030_v30, %v6322_v31 }
  0xa2   :  { %v8368_v46 = vld [vmem:[#allocation5 + $0x1280] sm:$0xf]  ;;  %v8209_v54 = vor.u32 %v9506_v45, %v8208_v44  ;;  %3936 = vmatpush.bf16.msra.mxu1 %v8401_v42  ;;  %v6069_v37 = vor.u32 %v8966_v28, %v6066_v29  ;;  %v6709_v44 = vor.u32 %v9126_v32, %v6706_v33  ;;  %v8958_v45 = vld [vmem:[#allocation5 + $0x44] sm:$0xf] }
  0xa3   :  { %v9546_v48 = vld [vmem:[#allocation5 + $0x129c] sm:$0xf0]  ;;  %3959 = vmatpush.bf16.msra.mxu3 %v6453_v47  ;;  %v9022_v47 = vld [vmem:[#allocation5 + $0x244] sm:$0xf] }
  0xa4   :  { %v8369_v55 = vor.u32 %v9546_v48, %v8368_v46  ;;  %v8176_v57 = vld [vmem:[#allocation5 + $0x1100] sm:$0xf]  ;;  %v6034_v46 = vld [vmem:[#allocation5 + $0x60] sm:$0xf0] }
  0xa5   :  { %v9498_v58 = vld [vmem:[#allocation5 + $0x111c] sm:$0xf0]  ;;  %3921 = vmatpush.bf16.msra.mxu0 %v8209_v54  ;;  %3947 = vmatpush.bf16.msra.mxu2 %v6165_v56  ;;  %v6290_v48 = vld [vmem:[#allocation5 + $0x260] sm:$0xf0] }
  0xa6   :  { %v8336_v59 = vld [vmem:[#allocation5 + $0x1240] sm:$0xf]  ;;  %v8177_v3 = vor.u32 %v9498_v58, %v8176_v57  ;;  %3937 = vmatpush.bf16.msra.mxu1 %v8369_v55  ;;  %v6037_v55 = vor.u32 %v8958_v45, %v6034_v46  ;;  %v8950_v56 = vld [vmem:[#allocation5 + $0x4] sm:$0xf] }
  0xa7   :  { %v9538_v61 = vld [vmem:[#allocation5 + $0x125c] sm:$0xf0]  ;;  %3960 = vmatpush.bf16.msra.mxu3 %v6421_v60  ;;  %v6002_v57 = vld [vmem:[#allocation5 + $0x20] sm:$0xf0]  ;;  %v6677_v60 = vor.u32 %v9118_v49, %v6674_v51 }
  0xa8   :  { %v8144_v4 = vld [vmem:[#allocation5 + $0x10c0] sm:$0xf]  ;;  %v8337_v5 = vor.u32 %v9538_v61, %v8336_v59  ;;  %v9014_v58 = vld [vmem:[#allocation5 + $0x204] sm:$0xf]  ;;  %v6293_v59 = vor.u32 %v9022_v47, %v6290_v48 }
  0xa9   :  { %v9490_v7 = vld [vmem:[#allocation5 + $0x10dc] sm:$0xf0]  ;;  %3922 = vmatpush.bf16.msra.mxu0 %v8177_v3  ;;  %3948 = vmatpush.bf16.msra.mxu2 %v6133_v6  ;;  %v6258_v61 = vld [vmem:[#allocation5 + $0x220] sm:$0xf0] }
  0xaa   :  { %v8304_v8 = vld [vmem:[#allocation5 + $0x1200] sm:$0xf]  ;;  %v8145_v20 = vor.u32 %v9490_v7, %v8144_v4  ;;  %3938 = vmatpush.bf16.msra.mxu1 %v8337_v5  ;;  %v9262_v3 = vld [vmem:[#allocation5 + $0x9c4] sm:$0xf]  ;;  %v6261_v12 = vor.u32 %v9014_v58, %v6258_v61 }
  0xab   :  { %v9530_v10 = vld [vmem:[#allocation5 + $0x121c] sm:$0xf0]  ;;  %3961 = vmatpush.bf16.msra.mxu3 %v6389_v11  ;;  %v7250_v5 = vld [vmem:[#allocation5 + $0x9e0] sm:$0xf0]  ;;  %v102_v11 = vld [vmem:[#allocation2 + $0x40] sm:$0xff] }
  0xac   :  { %v8305_v21 = vor.u32 %v9530_v10, %v8304_v8  ;;  %v8112_v23 = vld [vmem:[#allocation5 + $0x1080] sm:$0xf]  ;;  %v9326_v6 = vld [vmem:[#allocation5 + $0xbc4] sm:$0xf]  ;;  %v6005_v8 = vor.u32 %v8950_v56, %v6002_v57  ;;  %v6997_v10 = vor.u32 %v9198_v62, %v6994_v0  ;;  %v7253_v18 = vor.u32 %v9262_v3, %v7250_v5 }
  0xad   :  { %v9482_v24 = vld [vmem:[#allocation5 + $0x109c] sm:$0xf0]  ;;  %3923 = vmatpush.bf16.msra.mxu0 %v8145_v20  ;;  %3949 = vmatpush.bf16.msra.mxu2 %v6101_v22  ;;  %v7506_v7 = vld [vmem:[#allocation5 + $0xbe0] sm:$0xf0] }
  0xae   :  { %v8113_v34 = vor.u32 %v9482_v24, %v8112_v23  ;;  %3939 = vmatpush.bf16.msra.mxu1 %v8305_v21  ;;  %v8080_v40 = vld [vmem:[#allocation5 + $0x1040] sm:$0xf]  ;;  %v9190_v14 = vld [vmem:[#allocation5 + $0x784] sm:$0xf]  ;;  %v7509_v19 = vor.u32 %v9326_v6, %v7506_v7  ;;  %v9960_v23 = vpack.c.bf16 %v102_v11, %v102_v11 }
  0xaf   :  { %v9474_v42 = vld [vmem:[#allocation5 + $0x105c] sm:$0xf0]  ;;  %3962 = vmatpush.bf16.msra.mxu3 %v6357_v26  ;;  %v6962_v15 = vld [vmem:[#allocation5 + $0x7a0] sm:$0xf0] }
  0xb0   :  { %v8081_v52 = vor.u32 %v9474_v42, %v8080_v40  ;;  %v8048_v53 = vld [vmem:[#allocation5 + $0x1000] sm:$0xf]  ;;  %v9102_v20 = vld [vmem:[#allocation5 + $0x4c4] sm:$0xf] }
  0xb1   :  { %3924 = vmatpush.bf16.msra.mxu0 %v8113_v34  ;;  %v9466_v54 = vld [vmem:[#allocation5 + $0x101c] sm:$0xf0]  ;;  %8430 = vmatmul.msk.bf16.vlgmr.msra.gmra.mxu1 %vm3786_vm1, %v9956_v36  ;;  %v6610_v21 = vld [vmem:[#allocation5 + $0x4e0] sm:$0xf0] }
  0xb2   :  { %3971 = vmatpush.bf16.msrb.mxu1 %v6741_v27  ;;  %3950 = vmatpush.bf16.msra.mxu2 %v6069_v37  ;;  %v8049_v4 = vor.u32 %v9466_v54, %v8048_v53  ;;  %v9254_v22 = vld [vmem:[#allocation5 + $0x984] sm:$0xf]  ;;  %v6965_v27 = vor.u32 %v9190_v14, %v6962_v15  ;;  %v6613_v28 = vor.u32 %v9102_v20, %v6610_v21 }
  0xb3   :  { %3963 = vmatpush.bf16.msra.mxu3 %v6325_v43  ;;  %v7218_v24 = vld [vmem:[#allocation5 + $0x9a0] sm:$0xf0] }
  0xb4   :  { %v7474_v26 = vld [vmem:[#allocation5 + $0xba0] sm:$0xf0]  ;;  %v7221_v31 = vor.u32 %v9254_v22, %v7218_v24 }
  0xb5   :  { %3925 = vmatpush.bf16.msra.mxu0 %v8081_v52  ;;  %v9182_v29 = vld [vmem:[#allocation5 + $0x744] sm:$0xf]  ;;  %v7477_v32 = vor.u32 %v9318_v25, %v7474_v26 }
  0xb6   :  { %3972 = vmatpush.bf16.msrb.mxu1 %v6709_v44  ;;  %3951 = vmatpush.bf16.msra.mxu2 %v6037_v55  ;;  %v6930_v30 = vld [vmem:[#allocation5 + $0x760] sm:$0xf0] }
  0xb7   :  { %3964 = vmatpush.bf16.msra.mxu3 %v6293_v59  ;;  %v9094_v33 = vld [vmem:[#allocation5 + $0x484] sm:$0xf]  ;;  %v6933_v44 = vor.u32 %v9182_v29, %v6930_v30 }
  0xb8   :  { %v6578_v34 = vld [vmem:[#allocation5 + $0x4a0] sm:$0xf0] }
  0xb9   :  { %3926 = vmatpush.bf16.msra.mxu0 %v8049_v4  ;;  %v9246_v37 = vld [vmem:[#allocation5 + $0x944] sm:$0xf]  ;;  %v6581_v45 = vor.u32 %v9094_v33, %v6578_v34 }
  0xba   :  { %3973 = vmatpush.bf16.msrb.mxu1 %v6677_v60  ;;  %3952 = vmatpush.bf16.msra.mxu2 %v6005_v8  ;;  %v7186_v40 = vld [vmem:[#allocation5 + $0x960] sm:$0xf0] }
  0xbb   :  { %3965 = vmatpush.bf16.msra.mxu3 %v6261_v12  ;;  %v9310_v42 = vld [vmem:[#allocation5 + $0xb44] sm:$0xf]  ;;  %v7189_v48 = vor.u32 %v9246_v37, %v7186_v40 }
  0xbc   :  { %3927 = vmatmul.bf16.vlgmr.msra.gmra.mxu0 %v9960_v23  ;;  %v7442_v43 = vld [vmem:[#allocation5 + $0xb60] sm:$0xf0] }
  0xbd   :  { %3984 = vmatpush.bf16.msrb.mxu0 %v6997_v10  ;;  %3953 = vmatmul.bf16.vlgmr.msra.gmra.mxu2 %v9931_v9  ;;  %v9174_v46 = vld [vmem:[#allocation5 + $0x704] sm:$0xf]  ;;  %v7445_v49 = vor.u32 %v9310_v42, %v7442_v43 }
  0xbe   :  { %3974 = vmatpush.bf16.msrb.mxu1 %v6645_v13  ;;  %3997 = vmatpush.bf16.msrb.mxu2 %v7253_v18  ;;  %v6898_v47 = vld [vmem:[#allocation5 + $0x720] sm:$0xf0] }
  0xbf   :  { %4010 = vmatpush.bf16.msrb.mxu3 %v7509_v19  ;;  %v9086_v51 = vld [vmem:[#allocation5 + $0x444] sm:$0xf]  ;;  %v6901_v57 = vor.u32 %v9174_v46, %v6898_v47  ;;  %v2555_v46 = vunpack.c.h.b16 %v9940_v50 }
  0xc0   :  { %3966 = vmatmul.bf16.vlgmr.msra.gmra.mxu3 %v9935_v17  ;;  %v6546_v52 = vld [vmem:[#allocation5 + $0x460] sm:$0xf0] }
  0xc1   :  { %3985 = vmatpush.bf16.msrb.mxu0 %v6965_v27  ;;  %v9238_v53 = vld [vmem:[#allocation5 + $0x904] sm:$0xf]  ;;  %v6549_v58 = vor.u32 %v9086_v51, %v6546_v52 }
  0xc2   :  { %3975 = vmatpush.bf16.msrb.mxu1 %v6613_v28  ;;  %3998 = vmatpush.bf16.msrb.mxu2 %v7221_v31  ;;  %v7154_v54 = vld [vmem:[#allocation5 + $0x920] sm:$0xf0] }
  0xc3   :  { %4011 = vmatpush.bf16.msrb.mxu3 %v7477_v32  ;;  %v9302_v55 = vld [vmem:[#allocation5 + $0xb04] sm:$0xf]  ;;  %v7157_v61 = vor.u32 %v9238_v53, %v7154_v54 }
  0xc4   :  { %v7410_v56 = vld [vmem:[#allocation5 + $0xb20] sm:$0xf0] }
  0xc5   :  { %3986 = vmatpush.bf16.msrb.mxu0 %v6933_v44  ;;  %v9166_v59 = vld [vmem:[#allocation5 + $0x6c4] sm:$0xf]  ;;  %v7413_v62 = vor.u32 %v9302_v55, %v7410_v56 }
  0xc6   :  { %3976 = vmatpush.bf16.msrb.mxu1 %v6581_v45  ;;  %v6866_v60 = vld [vmem:[#allocation5 + $0x6e0] sm:$0xf0]  ;;  %3999 = vmatpush.bf16.msrb.mxu2 %v7189_v48 }
  0xc7   :  { %4012 = vmatpush.bf16.msrb.mxu3 %v7445_v49  ;;  %v9078_v0 = vld [vmem:[#allocation5 + $0x404] sm:$0xf]  ;;  %v6869_v6 = vor.u32 %v9166_v59, %v6866_v60 }
  0xc8   :  { %v6514_v1 = vld [vmem:[#allocation5 + $0x420] sm:$0xf0] }
  0xc9   :  { %v9230_v2 = vld [vmem:[#allocation5 + $0x8c4] sm:$0xf]  ;;  %3987 = vmatpush.bf16.msrb.mxu0 %v6901_v57  ;;  %v6517_v10 = vor.u32 %v9078_v0, %v6514_v1 }
  0xca   :  { %v7122_v3 = vld [vmem:[#allocation5 + $0x8e0] sm:$0xf0]  ;;  %3977 = vmatpush.bf16.msrb.mxu1 %v6549_v58  ;;  %4000 = vmatpush.bf16.msrb.mxu2 %v7157_v61 }
  0xcb   :  { %v9294_v4 = vld [vmem:[#allocation5 + $0xac4] sm:$0xf]  ;;  %4013 = vmatpush.bf16.msrb.mxu3 %v7413_v62  ;;  %v7125_v13 = vor.u32 %v9230_v2, %v7122_v3  ;;  %v3171_v62 = vpack.c.b16 %v2555_v46, %v2555_v46 }
  0xcc   :  { %v7378_v5 = vld [vmem:[#allocation5 + $0xae0] sm:$0xf0] }
  0xcd   :  { %v9390_v7 = vld [vmem:[#allocation5 + $0xdc4] sm:$0xf]  ;;  %v7381_v14 = vor.u32 %v9294_v4, %v7378_v5  ;;  %3988 = vmatpush.bf16.msrb.mxu0 %v6869_v6 }
  0xce   :  { %v7762_v8 = vld [vmem:[#allocation5 + $0xde0] sm:$0xf0]  ;;  %3978 = vmatpush.bf16.msrb.mxu1 %v6517_v10  ;;  %4001 = vmatpush.bf16.msrb.mxu2 %v7125_v13  ;;  %v3795_v10 = vsel %vm3790_vm0, %v3171_v62, 0  ;;  %v9075_v62 = vld [vmem:[#allocation5 + $0x3e4] sm:$0xf0] }
  0xcf   :  { %v9158_v11 = vld [vmem:[#allocation5 + $0x684] sm:$0xf]  ;;  %v7765_v18 = vor.u32 %v9390_v7, %v7762_v8  ;;  %4014 = vmatpush.bf16.msrb.mxu3 %v7381_v14 }
  0xd0   :  { %v6834_v12 = vld [vmem:[#allocation5 + $0x6a0] sm:$0xf0] }
  0xd1   :  { %v9222_v15 = vld [vmem:[#allocation5 + $0x884] sm:$0xf]  ;;  %v6837_v22 = vor.u32 %v9158_v11, %v6834_v12  ;;  %3979 = vmatmul.bf16.vlgmr.msrb.gmra.mxu1 %v9928_v63 }
  0xd2   :  { %v7090_v19 = vld [vmem:[#allocation5 + $0x8a0] sm:$0xf0]  ;;  %4023 = vmatpush.bf16.msra.mxu1 %v7765_v18 }
  0xd3   :  { %v9286_v20 = vld [vmem:[#allocation5 + $0xa84] sm:$0xf]  ;;  %v7093_v28 = vor.u32 %v9222_v15, %v7090_v19  ;;  %3989 = vmatpush.bf16.msrb.mxu0 %v6837_v22 }
  0xd4   :  { %v7346_v21 = vld [vmem:[#allocation5 + $0xaa0] sm:$0xf0] }
  0xd5   :  { %v9382_v24 = vld [vmem:[#allocation5 + $0xd84] sm:$0xf]  ;;  %v7349_v29 = vor.u32 %v9286_v20, %v7346_v21  ;;  %4002 = vmatpush.bf16.msrb.mxu2 %v7093_v28 }
  0xd6   :  { %v7730_v25 = vld [vmem:[#allocation5 + $0xda0] sm:$0xf0] }
  0xd7   :  { %v9150_v26 = vld [vmem:[#allocation5 + $0x644] sm:$0xf]  ;;  %v7733_v31 = vor.u32 %v9382_v24, %v7730_v25  ;;  %4015 = vmatpush.bf16.msrb.mxu3 %v7349_v29 }
  0xd8   :  { %v6802_v27 = vld [vmem:[#allocation5 + $0x660] sm:$0xf0] }
  0xd9   :  { %v9214_v30 = vld [vmem:[#allocation5 + $0x844] sm:$0xf]  ;;  %v6805_v37 = vor.u32 %v9150_v26, %v6802_v27  ;;  %4024 = vmatpush.bf16.msra.mxu1 %v7733_v31 }
  0xda   :  { %v7058_v32 = vld [vmem:[#allocation5 + $0x860] sm:$0xf0] }
  0xdb   :  { %v9278_v33 = vld [vmem:[#allocation5 + $0xa44] sm:$0xf]  ;;  %v7061_v47 = vor.u32 %v9214_v30, %v7058_v32  ;;  %3990 = vmatpush.bf16.msrb.mxu0 %v6805_v37 }
  0xdc   :  { %v7314_v34 = vld [vmem:[#allocation5 + $0xa60] sm:$0xf0] }
  0xdd   :  { %v9374_v40 = vld [vmem:[#allocation5 + $0xd44] sm:$0xf]  ;;  %v7317_v48 = vor.u32 %v9278_v33, %v7314_v34  ;;  %4003 = vmatpush.bf16.msrb.mxu2 %v7061_v47 }
  0xde   :  { %v7698_v42 = vld [vmem:[#allocation5 + $0xd60] sm:$0xf0] }
  0xdf   :  { %v9142_v43 = vld [vmem:[#allocation5 + $0x604] sm:$0xf]  ;;  %v7701_v53 = vor.u32 %v9374_v40, %v7698_v42  ;;  %4016 = vmatpush.bf16.msrb.mxu3 %v7317_v48 }
  0xe0   :  { %v6770_v44 = vld [vmem:[#allocation5 + $0x620] sm:$0xf0] }
  0xe1   :  { %v9206_v45 = vld [vmem:[#allocation5 + $0x804] sm:$0xf]  ;;  %v6773_v57 = vor.u32 %v9142_v43, %v6770_v44  ;;  %4025 = vmatpush.bf16.msra.mxu1 %v7701_v53 }
  0xe2   :  { %v7026_v49 = vld [vmem:[#allocation5 + $0x820] sm:$0xf0] }
  0xe3   :  { %v9454_v51 = vld [vmem:[#allocation5 + $0xfc4] sm:$0xf]  ;;  %v7029_v50 = vor.u32 %v9206_v45, %v7026_v49  ;;  %3991 = vmatpush.bf16.msrb.mxu0 %v6773_v57 }
  0xe4   :  { %v8018_v52 = vld [vmem:[#allocation5 + $0xfe0] sm:$0xf0] }
  0xe5   :  { %v9270_v54 = vld [vmem:[#allocation5 + $0xa04] sm:$0xf]  ;;  %v8021_v61 = vor.u32 %v9454_v51, %v8018_v52  ;;  %4004 = vmatpush.bf16.msrb.mxu2 %v7029_v50 }
  0xe6   :  { %v7282_v55 = vld [vmem:[#allocation5 + $0xa20] sm:$0xf0]  ;;  %3992 = vmatmul.bf16.vlgmr.msrb.gmra.mxu0 %v9933_v16 }
  0xe7   :  { %v9366_v56 = vld [vmem:[#allocation5 + $0xd04] sm:$0xf]  ;;  %v7285_v0 = vor.u32 %v9270_v54, %v7282_v55  ;;  %4036 = vmatpush.bf16.msra.mxu0 %v8021_v61  ;;  %v6488_v61 = vld [vmem:[#allocation5 + $0x3c8] sm:$0xf] }
  0xe8   :  { %v7666_v58 = vld [vmem:[#allocation5 + $0xd20] sm:$0xf0]  ;;  %4005 = vmatmul.bf16.vlgmr.msrb.gmra.mxu2 %v9946_v38 }
  0xe9   :  { %v9518_v59 = vld [vmem:[#allocation5 + $0x11c4] sm:$0xf]  ;;  %v7669_v3 = vor.u32 %v9366_v56, %v7666_v58  ;;  %4017 = vmatpush.bf16.msrb.mxu3 %v7285_v0 }
  0xea   :  { %v8274_v60 = vld [vmem:[#allocation5 + $0x11e0] sm:$0xf0] }
  0xeb   :  { %v9446_v1 = vld [vmem:[#allocation5 + $0xf84] sm:$0xf]  ;;  %v8277_v4 = vor.u32 %v9518_v59, %v8274_v60  ;;  %4026 = vmatpush.bf16.msra.mxu1 %v7669_v3  ;;  %v6232_v59 = vld [vmem:[#allocation5 + $0x1c8] sm:$0xf] }
  0xec   :  { %v7986_v2 = vld [vmem:[#allocation5 + $0xfa0] sm:$0xf0]  ;;  %4018 = vmatmul.bf16.vlgmr.msrb.gmra.mxu3 %v9950_v41  ;;  %v9011_v60 = vld [vmem:[#allocation5 + $0x1e4] sm:$0xf0] }
  0xed   :  { %v9358_v5 = vld [vmem:[#allocation5 + $0xcc4] sm:$0xf]  ;;  %v7989_v11 = vor.u32 %v9446_v1, %v7986_v2  ;;  %4049 = vmatpush.bf16.msra.mxu2 %v8277_v4  ;;  %4065 = vmatpush.bf16.msra.mxu3 %v3795_v10  ;;  %v6233_v4 = vor.u32 %v9011_v60, %v6232_v59  ;;  %v6200_v10 = vld [vmem:[#allocation5 + $0x188] sm:$0xf] }
  0xee   :  { %v7634_v6 = vld [vmem:[#allocation5 + $0xce0] sm:$0xf0]  ;;  %v8979_v59 = vld [vmem:[#allocation5 + $0xe4] sm:$0xf0] }
  0xef   :  { %v9510_v7 = vld [vmem:[#allocation5 + $0x1184] sm:$0xf]  ;;  %v7637_v18 = vor.u32 %v9358_v5, %v7634_v6  ;;  %4037 = vmatpush.bf16.msra.mxu0 %v7989_v11  ;;  %v9003_v11 = vld [vmem:[#allocation5 + $0x1a4] sm:$0xf0] }
  0xf0   :  { %v8242_v8 = vld [vmem:[#allocation5 + $0x11a0] sm:$0xf0]  ;;  %v6968_v60 = vld [vmem:[#allocation5 + $0x788] sm:$0xf] }
  0xf1   :  { %v9550_v12 = vld [vmem:[#allocation5 + $0x12c4] sm:$0xf]  ;;  %v8245_v19 = vor.u32 %v9510_v7, %v8242_v8  ;;  %4027 = vmatpush.bf16.msra.mxu1 %v7637_v18  ;;  %v6489_v7 = vor.u32 %v9075_v62, %v6488_v61  ;;  %v9195_v61 = vld [vmem:[#allocation5 + $0x7a4] sm:$0xf0] }
  0xf2   :  { %v8402_v13 = vld [vmem:[#allocation5 + $0x12e0] sm:$0xf0]  ;;  %v6360_v62 = vld [vmem:[#allocation5 + $0x2c8] sm:$0xf] }
  0xf3   :  { %v9438_v14 = vld [vmem:[#allocation5 + $0xf44] sm:$0xf]  ;;  %v8405_v21 = vor.u32 %v9550_v12, %v8402_v13  ;;  %4050 = vmatpush.bf16.msra.mxu2 %v8245_v19  ;;  %v6456_v12 = vld [vmem:[#allocation5 + $0x388] sm:$0xf]  ;;  %v6201_v19 = vor.u32 %v9003_v11, %v6200_v10 }
  0xf4   :  { %v7954_v15 = vld [vmem:[#allocation5 + $0xf60] sm:$0xf0]  ;;  %v9067_v13 = vld [vmem:[#allocation5 + $0x3a4] sm:$0xf0] }
  0xf5   :  { %v9350_v20 = vld [vmem:[#allocation5 + $0xc84] sm:$0xf]  ;;  %v7957_v26 = vor.u32 %v9438_v14, %v7954_v15  ;;  %4066 = vmatpush.bf16.msra.mxu3 %v8405_v21  ;;  %v9187_v10 = vld [vmem:[#allocation5 + $0x764] sm:$0xf0] }
  0xf6   :  { %v7602_v22 = vld [vmem:[#allocation5 + $0xca0] sm:$0xf0]  ;;  %v6328_v11 = vld [vmem:[#allocation5 + $0x288] sm:$0xf] }
  0xf7   :  { %v9502_v24 = vld [vmem:[#allocation5 + $0x1144] sm:$0xf]  ;;  %v7605_v31 = vor.u32 %v9350_v20, %v7602_v22  ;;  %4038 = vmatpush.bf16.msra.mxu0 %v7957_v26  ;;  %v6457_v22 = vor.u32 %v9067_v13, %v6456_v12  ;;  %v8995_v26 = vld [vmem:[#allocation5 + $0x164] sm:$0xf0] }
  0xf8   :  { %v8210_v25 = vld [vmem:[#allocation5 + $0x1160] sm:$0xf0]  ;;  %v9035_v12 = vld [vmem:[#allocation5 + $0x2a4] sm:$0xf0] }
  0xf9   :  { %v9542_v27 = vld [vmem:[#allocation5 + $0x1284] sm:$0xf]  ;;  %v8213_v32 = vor.u32 %v9502_v24, %v8210_v25  ;;  %4028 = vmatpush.bf16.msra.mxu1 %v7605_v31  ;;  %v6168_v25 = vld [vmem:[#allocation5 + $0x148] sm:$0xf] }
  0xfa   :  { %v8370_v28 = vld [vmem:[#allocation5 + $0x12a0] sm:$0xf0] }
  0xfb   :  { %v9430_v29 = vld [vmem:[#allocation5 + $0xf04] sm:$0xf]  ;;  %v8373_v34 = vor.u32 %v9542_v27, %v8370_v28  ;;  %4051 = vmatpush.bf16.msra.mxu2 %v8213_v32  ;;  %v6424_v27 = vld [vmem:[#allocation5 + $0x348] sm:$0xf] }
  0xfc   :  { %v7922_v30 = vld [vmem:[#allocation5 + $0xf20] sm:$0xf0]  ;;  %v9059_v28 = vld [vmem:[#allocation5 + $0x364] sm:$0xf0] }
  0xfd   :  { %v9342_v33 = vld [vmem:[#allocation5 + $0xc44] sm:$0xf]  ;;  %v7925_v43 = vor.u32 %v9430_v29, %v7922_v30  ;;  %4067 = vmatpush.bf16.msra.mxu3 %v8373_v34  ;;  %v6744_v32 = vld [vmem:[#allocation5 + $0x5c8] sm:$0xf]  ;;  %v6169_v34 = vor.u32 %v8995_v26, %v6168_v25 }
  0xfe   :  { %v7570_v37 = vld [vmem:[#allocation5 + $0xc60] sm:$0xf0]  ;;  %v9179_v25 = vld [vmem:[#allocation5 + $0x724] sm:$0xf0] }
  0xff   :  { %v9494_v40 = vld [vmem:[#allocation5 + $0x1104] sm:$0xf]  ;;  %v7573_v48 = vor.u32 %v9342_v33, %v7570_v37  ;;  %4039 = vmatpush.bf16.msra.mxu0 %v7925_v43  ;;  %v9139_v33 = vld [vmem:[#allocation5 + $0x5e4] sm:$0xf0]  ;;  %v6425_v43 = vor.u32 %v9059_v28, %v6424_v27 }
 0x100   :  { %v8178_v42 = vld [vmem:[#allocation5 + $0x1120] sm:$0xf0]  ;;  %v6296_v26 = vld [vmem:[#allocation5 + $0x248] sm:$0xf] }
 0x101   :  { %v9534_v44 = vld [vmem:[#allocation5 + $0x1244] sm:$0xf]  ;;  %v8181_v49 = vor.u32 %v9494_v40, %v8178_v42  ;;  %4029 = vmatpush.bf16.msra.mxu1 %v7573_v48  ;;  %v6136_v42 = vld [vmem:[#allocation5 + $0x108] sm:$0xf] }
 0x102   :  { %v8338_v45 = vld [vmem:[#allocation5 + $0x1260] sm:$0xf0]  ;;  %v6392_v48 = vld [vmem:[#allocation5 + $0x308] sm:$0xf] }
 0x103   :  { %v9422_v46 = vld [vmem:[#allocation5 + $0xec4] sm:$0xf]  ;;  %v8341_v54 = vor.u32 %v9534_v44, %v8338_v45  ;;  %4052 = vmatpush.bf16.msra.mxu2 %v8181_v49  ;;  %v8987_v45 = vld [vmem:[#allocation5 + $0x124] sm:$0xf0] }
 0x104   :  { %v7890_v47 = vld [vmem:[#allocation5 + $0xee0] sm:$0xf0]  ;;  %v9051_v49 = vld [vmem:[#allocation5 + $0x324] sm:$0xf0] }
 0x105   :  { %v9334_v51 = vld [vmem:[#allocation5 + $0xc04] sm:$0xf]  ;;  %v7893_v58 = vor.u32 %v9422_v46, %v7890_v47  ;;  %4068 = vmatpush.bf16.msra.mxu3 %v8341_v54  ;;  %v7000_v46 = vld [vmem:[#allocation5 + $0x7c8] sm:$0xf] }
 0x106   :  { %v7538_v52 = vld [vmem:[#allocation5 + $0xc20] sm:$0xf0]  ;;  %v9203_v47 = vld [vmem:[#allocation5 + $0x7e4] sm:$0xf0] }
 0x107   :  { %v9486_v53 = vld [vmem:[#allocation5 + $0x10c4] sm:$0xf]  ;;  %v7541_v1 = vor.u32 %v9334_v51, %v7538_v52  ;;  %4040 = vmatpush.bf16.msra.mxu0 %v7893_v58  ;;  %v6745_v51 = vor.u32 %v9139_v33, %v6744_v32  ;;  %v9131_v54 = vld [vmem:[#allocation5 + $0x5a4] sm:$0xf0]  ;;  %v6393_v58 = vor.u32 %v9051_v49, %v6392_v48 }
 0x108   :  { %v8146_v55 = vld [vmem:[#allocation5 + $0x10e0] sm:$0xf0]  ;;  %v9027_v27 = vld [vmem:[#allocation5 + $0x264] sm:$0xf0] }
 0x109   :  { %v9526_v56 = vld [vmem:[#allocation5 + $0x1204] sm:$0xf]  ;;  %v8149_v2 = vor.u32 %v9486_v53, %v8146_v55  ;;  %4030 = vmatpush.bf16.msra.mxu1 %v7541_v1  ;;  %v6712_v53 = vld [vmem:[#allocation5 + $0x588] sm:$0xf]  ;;  %v6137_v55 = vor.u32 %v8987_v45, %v6136_v42 }
 0x10a   :  { %v8306_v57 = vld [vmem:[#allocation5 + $0x1220] sm:$0xf0]  ;;  %v6680_v1 = vld [vmem:[#allocation5 + $0x548] sm:$0xf] }
 0x10b   :  { %v9414_v50 = vld [vmem:[#allocation5 + $0xe84] sm:$0xf]  ;;  %v8309_v3 = vor.u32 %v9526_v56, %v8306_v57  ;;  %4053 = vmatpush.bf16.msra.mxu2 %v8149_v2  ;;  %v7001_v56 = vor.u32 %v9203_v47, %v7000_v46  ;;  %v6104_v57 = vld [vmem:[#allocation5 + $0xc8] sm:$0xf] }
 0x10c   :  { %v7858_v0 = vld [vmem:[#allocation5 + $0xea0] sm:$0xf0]  ;;  %4031 = vmatmul.bf16.vlgmr.msra.gmra.mxu1 %v9944_v35  ;;  %v9123_v2 = vld [vmem:[#allocation5 + $0x564] sm:$0xf0] }
 0x10d   :  { %v9478_v5 = vld [vmem:[#allocation5 + $0x1084] sm:$0xf]  ;;  %v7861_v8 = vor.u32 %v9414_v50, %v7858_v0  ;;  %4069 = vmatpush.bf16.msra.mxu3 %v8309_v3  ;;  %4075 = vmatpush.bf16.msrb.mxu1 %v6233_v4  ;;  %v9043_v50 = vld [vmem:[#allocation5 + $0x2e4] sm:$0xf0]  ;;  %v6713_v0 = vor.u32 %v9131_v54, %v6712_v53  ;;  %v6105_v3 = vor.u32 %v8979_v59, %v6104_v57  ;;  %v3824_v59 = vpop.f32.mrf.mxu0 }
 0x10e   :  { %v8114_v6 = vld [vmem:[#allocation5 + $0x10a0] sm:$0xf0]  ;;  %v6969_v4 = vor.u32 %v9195_v61, %v6968_v60  ;;  %v6681_v13 = vor.u32 %v9123_v2, %v6680_v1  ;;  %v6008_v33 = vld [vmem:[#allocation5 + $0x8] sm:$0xf] }
 0x10f   :  { %v9406_v14 = vld [vmem:[#allocation5 + $0xe44] sm:$0xf]  ;;  %v8117_v18 = vor.u32 %v9478_v5, %v8114_v6  ;;  %4041 = vmatpush.bf16.msra.mxu0 %v7861_v8  ;;  %v6072_v5 = vld [vmem:[#allocation5 + $0x88] sm:$0xf]  ;;  %v6361_v6 = vor.u32 %v9043_v50, %v6360_v62 }
 0x110   :  { %v7826_v15 = vld [vmem:[#allocation5 + $0xe60] sm:$0xf0]  ;;  %8431 = vmatmul.msk.bf16.vlgmr.msra.gmra.mxu3 %vm3786_vm1, %v9956_v36  ;;  %v6936_v8 = vld [vmem:[#allocation5 + $0x748] sm:$0xf] }
 0x111   :  { %v9470_v20 = vld [vmem:[#allocation5 + $0x1044] sm:$0xf]  ;;  %4088 = vmatpush.bf16.msrb.mxu3 %v6489_v7  ;;  %v7829_v24 = vor.u32 %v9406_v14, %v7826_v15  ;;  %4054 = vmatpush.bf16.msra.mxu2 %v8117_v18  ;;  %v8971_v7 = vld [vmem:[#allocation5 + $0xa4] sm:$0xf0] }
 0x112   :  { %v8082_v21 = vld [vmem:[#allocation5 + $0x1060] sm:$0xf0]  ;;  %4076 = vmatpush.bf16.msrb.mxu1 %v6201_v19  ;;  %v6648_v14 = vld [vmem:[#allocation5 + $0x508] sm:$0xf]  ;;  %v6073_v18 = vor.u32 %v8971_v7, %v6072_v5  ;;  %v6937_v19 = vor.u32 %v9187_v10, %v6936_v8  ;;  %v3837_v5 = vpop.f32.mrf.mxu1 }
 0x113   :  { %v9398_v29 = vld [vmem:[#allocation5 + $0xe04] sm:$0xf]  ;;  %v8085_v31 = vor.u32 %v9470_v20, %v8082_v21  ;;  %4042 = vmatpush.bf16.msra.mxu0 %v7829_v24  ;;  %v9115_v15 = vld [vmem:[#allocation5 + $0x524] sm:$0xf0]  ;;  %v6329_v21 = vor.u32 %v9035_v12, %v6328_v11  ;;  %v3838_v11 = vadd.f32 %v3837_v5, %v3824_v59 }
 0x114   :  { %v7794_v30 = vld [vmem:[#allocation5 + $0xe20] sm:$0xf0]  ;;  %v6040_v20 = vld [vmem:[#allocation5 + $0x48] sm:$0xf]  ;;  %v6649_v28 = vor.u32 %v9115_v15, %v6648_v14 }
 0x115   :  { %v9462_v37 = vld [vmem:[#allocation5 + $0x1004] sm:$0xf]  ;;  %4089 = vmatpush.bf16.msrb.mxu3 %v6457_v22  ;;  %v7797_v44 = vor.u32 %v9398_v29, %v7794_v30  ;;  %4055 = vmatpush.bf16.msra.mxu2 %v8085_v31  ;;  %v8963_v22 = vld [vmem:[#allocation5 + $0x64] sm:$0xf0] }
 0x116   :  { %v8050_v40 = vld [vmem:[#allocation5 + $0x1020] sm:$0xf0]  ;;  %4077 = vmatpush.bf16.msrb.mxu1 %v6169_v34  ;;  %v6904_v24 = vld [vmem:[#allocation5 + $0x708] sm:$0xf]  ;;  %v6041_v31 = vor.u32 %v8963_v22, %v6040_v20 }
 0x117   :  { %v8053_v52 = vor.u32 %v9462_v37, %v8050_v40  ;;  %4043 = vmatpush.bf16.msra.mxu0 %v7797_v44  ;;  %v6616_v29 = vld [vmem:[#allocation5 + $0x4c8] sm:$0xf]  ;;  %v6905_v32 = vor.u32 %v9179_v25, %v6904_v24  ;;  %v6297_v40 = vor.u32 %v9027_v27, %v6296_v26  ;;  %v3863_v27 = vpop.f32.mrf.mxu3 }
 0x118   :  { %v9107_v30 = vld [vmem:[#allocation5 + $0x4e4] sm:$0xf0] }
 0x119   :  { %4090 = vmatpush.bf16.msrb.mxu3 %v6425_v43  ;;  %4056 = vmatpush.bf16.msra.mxu2 %v8053_v52  ;;  %v8955_v34 = vld [vmem:[#allocation5 + $0x24] sm:$0xf0]  ;;  %v6617_v45 = vor.u32 %v9107_v30, %v6616_v29 }
 0x11a   :  { %4078 = vmatpush.bf16.msrb.mxu1 %v6137_v55  ;;  %4044 = vmatmul.bf16.vlgmr.msra.gmra.mxu0 %v9948_v39  ;;  %v6264_v37 = vld [vmem:[#allocation5 + $0x208] sm:$0xf]  ;;  %v6009_v53 = vor.u32 %v8955_v34, %v6008_v33  ;;  %v3826_v33 = vpop.f32.mrf.mxu0 }
 0x11b   :  { %4101 = vmatpush.bf16.msrb.mxu0 %v6745_v51  ;;  %v9019_v42 = vld [vmem:[#allocation5 + $0x224] sm:$0xf0] }
 0x11c   :  { %4057 = vmatmul.bf16.vlgmr.msra.gmra.mxu2 %v9960_v23  ;;  %v6872_v43 = vld [vmem:[#allocation5 + $0x6c8] sm:$0xf]  ;;  %v6265_v55 = vor.u32 %v9019_v42, %v6264_v37 }
 0x11d   :  { %4114 = vmatpush.bf16.msrb.mxu2 %v7001_v56  ;;  %4091 = vmatpush.bf16.msrb.mxu3 %v6393_v58  ;;  %v9171_v44 = vld [vmem:[#allocation5 + $0x6e4] sm:$0xf0] }
 0x11e   :  { %4079 = vmatpush.bf16.msrb.mxu1 %v6105_v3  ;;  %v7256_v46 = vld [vmem:[#allocation5 + $0x9c8] sm:$0xf]  ;;  %v6873_v54 = vor.u32 %v9171_v44, %v6872_v43 }
 0x11f   :  { %4102 = vmatpush.bf16.msrb.mxu0 %v6713_v0  ;;  %v9267_v47 = vld [vmem:[#allocation5 + $0x9e4] sm:$0xf0] }
 0x120   :  { %v7512_v48 = vld [vmem:[#allocation5 + $0xbc8] sm:$0xf]  ;;  %v7257_v56 = vor.u32 %v9267_v47, %v7256_v46 }
 0x121   :  { %4115 = vmatpush.bf16.msrb.mxu2 %v6969_v4  ;;  %4092 = vmatpush.bf16.msrb.mxu3 %v6361_v6  ;;  %v9331_v49 = vld [vmem:[#allocation5 + $0xbe4] sm:$0xf0]  ;;  %v3850_v6 = vpop.f32.mrf.mxu2 }
 0x122   :  { %4080 = vmatpush.bf16.msrb.mxu1 %v6073_v18  ;;  %v6584_v51 = vld [vmem:[#allocation5 + $0x488] sm:$0xf]  ;;  %v7513_v60 = vor.u32 %v9331_v49, %v7512_v48  ;;  %v3851_v22 = vadd.f32 %v3850_v6, %v3838_v11 }
 0x123   :  { %4103 = vmatpush.bf16.msrb.mxu0 %v6681_v13  ;;  %v9099_v52 = vld [vmem:[#allocation5 + $0x4a4] sm:$0xf0] }
 0x124   :  { %v6840_v57 = vld [vmem:[#allocation5 + $0x688] sm:$0xf]  ;;  %v6585_v61 = vor.u32 %v9099_v52, %v6584_v51  ;;  %v3839_v51 = vpop.f32.mrf.mxu1 }
 0x125   :  { %4116 = vmatpush.bf16.msrb.mxu2 %v6937_v19  ;;  %4093 = vmatpush.bf16.msrb.mxu3 %v6329_v21  ;;  %v9163_v58 = vld [vmem:[#allocation5 + $0x6a4] sm:$0xf0] }
 0x126   :  { %4081 = vmatpush.bf16.msrb.mxu1 %v6041_v31  ;;  %v7224_v62 = vld [vmem:[#allocation5 + $0x988] sm:$0xf]  ;;  %v6841_v4 = vor.u32 %v9163_v58, %v6840_v57 }
 0x127   :  { %4104 = vmatpush.bf16.msrb.mxu0 %v6649_v28  ;;  %v9259_v50 = vld [vmem:[#allocation5 + $0x9a4] sm:$0xf0] }
 0x128   :  { %v7480_v0 = vld [vmem:[#allocation5 + $0xb88] sm:$0xf]  ;;  %v7225_v7 = vor.u32 %v9259_v50, %v7224_v62 }
 0x129   :  { %4117 = vmatpush.bf16.msrb.mxu2 %v6905_v32  ;;  %4094 = vmatpush.bf16.msrb.mxu3 %v6297_v40  ;;  %v9323_v1 = vld [vmem:[#allocation5 + $0xba4] sm:$0xf0]  ;;  %v9978_v32 = vadd.f32 %v3863_v27, %v3851_v22  ;;  %v3852_v52 = vpop.f32.mrf.mxu2 }
 0x12a   :  { %v6552_v2 = vld [vmem:[#allocation5 + $0x448] sm:$0xf]  ;;  %4082 = vmatpush.bf16.msrb.mxu1 %v6009_v53  ;;  %v7481_v12 = vor.u32 %v9323_v1, %v7480_v0  ;;  %v3865_v1 = vpop.f32.mrf.mxu3 }
 0x12b   :  { %4105 = vmatpush.bf16.msrb.mxu0 %v6617_v45  ;;  %v9091_v3 = vld [vmem:[#allocation5 + $0x464] sm:$0xf0] }
 0x12c   :  { %v6808_v8 = vld [vmem:[#allocation5 + $0x648] sm:$0xf]  ;;  %v6553_v13 = vor.u32 %v9091_v3, %v6552_v2 }
 0x12d   :  { %4118 = vmatpush.bf16.msrb.mxu2 %v6873_v54  ;;  %4095 = vmatpush.bf16.msrb.mxu3 %v6265_v55  ;;  %v9155_v10 = vld [vmem:[#allocation5 + $0x664] sm:$0xf0] }
 0x12e   :  { %4127 = vmatpush.bf16.msra.mxu1 %v7257_v56  ;;  %v7192_v14 = vld [vmem:[#allocation5 + $0x948] sm:$0xf]  ;;  %v6809_v24 = vor.u32 %v9155_v10, %v6808_v8 }
 0x12f   :  { %4106 = vmatpush.bf16.msrb.mxu0 %v6585_v61  ;;  %v9251_v15 = vld [vmem:[#allocation5 + $0x964] sm:$0xf0]  ;;  %4083 = vmatmul.bf16.vlgmr.msrb.gmra.mxu1 %v9931_v9 }
 0x130   :  { %v7448_v18 = vld [vmem:[#allocation5 + $0xb48] sm:$0xf]  ;;  %4096 = vmatmul.bf16.vlgmr.msrb.gmra.mxu3 %v9935_v17  ;;  %v7193_v28 = vor.u32 %v9251_v15, %v7192_v14 }
 0x131   :  { %4140 = vmatpush.bf16.msra.mxu3 %v7513_v60  ;;  %v9315_v19 = vld [vmem:[#allocation5 + $0xb64] sm:$0xf0]  ;;  %4119 = vmatpush.bf16.msrb.mxu2 %v6841_v4 }
 0x132   :  { %v6520_v20 = vld [vmem:[#allocation5 + $0x408] sm:$0xf]  ;;  %4128 = vmatpush.bf16.msra.mxu1 %v7225_v7  ;;  %v7449_v34 = vor.u32 %v9315_v19, %v7448_v18 }
 0x133   :  { %v9083_v21 = vld [vmem:[#allocation5 + $0x424] sm:$0xf0]  ;;  %4107 = vmatpush.bf16.msrb.mxu0 %v6553_v13 }
 0x134   :  { %v7768_v25 = vld [vmem:[#allocation5 + $0xdc8] sm:$0xf]  ;;  %v6521_v37 = vor.u32 %v9083_v21, %v6520_v20 }
 0x135   :  { %v9395_v26 = vld [vmem:[#allocation5 + $0xde4] sm:$0xf0]  ;;  %4141 = vmatpush.bf16.msra.mxu3 %v7481_v12  ;;  %4120 = vmatpush.bf16.msrb.mxu2 %v6809_v24 }
 0x136   :  { %v6776_v29 = vld [vmem:[#allocation5 + $0x608] sm:$0xf]  ;;  %v7769_v46 = vor.u32 %v9395_v26, %v7768_v25  ;;  %4129 = vmatpush.bf16.msra.mxu1 %v7193_v28 }
 0x137   :  { %v9147_v30 = vld [vmem:[#allocation5 + $0x624] sm:$0xf0]  ;;  %4108 = vmatpush.bf16.msrb.mxu0 %v6521_v37 }
 0x138   :  { %v7160_v31 = vld [vmem:[#allocation5 + $0x908] sm:$0xf]  ;;  %v6777_v47 = vor.u32 %v9147_v30, %v6776_v29 }
 0x139   :  { %v9243_v40 = vld [vmem:[#allocation5 + $0x924] sm:$0xf0]  ;;  %4142 = vmatpush.bf16.msra.mxu3 %v7449_v34 }
 0x13a   :  { %v8024_v42 = vld [vmem:[#allocation5 + $0xfc8] sm:$0xf]  ;;  %v7161_v53 = vor.u32 %v9243_v40, %v7160_v31  ;;  %4121 = vmatpush.bf16.msrb.mxu2 %v6777_v47  ;;  %4109 = vmatmul.bf16.vlgmr.msrb.gmra.mxu0 %v9928_v63 }
 0x13b   :  { %v9459_v43 = vld [vmem:[#allocation5 + $0xfe4] sm:$0xf0]  ;;  %4153 = vmatpush.bf16.msra.mxu0 %v7769_v46 }
 0x13c   :  { %v7416_v44 = vld [vmem:[#allocation5 + $0xb08] sm:$0xf]  ;;  %v8025_v54 = vor.u32 %v9459_v43, %v8024_v42  ;;  %4130 = vmatpush.bf16.msra.mxu1 %v7161_v53 }
 0x13d   :  { %v9307_v45 = vld [vmem:[#allocation5 + $0xb24] sm:$0xf0]  ;;  %4122 = vmatmul.bf16.vlgmr.msrb.gmra.mxu2 %v9933_v16 }
 0x13e   :  { %v7736_v48 = vld [vmem:[#allocation5 + $0xd88] sm:$0xf]  ;;  %v7417_v56 = vor.u32 %v9307_v45, %v7416_v44  ;;  %4166 = vmatpush.bf16.msra.mxu2 %v8025_v54  ;;  %v3889_v54 = vpop.f32.mrf.mxu1 }
 0x13f   :  { %v9387_v49 = vld [vmem:[#allocation5 + $0xda4] sm:$0xf0] }
 0x140   :  { %v7128_v55 = vld [vmem:[#allocation5 + $0x8c8] sm:$0xf]  ;;  %v7737_v62 = vor.u32 %v9387_v49, %v7736_v48  ;;  %4143 = vmatpush.bf16.msra.mxu3 %v7417_v56  ;;  %v3876_v49 = vpop.f32.mrf.mxu0 }
 0x141   :  { %v9235_v57 = vld [vmem:[#allocation5 + $0x8e4] sm:$0xf0]  ;;  %v3877_v53 = vadd.f32 %v3876_v49, %v9978_v32 }
 0x142   :  { %v7992_v58 = vld [vmem:[#allocation5 + $0xf88] sm:$0xf]  ;;  %v7129_v2 = vor.u32 %v9235_v57, %v7128_v55  ;;  %4154 = vmatpush.bf16.msra.mxu0 %v7737_v62 }
 0x143   :  { %v9451_v59 = vld [vmem:[#allocation5 + $0xfa4] sm:$0xf0]  ;;  %v3890_v62 = vadd.f32 %v3889_v54, %v3877_v53  ;;  %v8999_v54 = vld [vmem:[#allocation5 + $0x18c] sm:$0xf] }
 0x144   :  { %v7384_v60 = vld [vmem:[#allocation5 + $0xac8] sm:$0xf]  ;;  %v7993_v3 = vor.u32 %v9451_v59, %v7992_v58  ;;  %4131 = vmatpush.bf16.msra.mxu1 %v7129_v2 }
 0x145   :  { %v9299_v61 = vld [vmem:[#allocation5 + $0xae4] sm:$0xf0] }
 0x146   :  { %v7704_v50 = vld [vmem:[#allocation5 + $0xd48] sm:$0xf]  ;;  %v7385_v5 = vor.u32 %v9299_v61, %v7384_v60  ;;  %4167 = vmatpush.bf16.msra.mxu2 %v7993_v3 }
 0x147   :  { %v9379_v0 = vld [vmem:[#allocation5 + $0xd64] sm:$0xf0] }
 0x148   :  { %v7096_v4 = vld [vmem:[#allocation5 + $0x888] sm:$0xf]  ;;  %v7705_v12 = vor.u32 %v9379_v0, %v7704_v50  ;;  %4144 = vmatpush.bf16.msra.mxu3 %v7385_v5 }
 0x149   :  { %v9227_v6 = vld [vmem:[#allocation5 + $0x8a4] sm:$0xf0] }
 0x14a   :  { %v7960_v7 = vld [vmem:[#allocation5 + $0xf48] sm:$0xf]  ;;  %v7097_v18 = vor.u32 %v9227_v6, %v7096_v4  ;;  %4155 = vmatpush.bf16.msra.mxu0 %v7705_v12  ;;  %v3902_v4 = vpop.f32.mrf.mxu2 }
 0x14b   :  { %v9443_v8 = vld [vmem:[#allocation5 + $0xf64] sm:$0xf0] }
 0x14c   :  { %v7352_v10 = vld [vmem:[#allocation5 + $0xa88] sm:$0xf]  ;;  %v7961_v19 = vor.u32 %v9443_v8, %v7960_v7  ;;  %4132 = vmatpush.bf16.msra.mxu1 %v7097_v18 }
 0x14d   :  { %v9291_v11 = vld [vmem:[#allocation5 + $0xaa4] sm:$0xf0] }
 0x14e   :  { %v9982_v13 = vld [vmem:[#allocation5 + $0x1308] sm:$0x33]  ;;  %v7353_v21 = vor.u32 %v9291_v11, %v7352_v10  ;;  %4168 = vmatpush.bf16.msra.mxu2 %v7961_v19  ;;  %v3903_v10 = vadd.f32 %v3902_v4, %v3890_v62  ;;  %v3915_v11 = vpop.f32.mrf.mxu3 }
 0x14f   :  { %v7672_v14 = vld [vmem:[#allocation5 + $0xd08] sm:$0xf]  ;;  %v2556_v26 = vunpack.c.l.b16 %v9982_v13  ;;  %v9063_v62 = vld [vmem:[#allocation5 + $0x38c] sm:$0xf] }
 0x150   :  { %v9371_v15 = vld [vmem:[#allocation5 + $0xd24] sm:$0xf0]  ;;  %4145 = vmatpush.bf16.msra.mxu3 %v7353_v21  ;;  %v9987_v19 = vadd.f32 %v3915_v11, %v3903_v10  ;;  %v6746_v4 = vld [vmem:[#allocation5 + $0x5e8] sm:$0xf0] }
 0x151   :  { %v7064_v20 = vld [vmem:[#allocation5 + $0x848] sm:$0xf]  ;;  %v7673_v29 = vor.u32 %v9371_v15, %v7672_v14  ;;  %v3172_v46 = vpack.c.b16 %v2556_v26, %v2556_v26 }
 0x152   :  { %v9219_v22 = vld [vmem:[#allocation5 + $0x864] sm:$0xf0] }
 0x153   :  { %v7928_v24 = vld [vmem:[#allocation5 + $0xf08] sm:$0xf]  ;;  %v7065_v33 = vor.u32 %v9219_v22, %v7064_v20  ;;  %4156 = vmatpush.bf16.msra.mxu0 %v7673_v29  ;;  %v3798_v61 = vsel %vm3790_vm0, %v3172_v46, 0  ;;  %v3891_v29 = vpop.f32.mrf.mxu1  ;;  %v9071_v46 = vld [vmem:[#allocation5 + $0x3cc] sm:$0xf] }
 0x154   :  { %v9435_v25 = vld [vmem:[#allocation5 + $0xf24] sm:$0xf0] }
 0x155   :  { %v7320_v27 = vld [vmem:[#allocation5 + $0xa48] sm:$0xf]  ;;  %v7929_v34 = vor.u32 %v9435_v25, %v7928_v24  ;;  %4133 = vmatpush.bf16.msra.mxu1 %v7065_v33  ;;  %v3878_v25 = vpop.f32.mrf.mxu0  ;;  %v6234_v33 = vld [vmem:[#allocation5 + $0x1e8] sm:$0xf0] }
 0x156   :  { %v9283_v28 = vld [vmem:[#allocation5 + $0xa64] sm:$0xf0]  ;;  %v6138_v25 = vld [vmem:[#allocation5 + $0x128] sm:$0xf0] }
 0x157   :  { %v7640_v30 = vld [vmem:[#allocation5 + $0xcc8] sm:$0xf]  ;;  %v7321_v42 = vor.u32 %v9283_v28, %v7320_v27  ;;  %4169 = vmatpush.bf16.msra.mxu2 %v7929_v34 }
 0x158   :  { %v9363_v31 = vld [vmem:[#allocation5 + $0xce4] sm:$0xf0] }
 0x159   :  { %v7032_v37 = vld [vmem:[#allocation5 + $0x808] sm:$0xf]  ;;  %v7641_v48 = vor.u32 %v9363_v31, %v7640_v30  ;;  %4146 = vmatpush.bf16.msra.mxu3 %v7321_v42  ;;  %v9007_v31 = vld [vmem:[#allocation5 + $0x1cc] sm:$0xf] }
 0x15a   :  { %v9211_v40 = vld [vmem:[#allocation5 + $0x824] sm:$0xf0] }
 0x15b   :  { %v7288_v43 = vld [vmem:[#allocation5 + $0xa08] sm:$0xf]  ;;  %v7033_v57 = vor.u32 %v9211_v40, %v7032_v37  ;;  %4157 = vmatpush.bf16.msra.mxu0 %v7641_v48 }
 0x15c   :  { %v7896_v44 = vld [vmem:[#allocation5 + $0xec8] sm:$0xf] }
 0x15d   :  { %v9427_v45 = vld [vmem:[#allocation5 + $0xee4] sm:$0xf0]  ;;  %4134 = vmatpush.bf16.msra.mxu1 %v7033_v57 }
 0x15e   :  { %v9275_v47 = vld [vmem:[#allocation5 + $0xa24] sm:$0xf0]  ;;  %v7897_v58 = vor.u32 %v9427_v45, %v7896_v44 }
 0x15f   :  { %v8280_v51 = vld [vmem:[#allocation5 + $0x11c8] sm:$0xf]  ;;  %v7289_v59 = vor.u32 %v9275_v47, %v7288_v43  ;;  %v6490_v47 = vld [vmem:[#allocation5 + $0x3e8] sm:$0xf0] }
 0x160   :  { %v9523_v52 = vld [vmem:[#allocation5 + $0x11e4] sm:$0xf0]  ;;  %4170 = vmatpush.bf16.msra.mxu2 %v7897_v58  ;;  %4135 = vmatmul.bf16.vlgmr.msra.gmra.mxu1 %v9946_v38  ;;  %v6493_v58 = vor.u32 %v9071_v46, %v6490_v47 }
 0x161   :  { %v7608_v55 = vld [vmem:[#allocation5 + $0xc88] sm:$0xf]  ;;  %v8281_v60 = vor.u32 %v9523_v52, %v8280_v51  ;;  %4147 = vmatpush.bf16.msra.mxu3 %v7289_v59  ;;  %v6237_v51 = vor.u32 %v9007_v31, %v6234_v33  ;;  %v3904_v52 = vpop.f32.mrf.mxu2  ;;  %v6394_v31 = vld [vmem:[#allocation5 + $0x328] sm:$0xf0] }
 0x162   :  { %v9355_v56 = vld [vmem:[#allocation5 + $0xca4] sm:$0xf0]  ;;  %v3928_v52 = vpop.f32.mrf.mxu0 }
 0x163   :  { %v7864_v50 = vld [vmem:[#allocation5 + $0xe88] sm:$0xf]  ;;  %v7609_v1 = vor.u32 %v9355_v56, %v7608_v55  ;;  %4179 = vmatpush.bf16.msrb.mxu1 %v8281_v60  ;;  %v6202_v55 = vld [vmem:[#allocation5 + $0x1a8] sm:$0xf0]  ;;  %v3917_v56 = vpop.f32.mrf.mxu3 }
 0x164   :  { %v9419_v0 = vld [vmem:[#allocation5 + $0xea4] sm:$0xf0]  ;;  %4148 = vmatmul.bf16.vlgmr.msra.gmra.mxu3 %v9950_v41  ;;  %v9199_v56 = vld [vmem:[#allocation5 + $0x7cc] sm:$0xf] }
 0x165   :  { %v8248_v2 = vld [vmem:[#allocation5 + $0x1188] sm:$0xf]  ;;  %v7865_v8 = vor.u32 %v9419_v0, %v7864_v50  ;;  %4195 = vmatpush.bf16.msrb.mxu3 %v3798_v61  ;;  %4158 = vmatpush.bf16.msra.mxu0 %v7609_v1  ;;  %v6458_v50 = vld [vmem:[#allocation5 + $0x3a8] sm:$0xf0] }
 0x166   :  { %v9515_v3 = vld [vmem:[#allocation5 + $0x11a4] sm:$0xf0] }
 0x167   :  { %v8408_v32 = vld [vmem:[#allocation5 + $0x12c8] sm:$0xf]  ;;  %v8249_v12 = vor.u32 %v9515_v3, %v8248_v2  ;;  %4171 = vmatpush.bf16.msra.mxu2 %v7865_v8  ;;  %v6205_v2 = vor.u32 %v8999_v54, %v6202_v55  ;;  %v9135_v3 = vld [vmem:[#allocation5 + $0x5cc] sm:$0xf]  ;;  %v6461_v8 = vor.u32 %v9063_v62, %v6458_v50 }
 0x168   :  { %v9555_v5 = vld [vmem:[#allocation5 + $0x12e4] sm:$0xf0]  ;;  %v9111_v55 = vld [vmem:[#allocation5 + $0x50c] sm:$0xf] }
 0x169   :  { %v7576_v6 = vld [vmem:[#allocation5 + $0xc48] sm:$0xf]  ;;  %v8409_v18 = vor.u32 %v9555_v5, %v8408_v32  ;;  %4180 = vmatpush.bf16.msrb.mxu1 %v8249_v12  ;;  %v9991_v32 = vpop.f32.mrf.mxu1  ;;  %v8991_v5 = vld [vmem:[#allocation5 + $0x14c] sm:$0xf] }
 0x16a   :  { %v9347_v7 = vld [vmem:[#allocation5 + $0xc64] sm:$0xf0] }
 0x16b   :  { %v7832_v14 = vld [vmem:[#allocation5 + $0xe48] sm:$0xf]  ;;  %v7577_v20 = vor.u32 %v9347_v7, %v7576_v6  ;;  %4196 = vmatpush.bf16.msrb.mxu3 %v8409_v18  ;;  %v6170_v6 = vld [vmem:[#allocation5 + $0x168] sm:$0xf0]  ;;  %v6749_v18 = vor.u32 %v9135_v3, %v6746_v4 }
 0x16c   :  { %v9411_v15 = vld [vmem:[#allocation5 + $0xe64] sm:$0xf0]  ;;  %v6330_v3 = vld [vmem:[#allocation5 + $0x2a8] sm:$0xf0] }
 0x16d   :  { %v8216_v21 = vld [vmem:[#allocation5 + $0x1148] sm:$0xf]  ;;  %v7833_v30 = vor.u32 %v9411_v15, %v7832_v14  ;;  %4159 = vmatpush.bf16.msra.mxu0 %v7577_v20  ;;  %v9055_v14 = vld [vmem:[#allocation5 + $0x34c] sm:$0xf]  ;;  %v6173_v20 = vor.u32 %v8991_v5, %v6170_v6 }
 0x16e   :  { %v9507_v22 = vld [vmem:[#allocation5 + $0x1164] sm:$0xf0]  ;;  %v6426_v15 = vld [vmem:[#allocation5 + $0x368] sm:$0xf0] }
 0x16f   :  { %v8376_v24 = vld [vmem:[#allocation5 + $0x1288] sm:$0xf]  ;;  %v8217_v34 = vor.u32 %v9507_v22, %v8216_v21  ;;  %4172 = vmatpush.bf16.msra.mxu2 %v7833_v30  ;;  %v9127_v21 = vld [vmem:[#allocation5 + $0x58c] sm:$0xf] }
 0x170   :  { %v9547_v26 = vld [vmem:[#allocation5 + $0x12a4] sm:$0xf0]  ;;  %v6714_v22 = vld [vmem:[#allocation5 + $0x5a8] sm:$0xf0] }
 0x171   :  { %v7544_v27 = vld [vmem:[#allocation5 + $0xc08] sm:$0xf]  ;;  %v8377_v43 = vor.u32 %v9547_v26, %v8376_v24  ;;  %4181 = vmatpush.bf16.msrb.mxu1 %v8217_v34  ;;  %v8983_v24 = vld [vmem:[#allocation5 + $0x10c] sm:$0xf]  ;;  %v6717_v33 = vor.u32 %v9127_v21, %v6714_v22 }
 0x172   :  { %v9339_v28 = vld [vmem:[#allocation5 + $0xc24] sm:$0xf0]  ;;  %v9047_v30 = vld [vmem:[#allocation5 + $0x30c] sm:$0xf]  ;;  %v6141_v34 = vor.u32 %v8983_v24, %v6138_v25 }
 0x173   :  { %v7800_v37 = vld [vmem:[#allocation5 + $0xe08] sm:$0xf]  ;;  %v7545_v44 = vor.u32 %v9339_v28, %v7544_v27  ;;  %4197 = vmatpush.bf16.msrb.mxu3 %v8377_v43  ;;  %v6429_v27 = vor.u32 %v9055_v14, %v6426_v15  ;;  %v8975_v43 = vld [vmem:[#allocation5 + $0xcc] sm:$0xf]  ;;  %v6397_v46 = vor.u32 %v9047_v30, %v6394_v31  ;;  %v3954_v14 = vpop.f32.mrf.mxu2 }
 0x174   :  { %v9403_v40 = vld [vmem:[#allocation5 + $0xe24] sm:$0xf0]  ;;  %v9103_v6 = vld [vmem:[#allocation5 + $0x4cc] sm:$0xf] }
 0x175   :  { %v8184_v42 = vld [vmem:[#allocation5 + $0x1108] sm:$0xf]  ;;  %v7801_v53 = vor.u32 %v9403_v40, %v7800_v37  ;;  %4160 = vmatpush.bf16.msra.mxu0 %v7545_v44  ;;  %v9119_v37 = vld [vmem:[#allocation5 + $0x54c] sm:$0xf]  ;;  %v3943_v40 = vpop.f32.mrf.mxu1 }
 0x176   :  { %v9499_v45 = vld [vmem:[#allocation5 + $0x1124] sm:$0xf0]  ;;  %v6106_v44 = vld [vmem:[#allocation5 + $0xe8] sm:$0xf0] }
 0x177   :  { %v8344_v48 = vld [vmem:[#allocation5 + $0x1248] sm:$0xf]  ;;  %v8185_v57 = vor.u32 %v9499_v45, %v8184_v42  ;;  %4173 = vmatpush.bf16.msra.mxu2 %v7801_v53  ;;  %v6682_v42 = vld [vmem:[#allocation5 + $0x568] sm:$0xf0]  ;;  %v6109_v54 = vor.u32 %v8975_v43, %v6106_v44 }
 0x178   :  { %v9539_v49 = vld [vmem:[#allocation5 + $0x1264] sm:$0xf0]  ;;  %4161 = vmatmul.bf16.vlgmr.msra.gmra.mxu0 %v9944_v35  ;;  %v6685_v53 = vor.u32 %v9119_v37, %v6682_v42  ;;  %v9023_v15 = vld [vmem:[#allocation5 + $0x24c] sm:$0xf] }
 0x179   :  { %v8152_v59 = vld [vmem:[#allocation5 + $0x10c8] sm:$0xf]  ;;  %v8345_v60 = vor.u32 %v9539_v49, %v8344_v48  ;;  %4205 = vmatpush.bf16.msrb.mxu0 %v6237_v51  ;;  %4182 = vmatpush.bf16.msrb.mxu1 %v8185_v57  ;;  %v9039_v49 = vld [vmem:[#allocation5 + $0x2cc] sm:$0xf] }
 0x17a   :  { %v9491_v61 = vld [vmem:[#allocation5 + $0x10e4] sm:$0xf0]  ;;  %4174 = vmatmul.bf16.vlgmr.msra.gmra.mxu2 %v9948_v39  ;;  %v6362_v51 = vld [vmem:[#allocation5 + $0x2e8] sm:$0xf0] }
 0x17b   :  { %v8312_v0 = vld [vmem:[#allocation5 + $0x1208] sm:$0xf]  ;;  %4218 = vmatpush.bf16.msrb.mxu2 %v6493_v58  ;;  %v8153_v7 = vor.u32 %v9491_v61, %v8152_v59  ;;  %4198 = vmatpush.bf16.msrb.mxu3 %v8345_v60  ;;  %v7002_v57 = vld [vmem:[#allocation5 + $0x7e8] sm:$0xf0]  ;;  %v3929_v58 = vadd.f32 %v3928_v52, %v9987_v19  ;;  %v6365_v50 = vor.u32 %v9039_v49, %v6362_v51 }
 0x17c   :  { %v9531_v1 = vld [vmem:[#allocation5 + $0x1224] sm:$0xf0]  ;;  %v6650_v59 = vld [vmem:[#allocation5 + $0x528] sm:$0xf0] }
 0x17d   :  { %v8120_v10 = vld [vmem:[#allocation5 + $0x1088] sm:$0xf]  ;;  %v8313_v11 = vor.u32 %v9531_v1, %v8312_v0  ;;  %4206 = vmatpush.bf16.msrb.mxu0 %v6205_v2  ;;  %4183 = vmatpush.bf16.msrb.mxu1 %v8153_v7  ;;  %v8967_v60 = vld [vmem:[#allocation5 + $0x8c] sm:$0xf]  ;;  %v9999_v0 = vadd.f32 %v9991_v32, %v3929_v58  ;;  %v7005_v1 = vor.u32 %v9199_v56, %v7002_v57  ;;  %v3956_v57 = vpop.f32.mrf.mxu2 }
 0x17e   :  { %v9483_v12 = vld [vmem:[#allocation5 + $0x10a4] sm:$0xf0]  ;;  %v6074_v61 = vld [vmem:[#allocation5 + $0xa8] sm:$0xf0]  ;;  %v6653_v4 = vor.u32 %v9111_v55, %v6650_v59 }
 0x17f   :  { %4219 = vmatpush.bf16.msrb.mxu2 %v6461_v8  ;;  %v8121_v26 = vor.u32 %v9483_v12, %v8120_v10  ;;  %v8088_v28 = vld [vmem:[#allocation5 + $0x1048] sm:$0xf]  ;;  %4199 = vmatpush.bf16.msrb.mxu3 %v8313_v11  ;;  %v9031_v2 = vld [vmem:[#allocation5 + $0x28c] sm:$0xf]  ;;  %v6077_v5 = vor.u32 %v8967_v60, %v6074_v61 }
 0x180   :  { %v9475_v29 = vld [vmem:[#allocation5 + $0x1064] sm:$0xf0]  ;;  %v9191_v7 = vld [vmem:[#allocation5 + $0x78c] sm:$0xf]  ;;  %v6333_v12 = vor.u32 %v9031_v2, %v6330_v3 }
 0x181   :  { %4207 = vmatpush.bf16.msrb.mxu0 %v6173_v20  ;;  %4184 = vmatpush.bf16.msrb.mxu1 %v8121_v26  ;;  %v8089_v45 = vor.u32 %v9475_v29, %v8088_v28  ;;  %v8056_v47 = vld [vmem:[#allocation5 + $0x1008] sm:$0xf]  ;;  %v6970_v19 = vld [vmem:[#allocation5 + $0x7a8] sm:$0xf0]  ;;  %v3967_v20 = vpop.f32.mrf.mxu3  ;;  %v3930_v28 = vpop.f32.mrf.mxu0 }
 0x182   :  { %8432 = vmatmul.msk.bf16.vlgmr.msrb.gmra.mxu3 %vm3786_vm1, %v9956_v36  ;;  %v9467_v48 = vld [vmem:[#allocation5 + $0x1024] sm:$0xf0]  ;;  %v6618_v8 = vld [vmem:[#allocation5 + $0x4e8] sm:$0xf0]  ;;  %v6973_v32 = vor.u32 %v9191_v7, %v6970_v19  ;;  %v3980_v7 = vpop.f32.mrf.mxu1 }
 0x183   :  { %4231 = vmatpush.bf16.msra.mxu3 %v6749_v18  ;;  %4220 = vmatpush.bf16.msrb.mxu2 %v6429_v27  ;;  %v8057_v62 = vor.u32 %v9467_v48, %v8056_v47  ;;  %v8959_v10 = vld [vmem:[#allocation5 + $0x4c] sm:$0xf]  ;;  %v6621_v21 = vor.u32 %v9103_v6, %v6618_v8  ;;  %v3968_v27 = vadd.f32 %v3967_v20, %v3954_v14 }
 0x184   :  { %v6042_v11 = vld [vmem:[#allocation5 + $0x68] sm:$0xf0] }
 0x185   :  { %4208 = vmatpush.bf16.msrb.mxu0 %v6141_v34  ;;  %4185 = vmatpush.bf16.msrb.mxu1 %v8089_v45  ;;  %v6298_v18 = vld [vmem:[#allocation5 + $0x268] sm:$0xf0]  ;;  %v6045_v22 = vor.u32 %v8959_v10, %v6042_v11  ;;  %v3981_v11 = vadd.f32 %v3980_v7, %v3968_v27 }
 0x186   :  { %v9095_v24 = vld [vmem:[#allocation5 + $0x48c] sm:$0xf] }
 0x187   :  { %4232 = vmatpush.bf16.msra.mxu3 %v6717_v33  ;;  %4221 = vmatpush.bf16.msrb.mxu2 %v6397_v46  ;;  %v9183_v25 = vld [vmem:[#allocation5 + $0x74c] sm:$0xf]  ;;  %v6301_v33 = vor.u32 %v9023_v15, %v6298_v18 }
 0x188   :  { %v6938_v26 = vld [vmem:[#allocation5 + $0x768] sm:$0xf0] }
 0x189   :  { %4209 = vmatpush.bf16.msrb.mxu0 %v6109_v54  ;;  %4186 = vmatpush.bf16.msrb.mxu1 %v8057_v62  ;;  %v6586_v29 = vld [vmem:[#allocation5 + $0x4a8] sm:$0xf0]  ;;  %v6941_v40 = vor.u32 %v9183_v25, %v6938_v26  ;;  %v3969_v61 = vpop.f32.mrf.mxu3 }
 0x18a   :  { %v8951_v30 = vld [vmem:[#allocation5 + $0xc] sm:$0xf]  ;;  %v6589_v45 = vor.u32 %v9095_v24, %v6586_v29 }
 0x18b   :  { %4233 = vmatpush.bf16.msra.mxu3 %v6685_v53  ;;  %4222 = vmatpush.bf16.msrb.mxu2 %v6365_v50  ;;  %v6010_v31 = vld [vmem:[#allocation5 + $0x28] sm:$0xf0] }
 0x18c   :  { %4187 = vmatmul.bf16.vlgmr.msrb.gmra.mxu1 %v9960_v23  ;;  %v9263_v34 = vld [vmem:[#allocation5 + $0x9cc] sm:$0xf]  ;;  %v6013_v46 = vor.u32 %v8951_v30, %v6010_v31 }
 0x18d   :  { %4244 = vmatpush.bf16.msra.mxu1 %v7005_v1  ;;  %4210 = vmatpush.bf16.msrb.mxu0 %v6077_v5  ;;  %v7258_v37 = vld [vmem:[#allocation5 + $0x9e8] sm:$0xf0] }
 0x18e   :  { %v9015_v42 = vld [vmem:[#allocation5 + $0x20c] sm:$0xf]  ;;  %v7261_v53 = vor.u32 %v9263_v34, %v7258_v37 }
 0x18f   :  { %4234 = vmatpush.bf16.msra.mxu3 %v6653_v4  ;;  %4223 = vmatpush.bf16.msrb.mxu2 %v6333_v12  ;;  %v6266_v43 = vld [vmem:[#allocation5 + $0x228] sm:$0xf0] }
 0x190   :  { %v9175_v44 = vld [vmem:[#allocation5 + $0x70c] sm:$0xf]  ;;  %v6269_v54 = vor.u32 %v9015_v42, %v6266_v43 }
 0x191   :  { %4245 = vmatpush.bf16.msra.mxu1 %v6973_v32  ;;  %4211 = vmatpush.bf16.msrb.mxu0 %v6045_v22  ;;  %v6906_v47 = vld [vmem:[#allocation5 + $0x728] sm:$0xf0] }
 0x192   :  { %v9327_v48 = vld [vmem:[#allocation5 + $0xbcc] sm:$0xf]  ;;  %v6909_v58 = vor.u32 %v9175_v44, %v6906_v47  ;;  %v3982_v44 = vpop.f32.mrf.mxu1 }
 0x193   :  { %4235 = vmatpush.bf16.msra.mxu3 %v6621_v21  ;;  %v7514_v49 = vld [vmem:[#allocation5 + $0xbe8] sm:$0xf0]  ;;  %4224 = vmatpush.bf16.msrb.mxu2 %v6301_v33 }
 0x194   :  { %v9087_v51 = vld [vmem:[#allocation5 + $0x44c] sm:$0xf]  ;;  %v7517_v59 = vor.u32 %v9327_v48, %v7514_v49 }
 0x195   :  { %v6554_v52 = vld [vmem:[#allocation5 + $0x468] sm:$0xf0]  ;;  %4246 = vmatpush.bf16.msra.mxu1 %v6941_v40  ;;  %4212 = vmatpush.bf16.msrb.mxu0 %v6013_v46 }
 0x196   :  { %v9255_v55 = vld [vmem:[#allocation5 + $0x98c] sm:$0xf]  ;;  %v6557_v62 = vor.u32 %v9087_v51, %v6554_v52 }
 0x197   :  { %v7226_v56 = vld [vmem:[#allocation5 + $0x9a8] sm:$0xf0]  ;;  %4236 = vmatpush.bf16.msra.mxu3 %v6589_v45  ;;  %4225 = vmatpush.bf16.msrb.mxu2 %v6269_v54 }
 0x198   :  { %v9167_v60 = vld [vmem:[#allocation5 + $0x6cc] sm:$0xf]  ;;  %v7229_v5 = vor.u32 %v9255_v55, %v7226_v56  ;;  %4213 = vmatmul.bf16.vlgmr.msrb.gmra.mxu0 %v9931_v9 }
 0x199   :  { %v6874_v50 = vld [vmem:[#allocation5 + $0x6e8] sm:$0xf0]  ;;  %4257 = vmatpush.bf16.msra.mxu0 %v7261_v53  ;;  %4247 = vmatpush.bf16.msra.mxu1 %v6909_v58 }
 0x19a   :  { %v9319_v1 = vld [vmem:[#allocation5 + $0xb8c] sm:$0xf]  ;;  %v6877_v12 = vor.u32 %v9167_v60, %v6874_v50  ;;  %4226 = vmatmul.bf16.vlgmr.msrb.gmra.mxu2 %v9935_v17  ;;  %v3993_v60 = vpop.f32.mrf.mxu0 }
 0x19b   :  { %v7482_v2 = vld [vmem:[#allocation5 + $0xba8] sm:$0xf0]  ;;  %4270 = vmatpush.bf16.msra.mxu2 %v7517_v59  ;;  %4237 = vmatpush.bf16.msra.mxu3 %v6557_v62  ;;  %v3994_v62 = vadd.f32 %v3993_v60, %v3981_v11 }
 0x19c   :  { %v9079_v3 = vld [vmem:[#allocation5 + $0x40c] sm:$0xf]  ;;  %v7485_v14 = vor.u32 %v9319_v1, %v7482_v2 }
 0x19d   :  { %v6522_v4 = vld [vmem:[#allocation5 + $0x428] sm:$0xf0]  ;;  %4258 = vmatpush.bf16.msra.mxu0 %v7229_v5  ;;  %4248 = vmatpush.bf16.msra.mxu1 %v6877_v12 }
 0x19e   :  { %v9391_v6 = vld [vmem:[#allocation5 + $0xdcc] sm:$0xf]  ;;  %v6525_v15 = vor.u32 %v9079_v3, %v6522_v4 }
 0x19f   :  { %v7770_v19 = vld [vmem:[#allocation5 + $0xde8] sm:$0xf0]  ;;  %4271 = vmatpush.bf16.msra.mxu2 %v7485_v14 }
 0x1a0   :  { %v9247_v8 = vld [vmem:[#allocation5 + $0x94c] sm:$0xf]  ;;  %v7773_v22 = vor.u32 %v9391_v6, %v7770_v19  ;;  %4238 = vmatpush.bf16.msra.mxu3 %v6525_v15 }
 0x1a1   :  { %v7194_v10 = vld [vmem:[#allocation5 + $0x968] sm:$0xf0] }
 0x1a2   :  { %v9159_v32 = vld [vmem:[#allocation5 + $0x68c] sm:$0xf]  ;;  %v7197_v24 = vor.u32 %v9247_v8, %v7194_v10 }
 0x1a3   :  { %v6842_v18 = vld [vmem:[#allocation5 + $0x6a8] sm:$0xf0]  ;;  %4239 = vmatmul.bf16.vlgmr.msra.gmra.mxu3 %v9928_v63 }
 0x1a4   :  { %v9311_v20 = vld [vmem:[#allocation5 + $0xb4c] sm:$0xf]  ;;  %v6845_v29 = vor.u32 %v9159_v32, %v6842_v18  ;;  %4283 = vmatpush.bf16.msrb.mxu3 %v7773_v22  ;;  %4259 = vmatpush.bf16.msra.mxu0 %v7197_v24  ;;  %v4006_v18 = vpop.f32.mrf.mxu2  ;;  %v2557_v24 = vunpack.c.h.b16 %v9982_v13 }
 0x1a5   :  { %v7450_v21 = vld [vmem:[#allocation5 + $0xb68] sm:$0xf0] }
 0x1a6   :  { %v9383_v25 = vld [vmem:[#allocation5 + $0xd8c] sm:$0xf]  ;;  %v7453_v30 = vor.u32 %v9311_v20, %v7450_v21  ;;  %4249 = vmatpush.bf16.msra.mxu1 %v6845_v29 }
 0x1a7   :  { %v7738_v26 = vld [vmem:[#allocation5 + $0xda8] sm:$0xf0] }
 0x1a8   :  { %v9239_v27 = vld [vmem:[#allocation5 + $0x90c] sm:$0xf]  ;;  %v7741_v40 = vor.u32 %v9383_v25, %v7738_v26  ;;  %4272 = vmatpush.bf16.msra.mxu2 %v7453_v30  ;;  %v4007_v25 = vadd.f32 %v4006_v18, %v3994_v62 }
 0x1a9   :  { %v7162_v28 = vld [vmem:[#allocation5 + $0x928] sm:$0xf0] }
 0x1aa   :  { %v9151_v31 = vld [vmem:[#allocation5 + $0x64c] sm:$0xf]  ;;  %v7165_v42 = vor.u32 %v9239_v27, %v7162_v28  ;;  %4284 = vmatpush.bf16.msrb.mxu3 %v7741_v40  ;;  %v4019_v27 = vpop.f32.mrf.mxu3 }
 0x1ab   :  { %v6810_v33 = vld [vmem:[#allocation5 + $0x668] sm:$0xf0] }
 0x1ac   :  { %v9303_v34 = vld [vmem:[#allocation5 + $0xb0c] sm:$0xf]  ;;  %v6813_v48 = vor.u32 %v9151_v31, %v6810_v33  ;;  %4260 = vmatpush.bf16.msra.mxu0 %v7165_v42  ;;  %v3995_v33 = vpop.f32.mrf.mxu0  ;;  %v4020_v42 = vadd.f32 %v4019_v27, %v4007_v25 }
 0x1ad   :  { %v7418_v37 = vld [vmem:[#allocation5 + $0xb28] sm:$0xf0] }
 0x1ae   :  { %v9375_v43 = vld [vmem:[#allocation5 + $0xd4c] sm:$0xf]  ;;  %v7421_v49 = vor.u32 %v9303_v34, %v7418_v37  ;;  %4250 = vmatpush.bf16.msra.mxu1 %v6813_v48  ;;  %v3173_v48 = vpack.c.b16 %v2557_v24, %v2557_v24 }
 0x1af   :  { %v7706_v45 = vld [vmem:[#allocation5 + $0xd68] sm:$0xf0] }
 0x1b0   :  { %v9231_v46 = vld [vmem:[#allocation5 + $0x8cc] sm:$0xf]  ;;  %v7709_v55 = vor.u32 %v9375_v43, %v7706_v45  ;;  %4273 = vmatpush.bf16.msra.mxu2 %v7421_v49 }
 0x1b1   :  { %v7130_v47 = vld [vmem:[#allocation5 + $0x8e8] sm:$0xf0] }
 0x1b2   :  { %v9143_v51 = vld [vmem:[#allocation5 + $0x60c] sm:$0xf]  ;;  %v7133_v56 = vor.u32 %v9231_v46, %v7130_v47  ;;  %4285 = vmatpush.bf16.msrb.mxu3 %v7709_v55 }
 0x1b3   :  { %v6778_v52 = vld [vmem:[#allocation5 + $0x628] sm:$0xf0] }
 0x1b4   :  { %v9295_v53 = vld [vmem:[#allocation5 + $0xacc] sm:$0xf]  ;;  %v6781_v2 = vor.u32 %v9143_v51, %v6778_v52  ;;  %4261 = vmatpush.bf16.msra.mxu0 %v7133_v56 }
 0x1b5   :  { %v7386_v54 = vld [vmem:[#allocation5 + $0xae8] sm:$0xf0] }
 0x1b6   :  { %v9367_v57 = vld [vmem:[#allocation5 + $0xd0c] sm:$0xf]  ;;  %v7389_v3 = vor.u32 %v9295_v53, %v7386_v54  ;;  %4251 = vmatpush.bf16.msra.mxu1 %v6781_v2  ;;  %v4021_v2 = vpop.f32.mrf.mxu3 }
 0x1b7   :  { %v9455_v58 = vld [vmem:[#allocation5 + $0xfcc] sm:$0xf]  ;;  %v9140_v2 = vld [vmem:[#allocation5 + $0x5ec] sm:$0xf0] }
 0x1b8   :  { %v8026_v59 = vld [vmem:[#allocation5 + $0xfe8] sm:$0xf0]  ;;  %4274 = vmatpush.bf16.msra.mxu2 %v7389_v3 }
 0x1b9   :  { %v7674_v61 = vld [vmem:[#allocation5 + $0xd28] sm:$0xf0]  ;;  %v8029_v4 = vor.u32 %v9455_v58, %v8026_v59  ;;  %4252 = vmatmul.bf16.vlgmr.msra.gmra.mxu1 %v9933_v16 }
 0x1ba   :  { %v9223_v50 = vld [vmem:[#allocation5 + $0x88c] sm:$0xf]  ;;  %v7677_v7 = vor.u32 %v9367_v57, %v7674_v61  ;;  %v3801_v61 = vsel %vm3790_vm0, %v3173_v48, 0 }
 0x1bb   :  { %v7098_v1 = vld [vmem:[#allocation5 + $0x8a8] sm:$0xf0]  ;;  %4296 = vmatpush.bf16.msrb.mxu1 %v8029_v4 }
 0x1bc   :  { %v9287_v5 = vld [vmem:[#allocation5 + $0xa8c] sm:$0xf]  ;;  %v7101_v19 = vor.u32 %v9223_v50, %v7098_v1  ;;  %4286 = vmatpush.bf16.msrb.mxu3 %v7677_v7  ;;  %v4008_v50 = vpop.f32.mrf.mxu2 }
 0x1bd   :  { %v7354_v6 = vld [vmem:[#allocation5 + $0xaa8] sm:$0xf0]  ;;  %v9076_v50 = vld [vmem:[#allocation5 + $0x3ec] sm:$0xf0] }
 0x1be   :  { %v9359_v8 = vld [vmem:[#allocation5 + $0xccc] sm:$0xf]  ;;  %v7357_v11 = vor.u32 %v9287_v5, %v7354_v6  ;;  %4262 = vmatpush.bf16.msra.mxu0 %v7101_v19 }
 0x1bf   :  { %v9447_v10 = vld [vmem:[#allocation5 + $0xf8c] sm:$0xf] }
 0x1c0   :  { %v7994_v12 = vld [vmem:[#allocation5 + $0xfa8] sm:$0xf0]  ;;  %4275 = vmatpush.bf16.msra.mxu2 %v7357_v11 }
 0x1c1   :  { %v7642_v14 = vld [vmem:[#allocation5 + $0xce8] sm:$0xf0]  ;;  %v7997_v20 = vor.u32 %v9447_v10, %v7994_v12  ;;  %v4032_v10 = vpop.f32.mrf.mxu1  ;;  %v9012_v12 = vld [vmem:[#allocation5 + $0x1ec] sm:$0xf0] }
 0x1c2   :  { %v9215_v32 = vld [vmem:[#allocation5 + $0x84c] sm:$0xf]  ;;  %v7645_v26 = vor.u32 %v9359_v8, %v7642_v14  ;;  %v6240_v8 = vld [vmem:[#allocation5 + $0x1d0] sm:$0xf] }
 0x1c3   :  { %v7066_v15 = vld [vmem:[#allocation5 + $0x868] sm:$0xf0]  ;;  %4297 = vmatpush.bf16.msrb.mxu1 %v7997_v20 }
 0x1c4   :  { %v9279_v21 = vld [vmem:[#allocation5 + $0xa4c] sm:$0xf]  ;;  %v7069_v28 = vor.u32 %v9215_v32, %v7066_v15  ;;  %4287 = vmatpush.bf16.msrb.mxu3 %v7645_v26  ;;  %v4033_v15 = vadd.f32 %v4032_v10, %v4020_v42  ;;  %v6241_v26 = vor.u32 %v9012_v12, %v6240_v8  ;;  %v6112_v12 = vld [vmem:[#allocation5 + $0xd0] sm:$0xf] }
 0x1c5   :  { %v7322_v22 = vld [vmem:[#allocation5 + $0xa68] sm:$0xf0] }
 0x1c6   :  { %v9351_v29 = vld [vmem:[#allocation5 + $0xc8c] sm:$0xf]  ;;  %v7325_v43 = vor.u32 %v9279_v21, %v7322_v22  ;;  %4263 = vmatpush.bf16.msra.mxu0 %v7069_v28  ;;  %v6208_v28 = vld [vmem:[#allocation5 + $0x190] sm:$0xf] }
 0x1c7   :  { %v9439_v30 = vld [vmem:[#allocation5 + $0xf4c] sm:$0xf] }
 0x1c8   :  { %v7962_v31 = vld [vmem:[#allocation5 + $0xf68] sm:$0xf0]  ;;  %4276 = vmatpush.bf16.msra.mxu2 %v7325_v43 }
 0x1c9   :  { %v7610_v34 = vld [vmem:[#allocation5 + $0xca8] sm:$0xf0]  ;;  %v7965_v45 = vor.u32 %v9439_v30, %v7962_v31 }
 0x1ca   :  { %v9207_v37 = vld [vmem:[#allocation5 + $0x80c] sm:$0xf]  ;;  %v7613_v49 = vor.u32 %v9351_v29, %v7610_v34  ;;  %v9004_v29 = vld [vmem:[#allocation5 + $0x1ac] sm:$0xf0] }
 0x1cb   :  { %v7034_v40 = vld [vmem:[#allocation5 + $0x828] sm:$0xf0]  ;;  %4298 = vmatpush.bf16.msrb.mxu1 %v7965_v45  ;;  %v6176_v45 = vld [vmem:[#allocation5 + $0x150] sm:$0xf] }
 0x1cc   :  { %v9519_v44 = vld [vmem:[#allocation5 + $0x11cc] sm:$0xf]  ;;  %v7037_v51 = vor.u32 %v9207_v37, %v7034_v40  ;;  %4288 = vmatpush.bf16.msrb.mxu3 %v7613_v49 }
 0x1cd   :  { %v8282_v13 = vld [vmem:[#allocation5 + $0x11e8] sm:$0xf0] }
 0x1ce   :  { %v9271_v46 = vld [vmem:[#allocation5 + $0xa0c] sm:$0xf]  ;;  %v8285_v56 = vor.u32 %v9519_v44, %v8282_v13  ;;  %4264 = vmatpush.bf16.msra.mxu0 %v7037_v51  ;;  %v6209_v44 = vor.u32 %v9004_v29, %v6208_v28  ;;  %v4034_v51 = vpop.f32.mrf.mxu1  ;;  %v6080_v29 = vld [vmem:[#allocation5 + $0x90] sm:$0xf] }
 0x1cf   :  { %v7290_v47 = vld [vmem:[#allocation5 + $0xa28] sm:$0xf0] }
 0x1d0   :  { %v9431_v52 = vld [vmem:[#allocation5 + $0xf0c] sm:$0xf]  ;;  %v7293_v57 = vor.u32 %v9271_v46, %v7290_v47  ;;  %v10010_v46 = vpop.f32.mrf.mxu3  ;;  %v8996_v47 = vld [vmem:[#allocation5 + $0x16c] sm:$0xf0] }
 0x1d1   :  { %v7930_v53 = vld [vmem:[#allocation5 + $0xf28] sm:$0xf0]  ;;  %4265 = vmatmul.bf16.vlgmr.msra.gmra.mxu0 %v9946_v38 }
 0x1d2   :  { %v9343_v54 = vld [vmem:[#allocation5 + $0xc4c] sm:$0xf]  ;;  %v7933_v60 = vor.u32 %v9431_v52, %v7930_v53  ;;  %4309 = vmatpush.bf16.msrb.mxu0 %v8285_v56  ;;  %4277 = vmatpush.bf16.msra.mxu2 %v7293_v57 }
 0x1d3   :  { %v7578_v55 = vld [vmem:[#allocation5 + $0xc68] sm:$0xf0] }
 0x1d4   :  { %v9511_v58 = vld [vmem:[#allocation5 + $0x118c] sm:$0xf]  ;;  %v7581_v1 = vor.u32 %v9343_v54, %v7578_v55  ;;  %4299 = vmatpush.bf16.msrb.mxu1 %v7933_v60  ;;  %v4045_v60 = vpop.f32.mrf.mxu0 }
 0x1d5   :  { %v8250_v59 = vld [vmem:[#allocation5 + $0x11a8] sm:$0xf0]  ;;  %4278 = vmatmul.bf16.vlgmr.msra.gmra.mxu2 %v9950_v41 }
 0x1d6   :  { %v9423_v62 = vld [vmem:[#allocation5 + $0xecc] sm:$0xf]  ;;  %v8253_v19 = vor.u32 %v9511_v58, %v8250_v59  ;;  %4325 = vmatpush.bf16.msrb.mxu2 %v3801_v61  ;;  %4289 = vmatpush.bf16.msrb.mxu3 %v7581_v1  ;;  %v6144_v58 = vld [vmem:[#allocation5 + $0x110] sm:$0xf]  ;;  %v6177_v61 = vor.u32 %v8996_v47, %v6176_v45 }
 0x1d7   :  { %v7898_v3 = vld [vmem:[#allocation5 + $0xee8] sm:$0xf0]  ;;  %v6496_v59 = vld [vmem:[#allocation5 + $0x3d0] sm:$0xf] }
 0x1d8   :  { %v9551_v4 = vld [vmem:[#allocation5 + $0x12cc] sm:$0xf]  ;;  %v7901_v11 = vor.u32 %v9423_v62, %v7898_v3  ;;  %4310 = vmatpush.bf16.msrb.mxu0 %v8253_v19  ;;  %v6752_v1 = vld [vmem:[#allocation5 + $0x5d0] sm:$0xf]  ;;  %v4046_v3 = vadd.f32 %v4045_v60, %v4033_v15  ;;  %v6497_v8 = vor.u32 %v9076_v50, %v6496_v59 }
 0x1d9   :  { %v8410_v5 = vld [vmem:[#allocation5 + $0x12e8] sm:$0xf0]  ;;  %v6753_v10 = vor.u32 %v9140_v2, %v6752_v1  ;;  %v8980_v15 = vld [vmem:[#allocation5 + $0xec] sm:$0xf0] }
 0x1da   :  { %v9335_v6 = vld [vmem:[#allocation5 + $0xc0c] sm:$0xf]  ;;  %v8413_v18 = vor.u32 %v9551_v4, %v8410_v5  ;;  %4300 = vmatpush.bf16.msrb.mxu1 %v7901_v11  ;;  %v8988_v4 = vld [vmem:[#allocation5 + $0x12c] sm:$0xf0] }
 0x1db   :  { %v7546_v7 = vld [vmem:[#allocation5 + $0xc28] sm:$0xf0]  ;;  %v6048_v59 = vld [vmem:[#allocation5 + $0x50] sm:$0xf] }
 0x1dc   :  { %v9503_v14 = vld [vmem:[#allocation5 + $0x114c] sm:$0xf]  ;;  %v7549_v21 = vor.u32 %v9335_v6, %v7546_v7  ;;  %4326 = vmatpush.bf16.msrb.mxu2 %v8413_v18  ;;  %v9068_v18 = vld [vmem:[#allocation5 + $0x3ac] sm:$0xf0] }
 0x1dd   :  { %v8218_v32 = vld [vmem:[#allocation5 + $0x1168] sm:$0xf0]  ;;  %v8964_v60 = vld [vmem:[#allocation5 + $0x6c] sm:$0xf0] }
 0x1de   :  { %v9415_v20 = vld [vmem:[#allocation5 + $0xe8c] sm:$0xf]  ;;  %v8221_v27 = vor.u32 %v9503_v14, %v8218_v32  ;;  %4290 = vmatpush.bf16.msrb.mxu3 %v7549_v21  ;;  %v6464_v14 = vld [vmem:[#allocation5 + $0x390] sm:$0xf]  ;;  %v6145_v32 = vor.u32 %v8988_v4, %v6144_v58  ;;  %v6049_v4 = vor.u32 %v8964_v60, %v6048_v59 }
 0x1df   :  { %v7866_v22 = vld [vmem:[#allocation5 + $0xea8] sm:$0xf0]  ;;  %v9132_v21 = vld [vmem:[#allocation5 + $0x5ac] sm:$0xf0] }
 0x1e0   :  { %v9543_v24 = vld [vmem:[#allocation5 + $0x128c] sm:$0xf]  ;;  %v7869_v33 = vor.u32 %v9415_v20, %v7866_v22  ;;  %4311 = vmatpush.bf16.msrb.mxu0 %v8221_v27  ;;  %v6720_v20 = vld [vmem:[#allocation5 + $0x590] sm:$0xf]  ;;  %v4073_v22 = vpop.f32.mrf.mxu3  ;;  %v6465_v27 = vor.u32 %v9068_v18, %v6464_v14  ;;  %v4084_v18 = vpop.f32.mrf.mxu1 }
 0x1e1   :  { %v8378_v25 = vld [vmem:[#allocation5 + $0x12a8] sm:$0xf0]  ;;  %4291 = vmatmul.bf16.vlgmr.msrb.gmra.mxu3 %v9944_v35  ;;  %v6721_v28 = vor.u32 %v9132_v21, %v6720_v20  ;;  %v9116_v58 = vld [vmem:[#allocation5 + $0x52c] sm:$0xf0] }
 0x1e2   :  { %v9495_v30 = vld [vmem:[#allocation5 + $0x110c] sm:$0xf]  ;;  %v8381_v34 = vor.u32 %v9543_v24, %v8378_v25  ;;  %4335 = vmatpush.bf16.msra.mxu3 %v6241_v26  ;;  %4301 = vmatpush.bf16.msrb.mxu1 %v7869_v33  ;;  %v4058_v26 = vpop.f32.mrf.mxu2  ;;  %v6113_v33 = vor.u32 %v8980_v15, %v6112_v12  ;;  %v6368_v2 = vld [vmem:[#allocation5 + $0x2d0] sm:$0xf] }
 0x1e3   :  { %v8186_v31 = vld [vmem:[#allocation5 + $0x1128] sm:$0xf0]  ;;  %v7264_v12 = vld [vmem:[#allocation5 + $0x9d0] sm:$0xf] }
 0x1e4   :  { %v9407_v37 = vld [vmem:[#allocation5 + $0xe4c] sm:$0xf]  ;;  %v8189_v13 = vor.u32 %v9495_v30, %v8186_v31  ;;  %4327 = vmatpush.bf16.msrb.mxu2 %v8381_v34  ;;  %v6432_v30 = vld [vmem:[#allocation5 + $0x350] sm:$0xf]  ;;  %v4059_v31 = vadd.f32 %v4058_v26, %v4046_v3 }
 0x1e5   :  { %v7834_v40 = vld [vmem:[#allocation5 + $0xe68] sm:$0xf0]  ;;  %v9268_v14 = vld [vmem:[#allocation5 + $0x9ec] sm:$0xf0] }
 0x1e6   :  { %v9535_v42 = vld [vmem:[#allocation5 + $0x124c] sm:$0xf]  ;;  %v7837_v52 = vor.u32 %v9407_v37, %v7834_v40  ;;  %4336 = vmatpush.bf16.msra.mxu3 %v6209_v44  ;;  %4312 = vmatpush.bf16.msrb.mxu0 %v8189_v13  ;;  %v9060_v37 = vld [vmem:[#allocation5 + $0x36c] sm:$0xf0]  ;;  %v10017_v47 = vadd.f32 %v10010_v46, %v4059_v31 }
 0x1e7   :  { %v8346_v43 = vld [vmem:[#allocation5 + $0x1268] sm:$0xf0]  ;;  %v6688_v40 = vld [vmem:[#allocation5 + $0x550] sm:$0xf]  ;;  %v6433_v51 = vor.u32 %v9060_v37, %v6432_v30 }
 0x1e8   :  { %v9487_v48 = vld [vmem:[#allocation5 + $0x10cc] sm:$0xf]  ;;  %v8349_v53 = vor.u32 %v9535_v42, %v8346_v43  ;;  %4302 = vmatpush.bf16.msrb.mxu1 %v7837_v52  ;;  %v9124_v42 = vld [vmem:[#allocation5 + $0x56c] sm:$0xf0]  ;;  %v4047_v43 = vpop.f32.mrf.mxu0 }
 0x1e9   :  { %v8154_v49 = vld [vmem:[#allocation5 + $0x10e8] sm:$0xf0]  ;;  %v8972_v44 = vld [vmem:[#allocation5 + $0xac] sm:$0xf0]  ;;  %v6689_v52 = vor.u32 %v9124_v42, %v6688_v40 }
 0x1ea   :  { %v9399_v54 = vld [vmem:[#allocation5 + $0xe0c] sm:$0xf]  ;;  %v8157_v62 = vor.u32 %v9487_v48, %v8154_v49  ;;  %4328 = vmatpush.bf16.msrb.mxu2 %v8349_v53  ;;  %4337 = vmatpush.bf16.msra.mxu3 %v6177_v61  ;;  %v7008_v48 = vld [vmem:[#allocation5 + $0x7d0] sm:$0xf]  ;;  %v4060_v3 = vpop.f32.mrf.mxu2 }
 0x1eb   :  { %v7802_v55 = vld [vmem:[#allocation5 + $0xe28] sm:$0xf0]  ;;  %v9204_v49 = vld [vmem:[#allocation5 + $0x7ec] sm:$0xf0] }
 0x1ec   :  { %v9527_v56 = vld [vmem:[#allocation5 + $0x120c] sm:$0xf]  ;;  %v7805_v7 = vor.u32 %v9399_v54, %v7802_v55  ;;  %4313 = vmatpush.bf16.msrb.mxu0 %v8157_v62  ;;  %v6400_v53 = vld [vmem:[#allocation5 + $0x310] sm:$0xf]  ;;  %v6081_v54 = vor.u32 %v8972_v44, %v6080_v29  ;;  %v7009_v61 = vor.u32 %v9204_v49, %v7008_v48  ;;  %v4097_v49 = vpop.f32.mrf.mxu3 }
 0x1ed   :  { %v8314_v57 = vld [vmem:[#allocation5 + $0x1228] sm:$0xf0]  ;;  %v6976_v62 = vld [vmem:[#allocation5 + $0x790] sm:$0xf] }
 0x1ee   :  { %v9479_v5 = vld [vmem:[#allocation5 + $0x108c] sm:$0xf]  ;;  %v8317_v19 = vor.u32 %v9527_v56, %v8314_v57  ;;  %4303 = vmatpush.bf16.msrb.mxu1 %v7805_v7  ;;  %4338 = vmatpush.bf16.msra.mxu3 %v6145_v32  ;;  %v9052_v56 = vld [vmem:[#allocation5 + $0x32c] sm:$0xf0] }
 0x1ef   :  { %v8122_v6 = vld [vmem:[#allocation5 + $0x10a8] sm:$0xf0]  ;;  %v6656_v57 = vld [vmem:[#allocation5 + $0x510] sm:$0xf]  ;;  %v6401_v50 = vor.u32 %v9052_v56, %v6400_v53 }
 0x1f0   :  { %v8125_v11 = vor.u32 %v9479_v5, %v8122_v6  ;;  %v9471_v24 = vld [vmem:[#allocation5 + $0x104c] sm:$0xf]  ;;  %4329 = vmatpush.bf16.msrb.mxu2 %v8317_v19  ;;  %v9196_v46 = vld [vmem:[#allocation5 + $0x7ac] sm:$0xf0]  ;;  %v6657_v1 = vor.u32 %v9116_v58, %v6656_v57 }
 0x1f1   :  { %v8090_v25 = vld [vmem:[#allocation5 + $0x1068] sm:$0xf0]  ;;  %4304 = vmatmul.bf16.vlgmr.msrb.gmra.mxu1 %v9948_v39  ;;  %v9044_v5 = vld [vmem:[#allocation5 + $0x2ec] sm:$0xf0] }
 0x1f2   :  { %4348 = vmatpush.bf16.msra.mxu1 %v6497_v8  ;;  %4314 = vmatpush.bf16.msrb.mxu0 %v8125_v11  ;;  %v8093_v34 = vor.u32 %v9471_v24, %v8090_v25  ;;  %v9463_v13 = vld [vmem:[#allocation5 + $0x100c] sm:$0xf]  ;;  %v6624_v6 = vld [vmem:[#allocation5 + $0x4d0] sm:$0xf]  ;;  %v6369_v20 = vor.u32 %v9044_v5, %v6368_v2  ;;  %v4110_v5 = vpop.f32.mrf.mxu0 }
 0x1f3   :  { %8433 = vmatmul.msk.bf16.vlgmr.msrb.gmra.mxu2 %vm3786_vm1, %v9956_v36  ;;  %v8058_v45 = vld [vmem:[#allocation5 + $0x1028] sm:$0xf0]  ;;  %4339 = vmatpush.bf16.msra.mxu3 %v6113_v33  ;;  %v9108_v7 = vld [vmem:[#allocation5 + $0x4ec] sm:$0xf0] }
 0x1f4   :  { %4361 = vmatpush.bf16.msra.mxu2 %v6753_v10  ;;  %v8061_v55 = vor.u32 %v9463_v13, %v8058_v45  ;;  %v6016_v19 = vld [vmem:[#allocation5 + $0x10] sm:$0xf]  ;;  %v6977_v10 = vor.u32 %v9196_v46, %v6976_v62  ;;  %v6625_v21 = vor.u32 %v9108_v7, %v6624_v6 }
 0x1f5   :  { %v8956_v8 = vld [vmem:[#allocation5 + $0x2c] sm:$0xf0] }
 0x1f6   :  { %4349 = vmatpush.bf16.msra.mxu1 %v6465_v27  ;;  %4315 = vmatpush.bf16.msrb.mxu0 %v8093_v34  ;;  %v6944_v32 = vld [vmem:[#allocation5 + $0x750] sm:$0xf]  ;;  %v6017_v15 = vor.u32 %v8956_v8, %v6016_v19  ;;  %v7265_v27 = vor.u32 %v9268_v14, %v7264_v12 }
 0x1f7   :  { %4340 = vmatpush.bf16.msra.mxu3 %v6081_v54  ;;  %v9188_v11 = vld [vmem:[#allocation5 + $0x76c] sm:$0xf0]  ;;  %v4098_v54 = vadd.f32 %v4097_v49, %v4084_v18 }
 0x1f8   :  { %4362 = vmatpush.bf16.msra.mxu2 %v6721_v28  ;;  %v6336_v22 = vld [vmem:[#allocation5 + $0x290] sm:$0xf]  ;;  %v6945_v28 = vor.u32 %v9188_v11, %v6944_v32 }
 0x1f9   :  { %v9036_v24 = vld [vmem:[#allocation5 + $0x2ac] sm:$0xf0]  ;;  %v4111_v8 = vadd.f32 %v4110_v5, %v4098_v54 }
 0x1fa   :  { %4350 = vmatpush.bf16.msra.mxu1 %v6433_v51  ;;  %4316 = vmatpush.bf16.msrb.mxu0 %v8061_v55  ;;  %v6592_v25 = vld [vmem:[#allocation5 + $0x490] sm:$0xf]  ;;  %v6337_v34 = vor.u32 %v9036_v24, %v6336_v22  ;;  %v4086_v55 = vpop.f32.mrf.mxu1 }
 0x1fb   :  { %4341 = vmatpush.bf16.msra.mxu3 %v6049_v4  ;;  %v9100_v26 = vld [vmem:[#allocation5 + $0x4ac] sm:$0xf0] }
 0x1fc   :  { %4363 = vmatpush.bf16.msra.mxu2 %v6689_v52  ;;  %v7232_v29 = vld [vmem:[#allocation5 + $0x990] sm:$0xf]  ;;  %v6593_v37 = vor.u32 %v9100_v26, %v6592_v25  ;;  %v4099_v25 = vpop.f32.mrf.mxu3 }
 0x1fd   :  { %4317 = vmatmul.bf16.vlgmr.msrb.gmra.mxu0 %v9960_v23  ;;  %v9260_v30 = vld [vmem:[#allocation5 + $0x9ac] sm:$0xf0] }
 0x1fe   :  { %4374 = vmatpush.bf16.msra.mxu0 %v7009_v61  ;;  %4351 = vmatpush.bf16.msra.mxu1 %v6401_v50  ;;  %v6912_v31 = vld [vmem:[#allocation5 + $0x710] sm:$0xf]  ;;  %v7233_v13 = vor.u32 %v9260_v30, %v7232_v29 }
 0x1ff   :  { %v9180_v33 = vld [vmem:[#allocation5 + $0x72c] sm:$0xf0]  ;;  %4342 = vmatpush.bf16.msra.mxu3 %v6017_v15 }
 0x200   :  { %4364 = vmatpush.bf16.msra.mxu2 %v6657_v1  ;;  %v6304_v40 = vld [vmem:[#allocation5 + $0x250] sm:$0xf]  ;;  %v6913_v45 = vor.u32 %v9180_v33, %v6912_v31 }
 0x201   :  { %v9028_v42 = vld [vmem:[#allocation5 + $0x26c] sm:$0xf0] }
 0x202   :  { %4375 = vmatpush.bf16.msra.mxu0 %v6977_v10  ;;  %4352 = vmatpush.bf16.msra.mxu1 %v6369_v20  ;;  %v6560_v43 = vld [vmem:[#allocation5 + $0x450] sm:$0xf]  ;;  %v6305_v56 = vor.u32 %v9028_v42, %v6304_v40 }
 0x203   :  { %v9092_v44 = vld [vmem:[#allocation5 + $0x46c] sm:$0xf0]  ;;  %4387 = vmatpush.bf16.msrb.mxu3 %v7265_v27 }
 0x204   :  { %4365 = vmatpush.bf16.msra.mxu2 %v6625_v21  ;;  %v7200_v48 = vld [vmem:[#allocation5 + $0x950] sm:$0xf]  ;;  %v6561_v57 = vor.u32 %v9092_v44, %v6560_v43  ;;  %4343 = vmatmul.bf16.vlgmr.msra.gmra.mxu3 %v9931_v9 }
 0x205   :  { %v9252_v51 = vld [vmem:[#allocation5 + $0x96c] sm:$0xf0] }
 0x206   :  { %4376 = vmatpush.bf16.msra.mxu0 %v6945_v28  ;;  %v6880_v52 = vld [vmem:[#allocation5 + $0x6d0] sm:$0xf]  ;;  %4353 = vmatpush.bf16.msra.mxu1 %v6337_v34  ;;  %v7201_v50 = vor.u32 %v9252_v51, %v7200_v48  ;;  %v4123_v34 = vpop.f32.mrf.mxu2 }
 0x207   :  { %v9172_v53 = vld [vmem:[#allocation5 + $0x6ec] sm:$0xf0]  ;;  %4388 = vmatpush.bf16.msrb.mxu3 %v7233_v13  ;;  %v4124_v13 = vadd.f32 %v4123_v34, %v4111_v8 }
 0x208   :  { %4366 = vmatpush.bf16.msra.mxu2 %v6593_v37  ;;  %v6272_v58 = vld [vmem:[#allocation5 + $0x210] sm:$0xf]  ;;  %v6881_v1 = vor.u32 %v9172_v53, %v6880_v52 }
 0x209   :  { %v9020_v59 = vld [vmem:[#allocation5 + $0x22c] sm:$0xf0] }
 0x20a   :  { %v6528_v60 = vld [vmem:[#allocation5 + $0x410] sm:$0xf]  ;;  %4377 = vmatpush.bf16.msra.mxu0 %v6913_v45  ;;  %4354 = vmatpush.bf16.msra.mxu1 %v6305_v56  ;;  %v6273_v10 = vor.u32 %v9020_v59, %v6272_v58  ;;  %v4112_v45 = vpop.f32.mrf.mxu0 }
 0x20b   :  { %v9084_v61 = vld [vmem:[#allocation5 + $0x42c] sm:$0xf0]  ;;  %4389 = vmatpush.bf16.msrb.mxu3 %v7201_v50 }
 0x20c   :  { %v7168_v62 = vld [vmem:[#allocation5 + $0x910] sm:$0xf]  ;;  %4367 = vmatpush.bf16.msra.mxu2 %v6561_v57  ;;  %v6529_v12 = vor.u32 %v9084_v61, %v6528_v60 }
 0x20d   :  { %v7520_v46 = vld [vmem:[#allocation5 + $0xbd0] sm:$0xf] }
 0x20e   :  { %v9332_v2 = vld [vmem:[#allocation5 + $0xbec] sm:$0xf0]  ;;  %4378 = vmatpush.bf16.msra.mxu0 %v6881_v1  ;;  %4355 = vmatpush.bf16.msra.mxu1 %v6273_v10 }
 0x20f   :  { %v7776_v3 = vld [vmem:[#allocation5 + $0xdd0] sm:$0xf]  ;;  %v7521_v14 = vor.u32 %v9332_v2, %v7520_v46 }
 0x210   :  { %v9396_v4 = vld [vmem:[#allocation5 + $0xdec] sm:$0xf0]  ;;  %4368 = vmatpush.bf16.msra.mxu2 %v6529_v12 }
 0x211   :  { %v9244_v6 = vld [vmem:[#allocation5 + $0x92c] sm:$0xf0]  ;;  %v7777_v32 = vor.u32 %v9396_v4, %v7776_v3  ;;  %4356 = vmatmul.bf16.vlgmr.msra.gmra.mxu1 %v9935_v17 }
 0x212   :  { %v6848_v7 = vld [vmem:[#allocation5 + $0x690] sm:$0xf]  ;;  %v7169_v20 = vor.u32 %v9244_v6, %v7168_v62  ;;  %4400 = vmatpush.bf16.msrb.mxu1 %v7521_v14  ;;  %v4125_v6 = vpop.f32.mrf.mxu2 }
 0x213   :  { %v9164_v19 = vld [vmem:[#allocation5 + $0x6ac] sm:$0xf0]  ;;  %4369 = vmatmul.bf16.vlgmr.msra.gmra.mxu2 %v9928_v63 }
 0x214   :  { %v7136_v11 = vld [vmem:[#allocation5 + $0x8d0] sm:$0xf]  ;;  %v6849_v21 = vor.u32 %v9164_v19, %v6848_v7  ;;  %4413 = vmatpush.bf16.msrb.mxu2 %v7777_v32  ;;  %4390 = vmatpush.bf16.msrb.mxu3 %v7169_v20 }
 0x215   :  { %v7488_v18 = vld [vmem:[#allocation5 + $0xb90] sm:$0xf] }
 0x216   :  { %v9324_v22 = vld [vmem:[#allocation5 + $0xbac] sm:$0xf0]  ;;  %4379 = vmatpush.bf16.msra.mxu0 %v6849_v21 }
 0x217   :  { %v7744_v15 = vld [vmem:[#allocation5 + $0xd90] sm:$0xf]  ;;  %v7489_v29 = vor.u32 %v9324_v22, %v7488_v18  ;;  %v4136_v22 = vpop.f32.mrf.mxu1 }
 0x218   :  { %v9388_v24 = vld [vmem:[#allocation5 + $0xdac] sm:$0xf0] }
 0x219   :  { %v9236_v26 = vld [vmem:[#allocation5 + $0x8ec] sm:$0xf0]  ;;  %v7745_v30 = vor.u32 %v9388_v24, %v7744_v15  ;;  %4401 = vmatpush.bf16.msrb.mxu1 %v7489_v29 }
 0x21a   :  { %v6816_v27 = vld [vmem:[#allocation5 + $0x650] sm:$0xf]  ;;  %v7137_v37 = vor.u32 %v9236_v26, %v7136_v11  ;;  %v4137_v26 = vadd.f32 %v4136_v22, %v4124_v13 }
 0x21b   :  { %v9156_v28 = vld [vmem:[#allocation5 + $0x66c] sm:$0xf0]  ;;  %4414 = vmatpush.bf16.msrb.mxu2 %v7745_v30 }
 0x21c   :  { %v7104_v31 = vld [vmem:[#allocation5 + $0x890] sm:$0xf]  ;;  %v6817_v40 = vor.u32 %v9156_v28, %v6816_v27  ;;  %4391 = vmatpush.bf16.msrb.mxu3 %v7137_v37 }
 0x21d   :  { %v7456_v33 = vld [vmem:[#allocation5 + $0xb50] sm:$0xf] }
 0x21e   :  { %v9316_v42 = vld [vmem:[#allocation5 + $0xb6c] sm:$0xf0]  ;;  %4380 = vmatpush.bf16.msra.mxu0 %v6817_v40 }
 0x21f   :  { %v7712_v43 = vld [vmem:[#allocation5 + $0xd50] sm:$0xf]  ;;  %v7457_v54 = vor.u32 %v9316_v42, %v7456_v33 }
 0x220   :  { %v9380_v44 = vld [vmem:[#allocation5 + $0xd6c] sm:$0xf0] }
 0x221   :  { %v9228_v48 = vld [vmem:[#allocation5 + $0x8ac] sm:$0xf0]  ;;  %v7713_v55 = vor.u32 %v9380_v44, %v7712_v43  ;;  %4402 = vmatpush.bf16.msrb.mxu1 %v7457_v54  ;;  %v4149_v54 = vpop.f32.mrf.mxu3 }
 0x222   :  { %v6784_v49 = vld [vmem:[#allocation5 + $0x610] sm:$0xf]  ;;  %v7105_v57 = vor.u32 %v9228_v48, %v7104_v31 }
 0x223   :  { %v9148_v51 = vld [vmem:[#allocation5 + $0x62c] sm:$0xf0]  ;;  %4415 = vmatpush.bf16.msrb.mxu2 %v7713_v55 }
 0x224   :  { %v8032_v52 = vld [vmem:[#allocation5 + $0xfd0] sm:$0xf]  ;;  %v6785_v58 = vor.u32 %v9148_v51, %v6784_v49  ;;  %4392 = vmatpush.bf16.msrb.mxu3 %v7105_v57  ;;  %v4150_v57 = vadd.f32 %v4149_v54, %v4137_v26 }
 0x225   :  { %v9460_v53 = vld [vmem:[#allocation5 + $0xfec] sm:$0xf0] }
 0x226   :  { %v7424_v56 = vld [vmem:[#allocation5 + $0xb10] sm:$0xf]  ;;  %v8033_v50 = vor.u32 %v9460_v53, %v8032_v52  ;;  %4381 = vmatpush.bf16.msra.mxu0 %v6785_v58 }
 0x227   :  { %v9308_v59 = vld [vmem:[#allocation5 + $0xb2c] sm:$0xf0] }
 0x228   :  { %v7680_v60 = vld [vmem:[#allocation5 + $0xd10] sm:$0xf]  ;;  %v7425_v3 = vor.u32 %v9308_v59, %v7424_v56 }
 0x229   :  { %v9372_v61 = vld [vmem:[#allocation5 + $0xd2c] sm:$0xf0]  ;;  %4382 = vmatmul.bf16.vlgmr.msra.gmra.mxu0 %v9933_v16  ;;  %v4151_v26 = vpop.f32.mrf.mxu3 }
 0x22a   :  { %v7072_v62 = vld [vmem:[#allocation5 + $0x850] sm:$0xf]  ;;  %v7681_v4 = vor.u32 %v9372_v61, %v7680_v60  ;;  %4426 = vmatpush.bf16.msrb.mxu0 %v8033_v50  ;;  %4403 = vmatpush.bf16.msrb.mxu1 %v7425_v3  ;;  %v4138_v61 = vpop.f32.mrf.mxu1  ;;  %v9200_v26 = vld [vmem:[#allocation5 + $0x7d4] sm:$0xf] }
 0x22b   :  { %v9220_v46 = vld [vmem:[#allocation5 + $0x86c] sm:$0xf0] }
 0x22c   :  { %v8000_v1 = vld [vmem:[#allocation5 + $0xf90] sm:$0xf]  ;;  %v7073_v7 = vor.u32 %v9220_v46, %v7072_v62  ;;  %4416 = vmatpush.bf16.msrb.mxu2 %v7681_v4 }
 0x22d   :  { %v9452_v2 = vld [vmem:[#allocation5 + $0xfac] sm:$0xf0] }
 0x22e   :  { %v7392_v5 = vld [vmem:[#allocation5 + $0xad0] sm:$0xf]  ;;  %v8001_v32 = vor.u32 %v9452_v2, %v8000_v1  ;;  %4393 = vmatpush.bf16.msrb.mxu3 %v7073_v7 }
 0x22f   :  { %v9300_v19 = vld [vmem:[#allocation5 + $0xaec] sm:$0xf0] }
 0x230   :  { %v7648_v8 = vld [vmem:[#allocation5 + $0xcd0] sm:$0xf]  ;;  %v7393_v15 = vor.u32 %v9300_v19, %v7392_v5  ;;  %4427 = vmatpush.bf16.msrb.mxu0 %v8001_v32  ;;  %v4162_v5 = vpop.f32.mrf.mxu0 }
 0x231   :  { %v9364_v10 = vld [vmem:[#allocation5 + $0xcec] sm:$0xf0] }
 0x232   :  { %v7040_v12 = vld [vmem:[#allocation5 + $0x810] sm:$0xf]  ;;  %v7649_v24 = vor.u32 %v9364_v10, %v7648_v8  ;;  %4404 = vmatpush.bf16.msrb.mxu1 %v7393_v15  ;;  %v9008_v8 = vld [vmem:[#allocation5 + $0x1d4] sm:$0xf] }
 0x233   :  { %v9212_v14 = vld [vmem:[#allocation5 + $0x82c] sm:$0xf0]  ;;  %v6242_v10 = vld [vmem:[#allocation5 + $0x1f0] sm:$0xf0] }
 0x234   :  { %v8288_v11 = vld [vmem:[#allocation5 + $0x11d0] sm:$0xf]  ;;  %v7041_v27 = vor.u32 %v9212_v14, %v7040_v12  ;;  %4417 = vmatpush.bf16.msrb.mxu2 %v7649_v24  ;;  %v4163_v12 = vadd.f32 %v4162_v5, %v4150_v57  ;;  %v6245_v22 = vor.u32 %v9008_v8, %v6242_v10  ;;  %v6466_v8 = vld [vmem:[#allocation5 + $0x3b0] sm:$0xf0] }
 0x235   :  { %v9524_v18 = vld [vmem:[#allocation5 + $0x11ec] sm:$0xf0] }
 0x236   :  { %v7968_v20 = vld [vmem:[#allocation5 + $0xf50] sm:$0xf]  ;;  %v8289_v31 = vor.u32 %v9524_v18, %v8288_v11  ;;  %4394 = vmatpush.bf16.msrb.mxu3 %v7041_v27 }
 0x237   :  { %v9444_v21 = vld [vmem:[#allocation5 + $0xf6c] sm:$0xf0] }
 0x238   :  { %v7360_v25 = vld [vmem:[#allocation5 + $0xa90] sm:$0xf]  ;;  %v7969_v33 = vor.u32 %v9444_v21, %v7968_v20  ;;  %v4164_v54 = vpop.f32.mrf.mxu0 }
 0x239   :  { %v9292_v28 = vld [vmem:[#allocation5 + $0xaac] sm:$0xf0]  ;;  %4395 = vmatmul.bf16.vlgmr.msrb.gmra.mxu3 %v9946_v38 }
 0x23a   :  { %v7616_v29 = vld [vmem:[#allocation5 + $0xc90] sm:$0xf]  ;;  %v7361_v44 = vor.u32 %v9292_v28, %v7360_v25  ;;  %4439 = vmatpush.bf16.msra.mxu3 %v8289_v31  ;;  %4428 = vmatpush.bf16.msrb.mxu0 %v7969_v33 }
 0x23b   :  { %v9356_v30 = vld [vmem:[#allocation5 + $0xcac] sm:$0xf0] }
 0x23c   :  { %v8256_v34 = vld [vmem:[#allocation5 + $0x1190] sm:$0xf]  ;;  %v7617_v13 = vor.u32 %v9356_v30, %v7616_v29  ;;  %4405 = vmatpush.bf16.msrb.mxu1 %v7361_v44  ;;  %v9000_v29 = vld [vmem:[#allocation5 + $0x194] sm:$0xf] }
 0x23d   :  { %v10024_v37 = vld [vmem:[#allocation5 + $0x1310] sm:$0x33] }
 0x23e   :  { %v9516_v40 = vld [vmem:[#allocation5 + $0x11ac] sm:$0xf0]  ;;  %v2558_v52 = vunpack.c.l.b16 %v10024_v37  ;;  %4418 = vmatpush.bf16.msrb.mxu2 %v7617_v13  ;;  %v6210_v30 = vld [vmem:[#allocation5 + $0x1b0] sm:$0xf0] }
 0x23f   :  { %v7936_v42 = vld [vmem:[#allocation5 + $0xf10] sm:$0xf]  ;;  %v8257_v53 = vor.u32 %v9516_v40, %v8256_v34  ;;  %v4175_v40 = vpop.f32.mrf.mxu2 }
 0x240   :  { %v9436_v43 = vld [vmem:[#allocation5 + $0xf2c] sm:$0xf0]  ;;  %v3174_v4 = vpack.c.b16 %v2558_v52, %v2558_v52  ;;  %v8992_v52 = vld [vmem:[#allocation5 + $0x154] sm:$0xf] }
 0x241   :  { %v7328_v45 = vld [vmem:[#allocation5 + $0xa50] sm:$0xf]  ;;  %v7937_v55 = vor.u32 %v9436_v43, %v7936_v42  ;;  %4440 = vmatpush.bf16.msra.mxu3 %v8257_v53  ;;  %v6213_v43 = vor.u32 %v9000_v29, %v6210_v30  ;;  %v6178_v53 = vld [vmem:[#allocation5 + $0x170] sm:$0xf0] }
 0x242   :  { %v9284_v48 = vld [vmem:[#allocation5 + $0xa6c] sm:$0xf0]  ;;  %v3804_v21 = vsel %vm3790_vm0, %v3174_v4, 0  ;;  %v6181_v61 = vor.u32 %v8992_v52, %v6178_v53  ;;  %v7010_v29 = vld [vmem:[#allocation5 + $0x7f0] sm:$0xf0] }
 0x243   :  { %v7584_v49 = vld [vmem:[#allocation5 + $0xc50] sm:$0xf]  ;;  %v7329_v62 = vor.u32 %v9284_v48, %v7328_v45  ;;  %4429 = vmatpush.bf16.msrb.mxu0 %v7937_v55  ;;  %v4176_v45 = vadd.f32 %v4175_v40, %v4163_v12  ;;  %v9056_v30 = vld [vmem:[#allocation5 + $0x354] sm:$0xf] }
 0x244   :  { %v9348_v51 = vld [vmem:[#allocation5 + $0xc6c] sm:$0xf0]  ;;  %v6722_v52 = vld [vmem:[#allocation5 + $0x5b0] sm:$0xf0] }
 0x245   :  { %v8224_v56 = vld [vmem:[#allocation5 + $0x1150] sm:$0xf]  ;;  %v7585_v46 = vor.u32 %v9348_v51, %v7584_v49  ;;  %4406 = vmatpush.bf16.msrb.mxu1 %v7329_v62  ;;  %v9192_v53 = vld [vmem:[#allocation5 + $0x794] sm:$0xf] }
 0x246   :  { %v9508_v58 = vld [vmem:[#allocation5 + $0x116c] sm:$0xf0] }
 0x247   :  { %v7904_v59 = vld [vmem:[#allocation5 + $0xed0] sm:$0xf]  ;;  %v8225_v6 = vor.u32 %v9508_v58, %v8224_v56  ;;  %4419 = vmatpush.bf16.msrb.mxu2 %v7585_v46  ;;  %v9072_v58 = vld [vmem:[#allocation5 + $0x3d4] sm:$0xf] }
 0x248   :  { %v9428_v60 = vld [vmem:[#allocation5 + $0xeec] sm:$0xf0] }
 0x249   :  { %v7296_v50 = vld [vmem:[#allocation5 + $0xa10] sm:$0xf]  ;;  %v7905_v7 = vor.u32 %v9428_v60, %v7904_v59  ;;  %4441 = vmatpush.bf16.msra.mxu3 %v8225_v6  ;;  %v6498_v59 = vld [vmem:[#allocation5 + $0x3f0] sm:$0xf0] }
 0x24a   :  { %v9276_v1 = vld [vmem:[#allocation5 + $0xa2c] sm:$0xf0]  ;;  %v6501_v6 = vor.u32 %v9072_v58, %v6498_v59 }
 0x24b   :  { %v7552_v2 = vld [vmem:[#allocation5 + $0xc10] sm:$0xf]  ;;  %v7297_v18 = vor.u32 %v9276_v1, %v7296_v50  ;;  %4430 = vmatpush.bf16.msrb.mxu0 %v7905_v7  ;;  %v4201_v7 = vpop.f32.mrf.mxu3 }
 0x24c   :  { %v9340_v3 = vld [vmem:[#allocation5 + $0xc2c] sm:$0xf0] }
 0x24d   :  { %v8192_v19 = vld [vmem:[#allocation5 + $0x1110] sm:$0xf]  ;;  %v7553_v20 = vor.u32 %v9340_v3, %v7552_v2  ;;  %4407 = vmatpush.bf16.msrb.mxu1 %v7297_v18  ;;  %v8984_v2 = vld [vmem:[#allocation5 + $0x114] sm:$0xf]  ;;  %v4177_v18 = vpop.f32.mrf.mxu2 }
 0x24e   :  { %v9500_v14 = vld [vmem:[#allocation5 + $0x112c] sm:$0xf0]  ;;  %v6146_v3 = vld [vmem:[#allocation5 + $0x130] sm:$0xf0] }
 0x24f   :  { %v7872_v32 = vld [vmem:[#allocation5 + $0xe90] sm:$0xf]  ;;  %v8193_v25 = vor.u32 %v9500_v14, %v8192_v19  ;;  %4420 = vmatpush.bf16.msrb.mxu2 %v7553_v20  ;;  %v9064_v19 = vld [vmem:[#allocation5 + $0x394] sm:$0xf]  ;;  %v6149_v12 = vor.u32 %v8984_v2, %v6146_v3 }
 0x250   :  { %v9420_v11 = vld [vmem:[#allocation5 + $0xeac] sm:$0xf0]  ;;  %4408 = vmatmul.bf16.vlgmr.msrb.gmra.mxu1 %v9950_v41  ;;  %v6946_v3 = vld [vmem:[#allocation5 + $0x770] sm:$0xf0] }
 0x251   :  { %v8160_v15 = vld [vmem:[#allocation5 + $0x10d0] sm:$0xf]  ;;  %v7873_v27 = vor.u32 %v9420_v11, %v7872_v32  ;;  %4455 = vmatpush.bf16.msra.mxu1 %v3804_v21  ;;  %4442 = vmatpush.bf16.msra.mxu3 %v8193_v25  ;;  %v6754_v25 = vld [vmem:[#allocation5 + $0x5f0] sm:$0xf0] }
 0x252   :  { %v8416_v24 = vld [vmem:[#allocation5 + $0x12d0] sm:$0xf]  ;;  %4421 = vmatmul.bf16.vlgmr.msrb.gmra.mxu2 %v9944_v35  ;;  %v9264_v18 = vld [vmem:[#allocation5 + $0x9d4] sm:$0xf] }
 0x253   :  { %v9556_v28 = vld [vmem:[#allocation5 + $0x12ec] sm:$0xf0]  ;;  %4465 = vmatpush.bf16.msra.mxu2 %v6245_v22  ;;  %4431 = vmatpush.bf16.msrb.mxu0 %v7873_v27  ;;  %v8976_v22 = vld [vmem:[#allocation5 + $0xd4] sm:$0xf]  ;;  %v6469_v27 = vor.u32 %v9064_v19, %v6466_v8 }
 0x254   :  { %v9492_v31 = vld [vmem:[#allocation5 + $0x10ec] sm:$0xf0]  ;;  %v8417_v42 = vor.u32 %v9556_v28, %v8416_v24  ;;  %v9136_v24 = vld [vmem:[#allocation5 + $0x5d4] sm:$0xf]  ;;  %v4188_v28 = vpop.f32.mrf.mxu1 }
 0x255   :  { %v7840_v33 = vld [vmem:[#allocation5 + $0xe50] sm:$0xf]  ;;  %v8161_v48 = vor.u32 %v9492_v31, %v8160_v15  ;;  %v6114_v15 = vld [vmem:[#allocation5 + $0xf0] sm:$0xf0] }
 0x256   :  { %v9412_v34 = vld [vmem:[#allocation5 + $0xe6c] sm:$0xf0]  ;;  %4456 = vmatpush.bf16.msra.mxu1 %v8417_v42  ;;  %v6434_v31 = vld [vmem:[#allocation5 + $0x370] sm:$0xf0]  ;;  %v6117_v40 = vor.u32 %v8976_v22, %v6114_v15  ;;  %v4214_v22 = vpop.f32.mrf.mxu0 }
 0x257   :  { %v8128_v44 = vld [vmem:[#allocation5 + $0x1090] sm:$0xf]  ;;  %v7841_v49 = vor.u32 %v9412_v34, %v7840_v33  ;;  %4466 = vmatpush.bf16.msra.mxu2 %v6213_v43  ;;  %4443 = vmatpush.bf16.msra.mxu3 %v8161_v48  ;;  %v4189_v33 = vadd.f32 %v4188_v28, %v4176_v45  ;;  %v6757_v43 = vor.u32 %v9136_v24, %v6754_v25  ;;  %v6978_v45 = vld [vmem:[#allocation5 + $0x7b0] sm:$0xf0] }
 0x258   :  { %v8384_v13 = vld [vmem:[#allocation5 + $0x1290] sm:$0xf]  ;;  %v6437_v54 = vor.u32 %v9056_v30, %v6434_v31  ;;  %v8952_v19 = vld [vmem:[#allocation5 + $0x14] sm:$0xf] }
 0x259   :  { %v9548_v51 = vld [vmem:[#allocation5 + $0x12ac] sm:$0xf0]  ;;  %4432 = vmatpush.bf16.msrb.mxu0 %v7841_v49  ;;  %v10032_v48 = vadd.f32 %v4201_v7, %v4189_v33  ;;  %v7013_v49 = vor.u32 %v9200_v26, %v7010_v29  ;;  %v6914_v15 = vld [vmem:[#allocation5 + $0x730] sm:$0xf0] }
 0x25a   :  { %v9484_v55 = vld [vmem:[#allocation5 + $0x10ac] sm:$0xf0]  ;;  %v8385_v60 = vor.u32 %v9548_v51, %v8384_v13  ;;  %v6082_v13 = vld [vmem:[#allocation5 + $0xb0] sm:$0xf0] }
 0x25b   :  { %v7808_v56 = vld [vmem:[#allocation5 + $0xe10] sm:$0xf]  ;;  %v8129_v46 = vor.u32 %v9484_v55, %v8128_v44  ;;  %4467 = vmatpush.bf16.msra.mxu2 %v6181_v61  ;;  %v8968_v44 = vld [vmem:[#allocation5 + $0x94] sm:$0xf]  ;;  %v4203_v55 = vpop.f32.mrf.mxu3 }
 0x25c   :  { %v9404_v57 = vld [vmem:[#allocation5 + $0xe2c] sm:$0xf0]  ;;  %4457 = vmatpush.bf16.msra.mxu1 %v8385_v60  ;;  %v9128_v51 = vld [vmem:[#allocation5 + $0x594] sm:$0xf]  ;;  %v6085_v58 = vor.u32 %v8968_v44, %v6082_v13 }
 0x25d   :  { %v8352_v62 = vld [vmem:[#allocation5 + $0x1250] sm:$0xf]  ;;  %v7809_v50 = vor.u32 %v9404_v57, %v7808_v56  ;;  %4444 = vmatpush.bf16.msra.mxu3 %v8129_v46  ;;  %v9048_v56 = vld [vmem:[#allocation5 + $0x314] sm:$0xf]  ;;  %v6725_v59 = vor.u32 %v9128_v51, %v6722_v52 }
 0x25e   :  { %v9540_v1 = vld [vmem:[#allocation5 + $0x126c] sm:$0xf0]  ;;  %v6402_v57 = vld [vmem:[#allocation5 + $0x330] sm:$0xf0] }
 0x25f   :  { %v8096_v4 = vld [vmem:[#allocation5 + $0x1050] sm:$0xf]  ;;  %v8353_v10 = vor.u32 %v9540_v1, %v8352_v62  ;;  %4433 = vmatpush.bf16.msrb.mxu0 %v7809_v50  ;;  %4468 = vmatpush.bf16.msra.mxu2 %v6149_v12  ;;  %v8960_v60 = vld [vmem:[#allocation5 + $0x54] sm:$0xf]  ;;  %v6981_v62 = vor.u32 %v9192_v53, %v6978_v45  ;;  %v6405_v2 = vor.u32 %v9048_v56, %v6402_v57 }
 0x260   :  { %v9476_v5 = vld [vmem:[#allocation5 + $0x106c] sm:$0xf0]  ;;  %v6050_v61 = vld [vmem:[#allocation5 + $0x70] sm:$0xf0] }
 0x261   :  { %v8064_v14 = vld [vmem:[#allocation5 + $0x1010] sm:$0xf]  ;;  %v8097_v20 = vor.u32 %v9476_v5, %v8096_v4  ;;  %4458 = vmatpush.bf16.msra.mxu1 %v8353_v10  ;;  %v9120_v46 = vld [vmem:[#allocation5 + $0x554] sm:$0xf]  ;;  %v6053_v7 = vor.u32 %v8960_v60, %v6050_v61  ;;  %v4216_v60 = vpop.f32.mrf.mxu0 }
 0x262   :  { %v9468_v32 = vld [vmem:[#allocation5 + $0x102c] sm:$0xf0]  ;;  %4434 = vmatmul.bf16.vlgmr.msrb.gmra.mxu0 %v9948_v39  ;;  %v6690_v50 = vld [vmem:[#allocation5 + $0x570] sm:$0xf0] }
 0x263   :  { %v8320_v11 = vld [vmem:[#allocation5 + $0x1210] sm:$0xf]  ;;  %4478 = vmatpush.bf16.msra.mxu0 %v6501_v6  ;;  %4445 = vmatpush.bf16.msra.mxu3 %v8097_v20  ;;  %v8065_v42 = vor.u32 %v9468_v32, %v8064_v14  ;;  %v9184_v1 = vld [vmem:[#allocation5 + $0x754] sm:$0xf]  ;;  %v4190_v6 = vpop.f32.mrf.mxu1  ;;  %v6693_v8 = vor.u32 %v9120_v46, %v6690_v50 }
 0x264   :  { %v9532_v21 = vld [vmem:[#allocation5 + $0x122c] sm:$0xf0]  ;;  %4469 = vmatpush.bf16.msra.mxu2 %v6117_v40  ;;  %v9040_v4 = vld [vmem:[#allocation5 + $0x2d4] sm:$0xf]  ;;  %v6949_v32 = vor.u32 %v9184_v1, %v6946_v3 }
 0x265   :  { %v8321_v34 = vor.u32 %v9532_v21, %v8320_v11  ;;  %v6370_v5 = vld [vmem:[#allocation5 + $0x2f0] sm:$0xf0] }
 0x266   :  { %v6018_v10 = vld [vmem:[#allocation5 + $0x30] sm:$0xf0]  ;;  %v6373_v21 = vor.u32 %v9040_v4, %v6370_v5 }
 0x267   :  { %4479 = vmatpush.bf16.msra.mxu0 %v6469_v27  ;;  %4459 = vmatpush.bf16.msra.mxu1 %v8321_v34  ;;  %v9112_v12 = vld [vmem:[#allocation5 + $0x514] sm:$0xf]  ;;  %v6021_v26 = vor.u32 %v8952_v19, %v6018_v10 }
 0x268   :  { %4446 = vmatpush.bf16.msra.mxu3 %v8065_v42  ;;  %4470 = vmatpush.bf16.msra.mxu2 %v6085_v58  ;;  %v6658_v14 = vld [vmem:[#allocation5 + $0x530] sm:$0xf0] }
 0x269   :  { %v9176_v11 = vld [vmem:[#allocation5 + $0x714] sm:$0xf]  ;;  %v6661_v27 = vor.u32 %v9112_v12, %v6658_v14 }
 0x26a   :  { %8434 = vmatmul.msk.bf16.vlgmr.msra.gmra.mxu1 %vm3786_vm1, %v9956_v36  ;;  %v7266_v20 = vld [vmem:[#allocation5 + $0x9f0] sm:$0xf0]  ;;  %v6917_v31 = vor.u32 %v9176_v11, %v6914_v15 }
 0x26b   :  { %4491 = vmatpush.bf16.msrb.mxu1 %v6757_v43  ;;  %4480 = vmatpush.bf16.msra.mxu0 %v6437_v54  ;;  %v9032_v24 = vld [vmem:[#allocation5 + $0x294] sm:$0xf]  ;;  %v7269_v28 = vor.u32 %v9264_v18, %v7266_v20  ;;  %v4227_v54 = vpop.f32.mrf.mxu2 }
 0x26c   :  { %4504 = vmatpush.bf16.msrb.mxu3 %v7013_v49  ;;  %v6338_v25 = vld [vmem:[#allocation5 + $0x2b0] sm:$0xf0]  ;;  %4471 = vmatpush.bf16.msra.mxu2 %v6053_v7 }
 0x26d   :  { %4447 = vmatmul.bf16.vlgmr.msra.gmra.mxu3 %v9960_v23  ;;  %v9104_v29 = vld [vmem:[#allocation5 + $0x4d4] sm:$0xf]  ;;  %v6341_v42 = vor.u32 %v9032_v24, %v6338_v25 }
 0x26e   :  { %v6626_v30 = vld [vmem:[#allocation5 + $0x4f0] sm:$0xf0] }
 0x26f   :  { %4492 = vmatpush.bf16.msrb.mxu1 %v6725_v59  ;;  %4481 = vmatpush.bf16.msra.mxu0 %v6405_v2  ;;  %v9168_v33 = vld [vmem:[#allocation5 + $0x6d4] sm:$0xf]  ;;  %v6629_v49 = vor.u32 %v9104_v29, %v6626_v30  ;;  %v4228_v59 = vadd.f32 %v4227_v54, %v4214_v22 }
 0x270   :  { %4505 = vmatpush.bf16.msrb.mxu3 %v6981_v62  ;;  %v9256_v34 = vld [vmem:[#allocation5 + $0x994] sm:$0xf]  ;;  %4472 = vmatpush.bf16.msra.mxu2 %v6021_v26 }
 0x271   :  { %v7234_v40 = vld [vmem:[#allocation5 + $0x9b0] sm:$0xf0] }
 0x272   :  { %v6882_v43 = vld [vmem:[#allocation5 + $0x6f0] sm:$0xf0]  ;;  %v7237_v51 = vor.u32 %v9256_v34, %v7234_v40 }
 0x273   :  { %4493 = vmatpush.bf16.msrb.mxu1 %v6693_v8  ;;  %4482 = vmatpush.bf16.msra.mxu0 %v6373_v21  ;;  %v9024_v44 = vld [vmem:[#allocation5 + $0x254] sm:$0xf]  ;;  %v6885_v45 = vor.u32 %v9168_v33, %v6882_v43  ;;  %v4229_v26 = vpop.f32.mrf.mxu2  ;;  %v4253_v43 = vpop.f32.mrf.mxu1 }
 0x274   :  { %4506 = vmatpush.bf16.msrb.mxu3 %v6949_v32  ;;  %v6306_v13 = vld [vmem:[#allocation5 + $0x270] sm:$0xf0]  ;;  %4517 = vmatpush.bf16.msrb.mxu2 %v7269_v28  ;;  %v4240_v32 = vpop.f32.mrf.mxu3 }
 0x275   :  { %v9096_v52 = vld [vmem:[#allocation5 + $0x494] sm:$0xf]  ;;  %v6309_v58 = vor.u32 %v9024_v44, %v6306_v13  ;;  %4473 = vmatmul.bf16.vlgmr.msra.gmra.mxu2 %v9931_v9  ;;  %v4241_v25 = vadd.f32 %v4240_v32, %v4228_v59 }
 0x276   :  { %v6594_v53 = vld [vmem:[#allocation5 + $0x4b0] sm:$0xf0] }
 0x277   :  { %4494 = vmatpush.bf16.msrb.mxu1 %v6661_v27  ;;  %v9160_v55 = vld [vmem:[#allocation5 + $0x694] sm:$0xf]  ;;  %4483 = vmatpush.bf16.msra.mxu0 %v6341_v42  ;;  %v6597_v2 = vor.u32 %v9096_v52, %v6594_v53  ;;  %v4254_v52 = vadd.f32 %v4253_v43, %v4241_v25 }
 0x278   :  { %4507 = vmatpush.bf16.msrb.mxu3 %v6917_v31  ;;  %v9248_v56 = vld [vmem:[#allocation5 + $0x954] sm:$0xf]  ;;  %4518 = vmatpush.bf16.msrb.mxu2 %v7237_v51 }
 0x279   :  { %v7202_v57 = vld [vmem:[#allocation5 + $0x970] sm:$0xf0] }
 0x27a   :  { %v6850_v61 = vld [vmem:[#allocation5 + $0x6b0] sm:$0xf0]  ;;  %v7205_v3 = vor.u32 %v9248_v56, %v7202_v57 }
 0x27b   :  { %v9016_v62 = vld [vmem:[#allocation5 + $0x214] sm:$0xf]  ;;  %4495 = vmatpush.bf16.msrb.mxu1 %v6629_v49  ;;  %v6853_v5 = vor.u32 %v9160_v55, %v6850_v61  ;;  %4484 = vmatpush.bf16.msra.mxu0 %v6309_v58 }
 0x27c   :  { %v6274_v46 = vld [vmem:[#allocation5 + $0x230] sm:$0xf0]  ;;  %4508 = vmatpush.bf16.msrb.mxu3 %v6885_v45  ;;  %4519 = vmatpush.bf16.msrb.mxu2 %v7205_v3 }
 0x27d   :  { %v9328_v50 = vld [vmem:[#allocation5 + $0xbd4] sm:$0xf]  ;;  %v6277_v8 = vor.u32 %v9016_v62, %v6274_v46  ;;  %v4242_v62 = vpop.f32.mrf.mxu3 }
 0x27e   :  { %v7522_v1 = vld [vmem:[#allocation5 + $0xbf0] sm:$0xf0] }
 0x27f   :  { %v9088_v4 = vld [vmem:[#allocation5 + $0x454] sm:$0xf]  ;;  %v7525_v14 = vor.u32 %v9328_v50, %v7522_v1  ;;  %4496 = vmatpush.bf16.msrb.mxu1 %v6597_v2  ;;  %4485 = vmatpush.bf16.msra.mxu0 %v6277_v8 }
 0x280   :  { %v6562_v6 = vld [vmem:[#allocation5 + $0x470] sm:$0xf0]  ;;  %4509 = vmatpush.bf16.msrb.mxu3 %v6853_v5 }
 0x281   :  { %v9240_v7 = vld [vmem:[#allocation5 + $0x914] sm:$0xf]  ;;  %v6565_v20 = vor.u32 %v9088_v4, %v6562_v6 }
 0x282   :  { %v7170_v19 = vld [vmem:[#allocation5 + $0x930] sm:$0xf0]  ;;  %4486 = vmatmul.bf16.vlgmr.msra.gmra.mxu0 %v9935_v17 }
 0x283   :  { %v9152_v10 = vld [vmem:[#allocation5 + $0x654] sm:$0xf]  ;;  %v7173_v21 = vor.u32 %v9240_v7, %v7170_v19  ;;  %4530 = vmatpush.bf16.msrb.mxu0 %v7525_v14  ;;  %4497 = vmatpush.bf16.msrb.mxu1 %v6565_v20 }
 0x284   :  { %v6818_v12 = vld [vmem:[#allocation5 + $0x670] sm:$0xf0] }
 0x285   :  { %v9320_v11 = vld [vmem:[#allocation5 + $0xb94] sm:$0xf]  ;;  %v6821_v27 = vor.u32 %v9152_v10, %v6818_v12  ;;  %4520 = vmatpush.bf16.msrb.mxu2 %v7173_v21  ;;  %v4255_v12 = vpop.f32.mrf.mxu1 }
 0x286   :  { %v7490_v18 = vld [vmem:[#allocation5 + $0xbb0] sm:$0xf0] }
 0x287   :  { %v9080_v22 = vld [vmem:[#allocation5 + $0x414] sm:$0xf]  ;;  %v7493_v40 = vor.u32 %v9320_v11, %v7490_v18  ;;  %4510 = vmatpush.bf16.msrb.mxu3 %v6821_v27 }
 0x288   :  { %v6530_v15 = vld [vmem:[#allocation5 + $0x430] sm:$0xf0] }
 0x289   :  { %v9144_v24 = vld [vmem:[#allocation5 + $0x614] sm:$0xf]  ;;  %v6533_v49 = vor.u32 %v9080_v22, %v6530_v15  ;;  %4531 = vmatpush.bf16.msrb.mxu0 %v7493_v40 }
 0x28a   :  { %v6786_v28 = vld [vmem:[#allocation5 + $0x630] sm:$0xf0] }
 0x28b   :  { %v9232_v29 = vld [vmem:[#allocation5 + $0x8d4] sm:$0xf]  ;;  %v6789_v53 = vor.u32 %v9144_v24, %v6786_v28  ;;  %4498 = vmatpush.bf16.msrb.mxu1 %v6533_v49  ;;  %v4266_v28 = vpop.f32.mrf.mxu0 }
 0x28c   :  { %v7138_v30 = vld [vmem:[#allocation5 + $0x8f0] sm:$0xf0] }
 0x28d   :  { %v9392_v31 = vld [vmem:[#allocation5 + $0xdd4] sm:$0xf]  ;;  %v7141_v51 = vor.u32 %v9232_v29, %v7138_v30  ;;  %4511 = vmatpush.bf16.msrb.mxu3 %v6789_v53 }
 0x28e   :  { %v7778_v33 = vld [vmem:[#allocation5 + $0xdf0] sm:$0xf0]  ;;  %4499 = vmatmul.bf16.vlgmr.msrb.gmra.mxu1 %v9928_v63 }
 0x28f   :  { %v9456_v34 = vld [vmem:[#allocation5 + $0xfd4] sm:$0xf]  ;;  %v7781_v54 = vor.u32 %v9392_v31, %v7778_v33  ;;  %4521 = vmatpush.bf16.msrb.mxu2 %v7141_v51  ;;  %v4267_v31 = vadd.f32 %v4266_v28, %v4254_v52  ;;  %v9133_v28 = vld [vmem:[#allocation5 + $0x5b4] sm:$0xf0] }
 0x290   :  { %v8034_v42 = vld [vmem:[#allocation5 + $0xff0] sm:$0xf0]  ;;  %4512 = vmatmul.bf16.vlgmr.msrb.gmra.mxu3 %v9933_v16 }
 0x291   :  { %v9312_v44 = vld [vmem:[#allocation5 + $0xb54] sm:$0xf]  ;;  %v8037_v56 = vor.u32 %v9456_v34, %v8034_v42  ;;  %4543 = vmatpush.bf16.msra.mxu1 %v7781_v54 }
 0x292   :  { %v7458_v13 = vld [vmem:[#allocation5 + $0xb70] sm:$0xf0] }
 0x293   :  { %v9224_v45 = vld [vmem:[#allocation5 + $0x894] sm:$0xf]  ;;  %v7461_v60 = vor.u32 %v9312_v44, %v7458_v13  ;;  %4556 = vmatpush.bf16.msra.mxu3 %v8037_v56 }
 0x294   :  { %v7106_v55 = vld [vmem:[#allocation5 + $0x8b0] sm:$0xf0] }
 0x295   :  { %v9384_v57 = vld [vmem:[#allocation5 + $0xd94] sm:$0xf]  ;;  %v7109_v1 = vor.u32 %v9224_v45, %v7106_v55  ;;  %4532 = vmatpush.bf16.msrb.mxu0 %v7461_v60 }
 0x296   :  { %v7746_v58 = vld [vmem:[#allocation5 + $0xdb0] sm:$0xf0] }
 0x297   :  { %v9448_v59 = vld [vmem:[#allocation5 + $0xf94] sm:$0xf]  ;;  %v7749_v2 = vor.u32 %v9384_v57, %v7746_v58  ;;  %4522 = vmatpush.bf16.msrb.mxu2 %v7109_v1 }
 0x298   :  { %v8002_v61 = vld [vmem:[#allocation5 + $0xfb0] sm:$0xf0] }
 0x299   :  { %v9304_v46 = vld [vmem:[#allocation5 + $0xb14] sm:$0xf]  ;;  %v8005_v5 = vor.u32 %v9448_v59, %v8002_v61  ;;  %4544 = vmatpush.bf16.msra.mxu1 %v7749_v2  ;;  %v4279_v61 = vpop.f32.mrf.mxu2 }
 0x29a   :  { %v7426_v50 = vld [vmem:[#allocation5 + $0xb30] sm:$0xf0]  ;;  %v4280_v2 = vadd.f32 %v4279_v61, %v4267_v31 }
 0x29b   :  { %v9216_v3 = vld [vmem:[#allocation5 + $0x854] sm:$0xf]  ;;  %v7429_v8 = vor.u32 %v9304_v46, %v7426_v50  ;;  %4557 = vmatpush.bf16.msra.mxu3 %v8005_v5 }
 0x29c   :  { %v7074_v4 = vld [vmem:[#allocation5 + $0x870] sm:$0xf0] }
 0x29d   :  { %v9376_v6 = vld [vmem:[#allocation5 + $0xd54] sm:$0xf]  ;;  %v7077_v11 = vor.u32 %v9216_v3, %v7074_v4  ;;  %4533 = vmatpush.bf16.msrb.mxu0 %v7429_v8  ;;  %v4268_v3 = vpop.f32.mrf.mxu0  ;;  %v9141_v8 = vld [vmem:[#allocation5 + $0x5f4] sm:$0xf0] }
 0x29e   :  { %v7714_v7 = vld [vmem:[#allocation5 + $0xd70] sm:$0xf0] }
 0x29f   :  { %v9440_v19 = vld [vmem:[#allocation5 + $0xf54] sm:$0xf]  ;;  %v7717_v20 = vor.u32 %v9376_v6, %v7714_v7  ;;  %4523 = vmatpush.bf16.msrb.mxu2 %v7077_v11 }
 0x2a0   :  { %v7970_v10 = vld [vmem:[#allocation5 + $0xf70] sm:$0xf0] }
 0x2a1   :  { %v9296_v14 = vld [vmem:[#allocation5 + $0xad4] sm:$0xf]  ;;  %v7973_v24 = vor.u32 %v9440_v19, %v7970_v10  ;;  %4545 = vmatpush.bf16.msra.mxu1 %v7717_v20  ;;  %v6760_v19 = vld [vmem:[#allocation5 + $0x5d8] sm:$0xf] }
 0x2a2   :  { %v7394_v32 = vld [vmem:[#allocation5 + $0xaf0] sm:$0xf0] }
 0x2a3   :  { %v9208_v18 = vld [vmem:[#allocation5 + $0x814] sm:$0xf]  ;;  %v7397_v29 = vor.u32 %v9296_v14, %v7394_v32  ;;  %4558 = vmatpush.bf16.msra.mxu3 %v7973_v24 }
 0x2a4   :  { %v7042_v21 = vld [vmem:[#allocation5 + $0x830] sm:$0xf0] }
 0x2a5   :  { %v9368_v22 = vld [vmem:[#allocation5 + $0xd14] sm:$0xf]  ;;  %v7045_v40 = vor.u32 %v9208_v18, %v7042_v21  ;;  %4534 = vmatpush.bf16.msrb.mxu0 %v7397_v29  ;;  %v2559_v21 = vunpack.c.h.b16 %v10024_v37 }
 0x2a6   :  { %v7682_v15 = vld [vmem:[#allocation5 + $0xd30] sm:$0xf0] }
 0x2a7   :  { %v9432_v25 = vld [vmem:[#allocation5 + $0xf14] sm:$0xf]  ;;  %v7685_v42 = vor.u32 %v9368_v22, %v7682_v15  ;;  %4524 = vmatpush.bf16.msrb.mxu2 %v7045_v40  ;;  %v4281_v40 = vpop.f32.mrf.mxu2 }
 0x2a8   :  { %v9520_v26 = vld [vmem:[#allocation5 + $0x11d4] sm:$0xf]  ;;  %v8989_v40 = vld [vmem:[#allocation5 + $0x134] sm:$0xf0] }
 0x2a9   :  { %v8290_v27 = vld [vmem:[#allocation5 + $0x11f0] sm:$0xf0]  ;;  %4546 = vmatpush.bf16.msra.mxu1 %v7685_v42 }
 0x2aa   :  { %v7938_v30 = vld [vmem:[#allocation5 + $0xf30] sm:$0xf0]  ;;  %v8293_v43 = vor.u32 %v9520_v26, %v8290_v27  ;;  %4525 = vmatmul.bf16.vlgmr.msrb.gmra.mxu2 %v9946_v38  ;;  %v4292_v26 = vpop.f32.mrf.mxu3  ;;  %v6728_v27 = vld [vmem:[#allocation5 + $0x598] sm:$0xf] }
 0x2ab   :  { %v9288_v33 = vld [vmem:[#allocation5 + $0xa94] sm:$0xf]  ;;  %v7941_v49 = vor.u32 %v9432_v25, %v7938_v30  ;;  %v6761_v25 = vor.u32 %v9141_v8, %v6760_v19  ;;  %v4293_v29 = vadd.f32 %v4292_v26, %v4280_v2  ;;  %v9005_v2 = vld [vmem:[#allocation5 + $0x1b4] sm:$0xf0] }
 0x2ac   :  { %v7362_v34 = vld [vmem:[#allocation5 + $0xab0] sm:$0xf0]  ;;  %4569 = vmatpush.bf16.msra.mxu2 %v8293_v43 }
 0x2ad   :  { %v9360_v44 = vld [vmem:[#allocation5 + $0xcd4] sm:$0xf]  ;;  %v7365_v45 = vor.u32 %v9288_v33, %v7362_v34  ;;  %4559 = vmatpush.bf16.msra.mxu3 %v7941_v49 }
 0x2ae   :  { %v7650_v13 = vld [vmem:[#allocation5 + $0xcf0] sm:$0xf0] }
 0x2af   :  { %v9424_v51 = vld [vmem:[#allocation5 + $0xed4] sm:$0xf]  ;;  %v7653_v52 = vor.u32 %v9360_v44, %v7650_v13  ;;  %4535 = vmatpush.bf16.msrb.mxu0 %v7365_v45  ;;  %v3175_v13 = vpack.c.b16 %v2559_v21, %v2559_v21  ;;  %v4305_v45 = vpop.f32.mrf.mxu1 }
 0x2b0   :  { %v9512_v53 = vld [vmem:[#allocation5 + $0x1194] sm:$0xf] }
 0x2b1   :  { %v8258_v54 = vld [vmem:[#allocation5 + $0x11b0] sm:$0xf0]  ;;  %4547 = vmatpush.bf16.msra.mxu1 %v7653_v52 }
 0x2b2   :  { %v7906_v55 = vld [vmem:[#allocation5 + $0xef0] sm:$0xf0]  ;;  %v8261_v58 = vor.u32 %v9512_v53, %v8258_v54  ;;  %v9013_v53 = vld [vmem:[#allocation5 + $0x1f4] sm:$0xf0]  ;;  %v6729_v54 = vor.u32 %v9133_v28, %v6728_v27 }
 0x2b3   :  { %v9280_v56 = vld [vmem:[#allocation5 + $0xa54] sm:$0xf]  ;;  %v7909_v62 = vor.u32 %v9424_v51, %v7906_v55  ;;  %v6248_v51 = vld [vmem:[#allocation5 + $0x1d8] sm:$0xf] }
 0x2b4   :  { %v7330_v57 = vld [vmem:[#allocation5 + $0xa70] sm:$0xf0]  ;;  %4570 = vmatpush.bf16.msra.mxu2 %v8261_v58  ;;  %v6696_v55 = vld [vmem:[#allocation5 + $0x558] sm:$0xf]  ;;  %v6249_v61 = vor.u32 %v9013_v53, %v6248_v51 }
 0x2b5   :  { %v9352_v59 = vld [vmem:[#allocation5 + $0xc94] sm:$0xf]  ;;  %v7333_v4 = vor.u32 %v9280_v56, %v7330_v57  ;;  %4560 = vmatpush.bf16.msra.mxu3 %v7909_v62  ;;  %v9125_v56 = vld [vmem:[#allocation5 + $0x574] sm:$0xf0]  ;;  %v4306_v57 = vadd.f32 %v4305_v45, %v4293_v29 }
 0x2b6   :  { %v7618_v60 = vld [vmem:[#allocation5 + $0xcb0] sm:$0xf0]  ;;  %v6697_v3 = vor.u32 %v9125_v56, %v6696_v55  ;;  %v9101_v51 = vld [vmem:[#allocation5 + $0x4b4] sm:$0xf0] }
 0x2b7   :  { %v9416_v46 = vld [vmem:[#allocation5 + $0xe94] sm:$0xf]  ;;  %v7621_v10 = vor.u32 %v9352_v59, %v7618_v60  ;;  %4536 = vmatpush.bf16.msrb.mxu0 %v7333_v4  ;;  %v3807_v60 = vsel %vm3790_vm0, %v3175_v13, 0 }
 0x2b8   :  { %v9504_v50 = vld [vmem:[#allocation5 + $0x1154] sm:$0xf] }
 0x2b9   :  { %v8226_v1 = vld [vmem:[#allocation5 + $0x1170] sm:$0xf0]  ;;  %4548 = vmatpush.bf16.msra.mxu1 %v7621_v10 }
 0x2ba   :  { %v7874_v5 = vld [vmem:[#allocation5 + $0xeb0] sm:$0xf0]  ;;  %v8229_v12 = vor.u32 %v9504_v50, %v8226_v1  ;;  %v6216_v1 = vld [vmem:[#allocation5 + $0x198] sm:$0xf] }
 0x2bb   :  { %v9272_v6 = vld [vmem:[#allocation5 + $0xa14] sm:$0xf]  ;;  %v7877_v32 = vor.u32 %v9416_v46, %v7874_v5  ;;  %v4294_v5 = vpop.f32.mrf.mxu3  ;;  %v6217_v8 = vor.u32 %v9005_v2, %v6216_v1  ;;  %v9093_v1 = vld [vmem:[#allocation5 + $0x474] sm:$0xf0] }
 0x2bc   :  { %v7298_v7 = vld [vmem:[#allocation5 + $0xa30] sm:$0xf0]  ;;  %4571 = vmatpush.bf16.msra.mxu2 %v8229_v12  ;;  %v6504_v2 = vld [vmem:[#allocation5 + $0x3d8] sm:$0xf] }
 0x2bd   :  { %v9344_v14 = vld [vmem:[#allocation5 + $0xc54] sm:$0xf]  ;;  %v7301_v22 = vor.u32 %v9272_v6, %v7298_v7  ;;  %4561 = vmatpush.bf16.msra.mxu3 %v7877_v32  ;;  %v6664_v6 = vld [vmem:[#allocation5 + $0x518] sm:$0xf] }
 0x2be   :  { %v7586_v11 = vld [vmem:[#allocation5 + $0xc70] sm:$0xf0]  ;;  %v9117_v7 = vld [vmem:[#allocation5 + $0x534] sm:$0xf0] }
 0x2bf   :  { %v9496_v18 = vld [vmem:[#allocation5 + $0x1114] sm:$0xf]  ;;  %v7589_v30 = vor.u32 %v9344_v14, %v7586_v11  ;;  %4537 = vmatpush.bf16.msrb.mxu0 %v7301_v22  ;;  %v4331_v14 = vpop.f32.mrf.mxu2  ;;  %v6665_v21 = vor.u32 %v9117_v7, %v6664_v6  ;;  %v6088_v6 = vld [vmem:[#allocation5 + $0x98] sm:$0xf] }
 0x2c0   :  { %v8194_v20 = vld [vmem:[#allocation5 + $0x1130] sm:$0xf0] }
 0x2c1   :  { %v9408_v15 = vld [vmem:[#allocation5 + $0xe54] sm:$0xf]  ;;  %v8197_v31 = vor.u32 %v9496_v18, %v8194_v20  ;;  %4549 = vmatpush.bf16.msra.mxu1 %v7589_v30  ;;  %v6184_v18 = vld [vmem:[#allocation5 + $0x158] sm:$0xf] }
 0x2c2   :  { %v7842_v24 = vld [vmem:[#allocation5 + $0xe70] sm:$0xf0]  ;;  %4538 = vmatmul.bf16.vlgmr.msrb.gmra.mxu0 %v9950_v41  ;;  %v8997_v20 = vld [vmem:[#allocation5 + $0x174] sm:$0xf0] }
 0x2c3   :  { %v9336_v33 = vld [vmem:[#allocation5 + $0xc14] sm:$0xf]  ;;  %v7845_v42 = vor.u32 %v9408_v15, %v7842_v24  ;;  %4621 = vmatpush.bf16.msra.mxu0 %v6761_v25  ;;  %4572 = vmatpush.bf16.msra.mxu2 %v8197_v31  ;;  %v6632_v15 = vld [vmem:[#allocation5 + $0x4d8] sm:$0xf]  ;;  %v4307_v25 = vpop.f32.mrf.mxu1  ;;  %v6185_v28 = vor.u32 %v8997_v20, %v6184_v18 }
 0x2c4   :  { %v7554_v34 = vld [vmem:[#allocation5 + $0xc30] sm:$0xf0]  ;;  %v9109_v24 = vld [vmem:[#allocation5 + $0x4f4] sm:$0xf0] }
 0x2c5   :  { %v9400_v43 = vld [vmem:[#allocation5 + $0xe14] sm:$0xf]  ;;  %v7557_v52 = vor.u32 %v9336_v33, %v7554_v34  ;;  %4562 = vmatpush.bf16.msra.mxu3 %v7845_v42  ;;  %v6152_v31 = vld [vmem:[#allocation5 + $0x118] sm:$0xf]  ;;  %v4318_v33 = vpop.f32.mrf.mxu0 }
 0x2c6   :  { %v9488_v37 = vld [vmem:[#allocation5 + $0x10d4] sm:$0xf]  ;;  %v7016_v42 = vld [vmem:[#allocation5 + $0x7d8] sm:$0xf]  ;;  %v6153_v45 = vor.u32 %v8989_v40, %v6152_v31 }
 0x2c7   :  { %v8162_v44 = vld [vmem:[#allocation5 + $0x10f0] sm:$0xf0]  ;;  %4622 = vmatpush.bf16.msra.mxu0 %v6729_v54  ;;  %4550 = vmatpush.bf16.msra.mxu1 %v7557_v52  ;;  %v6120_v52 = vld [vmem:[#allocation5 + $0xd8] sm:$0xf] }
 0x2c8   :  { %v7810_v49 = vld [vmem:[#allocation5 + $0xe30] sm:$0xf0]  ;;  %v8165_v58 = vor.u32 %v9488_v37, %v8162_v44  ;;  %v6633_v37 = vor.u32 %v9109_v24, %v6632_v15  ;;  %v4319_v44 = vadd.f32 %v4318_v33, %v4306_v57  ;;  %v6536_v18 = vld [vmem:[#allocation5 + $0x418] sm:$0xf] }
 0x2c9   :  { %v7813_v59 = vor.u32 %v9400_v43, %v7810_v49  ;;  %v9480_v62 = vld [vmem:[#allocation5 + $0x1094] sm:$0xf]  ;;  %v9205_v43 = vld [vmem:[#allocation5 + $0x7f4] sm:$0xf0] }
 0x2ca   :  { %v8130_v46 = vld [vmem:[#allocation5 + $0x10b0] sm:$0xf0]  ;;  %4573 = vmatpush.bf16.msra.mxu2 %v8165_v58  ;;  %4551 = vmatmul.bf16.vlgmr.msra.gmra.mxu1 %v9944_v35  ;;  %v6600_v49 = vld [vmem:[#allocation5 + $0x498] sm:$0xf]  ;;  %v10047_v54 = vadd.f32 %v4331_v14, %v4319_v44  ;;  %v7017_v55 = vor.u32 %v9205_v43, %v7016_v42  ;;  %v4333_v58 = vpop.f32.mrf.mxu2  ;;  %v4344_v42 = vpop.f32.mrf.mxu3 }
 0x2cb   :  { %v9552_v50 = vld [vmem:[#allocation5 + $0x12d4] sm:$0xf]  ;;  %v8133_v19 = vor.u32 %v9480_v62, %v8130_v46  ;;  %4563 = vmatpush.bf16.msra.mxu3 %v7813_v59  ;;  %4595 = vmatpush.bf16.msrb.mxu1 %v6249_v61  ;;  %v6984_v61 = vld [vmem:[#allocation5 + $0x798] sm:$0xf]  ;;  %v6601_v57 = vor.u32 %v9101_v51, %v6600_v49 }
 0x2cc   :  { %v8418_v4 = vld [vmem:[#allocation5 + $0x12f0] sm:$0xf0]  ;;  %4623 = vmatpush.bf16.msra.mxu0 %v6697_v3  ;;  %v9197_v62 = vld [vmem:[#allocation5 + $0x7b4] sm:$0xf0] }
 0x2cd   :  { %v9472_v10 = vld [vmem:[#allocation5 + $0x1054] sm:$0xf]  ;;  %v8421_v32 = vor.u32 %v9552_v50, %v8418_v4  ;;  %v6568_v50 = vld [vmem:[#allocation5 + $0x458] sm:$0xf]  ;;  %v6985_v5 = vor.u32 %v9197_v62, %v6984_v61  ;;  %v4320_v14 = vpop.f32.mrf.mxu0  ;;  %v4357_v61 = vpop.f32.mrf.mxu1 }
 0x2ce   :  { %v8098_v12 = vld [vmem:[#allocation5 + $0x1070] sm:$0xf0]  ;;  %4564 = vmatmul.bf16.vlgmr.msra.gmra.mxu3 %v9948_v39  ;;  %4574 = vmatpush.bf16.msra.mxu2 %v8133_v19  ;;  %v9077_v3 = vld [vmem:[#allocation5 + $0x3f4] sm:$0xf0] }
 0x2cf   :  { %4585 = vmatpush.bf16.msrb.mxu3 %v3807_v60  ;;  %v9544_v11 = vld [vmem:[#allocation5 + $0x1294] sm:$0xf]  ;;  %v8101_v26 = vor.u32 %v9472_v10, %v8098_v12  ;;  %4596 = vmatpush.bf16.msrb.mxu1 %v6217_v8  ;;  %v8981_v60 = vld [vmem:[#allocation5 + $0xf4] sm:$0xf0]  ;;  %v6569_v12 = vor.u32 %v9093_v1, %v6568_v50  ;;  %v4358_v50 = vadd.f32 %v4357_v61, %v4344_v42 }
 0x2d0   :  { %v8386_v22 = vld [vmem:[#allocation5 + $0x12b0] sm:$0xf0]  ;;  %4624 = vmatpush.bf16.msra.mxu0 %v6665_v21  ;;  %v6121_v4 = vor.u32 %v8981_v60, %v6120_v52  ;;  %v8973_v19 = vld [vmem:[#allocation5 + $0xb4] sm:$0xf0] }
 0x2d1   :  { %v9464_v27 = vld [vmem:[#allocation5 + $0x1014] sm:$0xf]  ;;  %v8389_v34 = vor.u32 %v9544_v11, %v8386_v22  ;;  %v6472_v8 = vld [vmem:[#allocation5 + $0x398] sm:$0xf]  ;;  %v6089_v24 = vor.u32 %v8973_v19, %v6088_v6 }
 0x2d2   :  { %v8066_v29 = vld [vmem:[#allocation5 + $0x1030] sm:$0xf0]  ;;  %4575 = vmatpush.bf16.msra.mxu2 %v8101_v26  ;;  %v6952_v10 = vld [vmem:[#allocation5 + $0x758] sm:$0xf] }
 0x2d3   :  { %v9536_v30 = vld [vmem:[#allocation5 + $0x1254] sm:$0xf]  ;;  %4586 = vmatpush.bf16.msrb.mxu3 %v8421_v32  ;;  %v8069_v53 = vor.u32 %v9464_v27, %v8066_v29  ;;  %4597 = vmatpush.bf16.msrb.mxu1 %v6185_v28  ;;  %v6505_v32 = vor.u32 %v9077_v3, %v6504_v2  ;;  %v9189_v11 = vld [vmem:[#allocation5 + $0x774] sm:$0xf0] }
 0x2d4   :  { %v8354_v13 = vld [vmem:[#allocation5 + $0x1270] sm:$0xf0]  ;;  %4625 = vmatpush.bf16.msra.mxu0 %v6633_v37  ;;  %v9085_v20 = vld [vmem:[#allocation5 + $0x434] sm:$0xf0]  ;;  %v6953_v25 = vor.u32 %v9189_v11, %v6952_v10 }
 0x2d5   :  { %v9528_v56 = vld [vmem:[#allocation5 + $0x1214] sm:$0xf]  ;;  %v8357_v59 = vor.u32 %v9536_v30, %v8354_v13  ;;  %v9069_v21 = vld [vmem:[#allocation5 + $0x3b4] sm:$0xf0]  ;;  %v6537_v28 = vor.u32 %v9085_v20, %v6536_v18 }
 0x2d6   :  { %v8322_v46 = vld [vmem:[#allocation5 + $0x1230] sm:$0xf0]  ;;  %4576 = vmatpush.bf16.msra.mxu2 %v8069_v53  ;;  %v7784_v22 = vld [vmem:[#allocation5 + $0xdd8] sm:$0xf]  ;;  %v6473_v29 = vor.u32 %v9069_v21, %v6472_v8 }
 0x2d7   :  { %4587 = vmatpush.bf16.msrb.mxu3 %v8389_v34  ;;  %4598 = vmatpush.bf16.msrb.mxu1 %v6153_v45  ;;  %v8325_v7 = vor.u32 %v9528_v56, %v8322_v46  ;;  %v9397_v15 = vld [vmem:[#allocation5 + $0xdf4] sm:$0xf0] }
 0x2d8   :  { %4626 = vmatpush.bf16.msra.mxu0 %v6601_v57  ;;  %v6056_v26 = vld [vmem:[#allocation5 + $0x58] sm:$0xf]  ;;  %v7785_v34 = vor.u32 %v9397_v15, %v7784_v22  ;;  %v4370_v22 = vpop.f32.mrf.mxu2 }
 0x2d9   :  { %4577 = vmatmul.bf16.vlgmr.msra.gmra.mxu2 %v9960_v23  ;;  %v8965_v27 = vld [vmem:[#allocation5 + $0x74] sm:$0xf0] }
 0x2da   :  { %4634 = vmatpush.bf16.msrb.mxu2 %v7017_v55  ;;  %v6440_v30 = vld [vmem:[#allocation5 + $0x358] sm:$0xf]  ;;  %v6057_v44 = vor.u32 %v8965_v27, %v6056_v26  ;;  %v4371_v27 = vadd.f32 %v4370_v22, %v4358_v50 }
 0x2db   :  { %4588 = vmatpush.bf16.msrb.mxu3 %v8357_v59  ;;  %4599 = vmatpush.bf16.msrb.mxu1 %v6121_v4  ;;  %v6920_v31 = vld [vmem:[#allocation5 + $0x718] sm:$0xf] }
 0x2dc   :  { %4627 = vmatpush.bf16.msra.mxu0 %v6569_v12  ;;  %v9181_v33 = vld [vmem:[#allocation5 + $0x734] sm:$0xf0]  ;;  %v4346_v12 = vpop.f32.mrf.mxu3 }
 0x2dd   :  { %v9061_v40 = vld [vmem:[#allocation5 + $0x374] sm:$0xf0]  ;;  %v6921_v49 = vor.u32 %v9181_v33, %v6920_v31 }
 0x2de   :  { %4635 = vmatpush.bf16.msrb.mxu2 %v6985_v5  ;;  %v7752_v43 = vld [vmem:[#allocation5 + $0xd98] sm:$0xf]  ;;  %v6441_v55 = vor.u32 %v9061_v40, %v6440_v30  ;;  %v4359_v30 = vpop.f32.mrf.mxu1 }
 0x2df   :  { %4589 = vmatpush.bf16.msrb.mxu3 %v8325_v7  ;;  %v9389_v37 = vld [vmem:[#allocation5 + $0xdb4] sm:$0xf0]  ;;  %4600 = vmatpush.bf16.msrb.mxu1 %v6089_v24  ;;  %v9009_v30 = vld [vmem:[#allocation5 + $0x1dc] sm:$0xf] }
 0x2e0   :  { %v6024_v13 = vld [vmem:[#allocation5 + $0x18] sm:$0xf]  ;;  %4628 = vmatpush.bf16.msra.mxu0 %v6537_v28  ;;  %v7753_v59 = vor.u32 %v9389_v37, %v7752_v43 }
 0x2e1   :  { %v8957_v51 = vld [vmem:[#allocation5 + $0x34] sm:$0xf0] }
 0x2e2   :  { %8435 = vmatmul.msk.bf16.vlgmr.msrb.gmra.mxu3 %vm3786_vm1, %v9956_v36  ;;  %4636 = vmatpush.bf16.msrb.mxu2 %v6953_v25  ;;  %v6408_v53 = vld [vmem:[#allocation5 + $0x318] sm:$0xf]  ;;  %v6025_v46 = vor.u32 %v8957_v51, %v6024_v13  ;;  %v4383_v51 = vpop.f32.mrf.mxu0 }
 0x2e3   :  { %4608 = vmatpush.bf16.msra.mxu3 %v6505_v32  ;;  %v7272_v45 = vld [vmem:[#allocation5 + $0x9d8] sm:$0xf]  ;;  %4601 = vmatpush.bf16.msrb.mxu1 %v6057_v44 }
 0x2e4   :  { %v9269_v56 = vld [vmem:[#allocation5 + $0x9f4] sm:$0xf0]  ;;  %4673 = vmatpush.bf16.msrb.mxu0 %v7785_v34 }
 0x2e5   :  { %v6888_v52 = vld [vmem:[#allocation5 + $0x6d8] sm:$0xf]  ;;  %4629 = vmatmul.bf16.vlgmr.msra.gmra.mxu0 %v9928_v63  ;;  %v7273_v1 = vor.u32 %v9269_v56, %v7272_v45 }
 0x2e6   :  { %v9173_v58 = vld [vmem:[#allocation5 + $0x6f4] sm:$0xf0]  ;;  %4637 = vmatpush.bf16.msrb.mxu2 %v6921_v49 }
 0x2e7   :  { %4609 = vmatpush.bf16.msra.mxu3 %v6473_v29  ;;  %v9053_v60 = vld [vmem:[#allocation5 + $0x334] sm:$0xf0]  ;;  %v6889_v2 = vor.u32 %v9173_v58, %v6888_v52  ;;  %4602 = vmatpush.bf16.msrb.mxu1 %v6025_v46  ;;  %v10054_v52 = vadd.f32 %v4383_v51, %v4371_v27 }
 0x2e8   :  { %v7720_v62 = vld [vmem:[#allocation5 + $0xd58] sm:$0xf]  ;;  %v6409_v5 = vor.u32 %v9053_v60, %v6408_v53  ;;  %4674 = vmatpush.bf16.msrb.mxu0 %v7753_v59 }
 0x2e9   :  { %v9381_v57 = vld [vmem:[#allocation5 + $0xd74] sm:$0xf0] }
 0x2ea   :  { %v6376_v3 = vld [vmem:[#allocation5 + $0x2d8] sm:$0xf]  ;;  %v7721_v8 = vor.u32 %v9381_v57, %v7720_v62  ;;  %4638 = vmatpush.bf16.msrb.mxu2 %v6889_v2  ;;  %4603 = vmatmul.bf16.vlgmr.msrb.gmra.mxu1 %v9931_v9  ;;  %v4372_v57 = vpop.f32.mrf.mxu2 }
 0x2eb   :  { %v7240_v4 = vld [vmem:[#allocation5 + $0x998] sm:$0xf]  ;;  %4610 = vmatpush.bf16.msra.mxu3 %v6441_v55  ;;  %4647 = vmatpush.bf16.msra.mxu1 %v7273_v1 }
 0x2ec   :  { %v9261_v6 = vld [vmem:[#allocation5 + $0x9b4] sm:$0xf0]  ;;  %4675 = vmatpush.bf16.msrb.mxu0 %v7721_v8 }
 0x2ed   :  { %v6856_v7 = vld [vmem:[#allocation5 + $0x698] sm:$0xf]  ;;  %v7241_v11 = vor.u32 %v9261_v6, %v7240_v4 }
 0x2ee   :  { %v9165_v19 = vld [vmem:[#allocation5 + $0x6b4] sm:$0xf0] }
 0x2ef   :  { %v9045_v10 = vld [vmem:[#allocation5 + $0x2f4] sm:$0xf0]  ;;  %v6857_v18 = vor.u32 %v9165_v19, %v6856_v7  ;;  %4611 = vmatpush.bf16.msra.mxu3 %v6409_v5  ;;  %4648 = vmatpush.bf16.msra.mxu1 %v7241_v11 }
 0x2f0   :  { %v7688_v14 = vld [vmem:[#allocation5 + $0xd18] sm:$0xf]  ;;  %v6377_v15 = vor.u32 %v9045_v10, %v6376_v3 }
 0x2f1   :  { %v9373_v32 = vld [vmem:[#allocation5 + $0xd34] sm:$0xf0]  ;;  %4639 = vmatpush.bf16.msrb.mxu2 %v6857_v18 }
 0x2f2   :  { %v6344_v20 = vld [vmem:[#allocation5 + $0x298] sm:$0xf]  ;;  %v7689_v28 = vor.u32 %v9373_v32, %v7688_v14 }
 0x2f3   :  { %v7208_v21 = vld [vmem:[#allocation5 + $0x958] sm:$0xf]  ;;  %4612 = vmatpush.bf16.msra.mxu3 %v6377_v15 }
 0x2f4   :  { %v9253_v24 = vld [vmem:[#allocation5 + $0x974] sm:$0xf0]  ;;  %4676 = vmatpush.bf16.msrb.mxu0 %v7689_v28 }
 0x2f5   :  { %v6824_v25 = vld [vmem:[#allocation5 + $0x658] sm:$0xf]  ;;  %v7209_v34 = vor.u32 %v9253_v24, %v7208_v21 }
 0x2f6   :  { %v9157_v26 = vld [vmem:[#allocation5 + $0x674] sm:$0xf0] }
 0x2f7   :  { %v9037_v29 = vld [vmem:[#allocation5 + $0x2b4] sm:$0xf0]  ;;  %v6825_v40 = vor.u32 %v9157_v26, %v6824_v25  ;;  %4649 = vmatpush.bf16.msra.mxu1 %v7209_v34 }
 0x2f8   :  { %v7656_v31 = vld [vmem:[#allocation5 + $0xcd8] sm:$0xf]  ;;  %v6345_v37 = vor.u32 %v9037_v29, %v6344_v20  ;;  %v4385_v20 = vpop.f32.mrf.mxu0 }
 0x2f9   :  { %v9365_v33 = vld [vmem:[#allocation5 + $0xcf4] sm:$0xf0]  ;;  %4640 = vmatpush.bf16.msrb.mxu2 %v6825_v40 }
 0x2fa   :  { %v6312_v42 = vld [vmem:[#allocation5 + $0x258] sm:$0xf]  ;;  %v7657_v53 = vor.u32 %v9365_v33, %v7656_v31  ;;  %4613 = vmatpush.bf16.msra.mxu3 %v6345_v37  ;;  %v6250_v31 = vld [vmem:[#allocation5 + $0x1f8] sm:$0xf0] }
 0x2fb   :  { %v7176_v43 = vld [vmem:[#allocation5 + $0x918] sm:$0xf] }
 0x2fc   :  { %v9245_v44 = vld [vmem:[#allocation5 + $0x934] sm:$0xf0]  ;;  %4677 = vmatpush.bf16.msrb.mxu0 %v7657_v53  ;;  %v6253_v53 = vor.u32 %v9009_v30, %v6250_v31 }
 0x2fd   :  { %v6792_v13 = vld [vmem:[#allocation5 + $0x618] sm:$0xf]  ;;  %v7177_v60 = vor.u32 %v9245_v44, %v7176_v43 }
 0x2fe   :  { %v9149_v49 = vld [vmem:[#allocation5 + $0x634] sm:$0xf0] }
 0x2ff   :  { %v9029_v45 = vld [vmem:[#allocation5 + $0x274] sm:$0xf0]  ;;  %v6793_v61 = vor.u32 %v9149_v49, %v6792_v13  ;;  %4650 = vmatpush.bf16.msra.mxu1 %v7177_v60  ;;  %v4396_v13 = vpop.f32.mrf.mxu3 }
 0x300   :  { %v8040_v55 = vld [vmem:[#allocation5 + $0xfd8] sm:$0xf]  ;;  %v6313_v46 = vor.u32 %v9029_v45, %v6312_v42  ;;  %v4397_v45 = vadd.f32 %v4396_v13, %v10054_v52 }
 0x301   :  { %v9461_v56 = vld [vmem:[#allocation5 + $0xff4] sm:$0xf0]  ;;  %4641 = vmatpush.bf16.msrb.mxu2 %v6793_v61 }
 0x302   :  { %v7624_v58 = vld [vmem:[#allocation5 + $0xc98] sm:$0xf]  ;;  %v8041_v50 = vor.u32 %v9461_v56, %v8040_v55  ;;  %4614 = vmatpush.bf16.msra.mxu3 %v6313_v46  ;;  %v9001_v56 = vld [vmem:[#allocation5 + $0x19c] sm:$0xf] }
 0x303   :  { %v9357_v59 = vld [vmem:[#allocation5 + $0xcb4] sm:$0xf0] }
 0x304   :  { %v6280_v62 = vld [vmem:[#allocation5 + $0x218] sm:$0xf]  ;;  %v7625_v7 = vor.u32 %v9357_v59, %v7624_v58  ;;  %4642 = vmatmul.bf16.vlgmr.msrb.gmra.mxu2 %v9933_v16  ;;  %v6218_v58 = vld [vmem:[#allocation5 + $0x1b8] sm:$0xf0] }
 0x305   :  { %v9021_v1 = vld [vmem:[#allocation5 + $0x234] sm:$0xf0]  ;;  %4686 = vmatpush.bf16.msra.mxu2 %v8041_v50  ;;  %v6221_v52 = vor.u32 %v9001_v56, %v6218_v58  ;;  %v4435_v58 = vpop.f32.mrf.mxu0 }
 0x306   :  { %v7144_v2 = vld [vmem:[#allocation5 + $0x8d8] sm:$0xf]  ;;  %v6281_v14 = vor.u32 %v9021_v1, %v6280_v62  ;;  %4678 = vmatpush.bf16.msrb.mxu0 %v7625_v7  ;;  %v8993_v7 = vld [vmem:[#allocation5 + $0x15c] sm:$0xf] }
 0x307   :  { %v9237_v3 = vld [vmem:[#allocation5 + $0x8f4] sm:$0xf0] }
 0x308   :  { %v7528_v4 = vld [vmem:[#allocation5 + $0xbd8] sm:$0xf]  ;;  %v7145_v12 = vor.u32 %v9237_v3, %v7144_v2  ;;  %4615 = vmatpush.bf16.msra.mxu3 %v6281_v14  ;;  %v4409_v2 = vpop.f32.mrf.mxu1 }
 0x309   :  { %v8008_v5 = vld [vmem:[#allocation5 + $0xf98] sm:$0xf] }
 0x30a   :  { %v9453_v6 = vld [vmem:[#allocation5 + $0xfb4] sm:$0xf0]  ;;  %4651 = vmatpush.bf16.msra.mxu1 %v7145_v12 }
 0x30b   :  { %v9333_v19 = vld [vmem:[#allocation5 + $0xbf4] sm:$0xf0]  ;;  %v8009_v32 = vor.u32 %v9453_v6, %v8008_v5  ;;  %4616 = vmatmul.bf16.vlgmr.msra.gmra.mxu3 %v9935_v17  ;;  %v4410_v5 = vadd.f32 %v4409_v2, %v4397_v45  ;;  %v6506_v2 = vld [vmem:[#allocation5 + $0x3f8] sm:$0xf0] }
 0x30c   :  { %v7592_v8 = vld [vmem:[#allocation5 + $0xc58] sm:$0xf]  ;;  %v7529_v21 = vor.u32 %v9333_v19, %v7528_v4  ;;  %v6186_v19 = vld [vmem:[#allocation5 + $0x178] sm:$0xf0] }
 0x30d   :  { %v9349_v10 = vld [vmem:[#allocation5 + $0xc74] sm:$0xf0]  ;;  %4687 = vmatpush.bf16.msra.mxu2 %v8009_v32 }
 0x30e   :  { %v7112_v11 = vld [vmem:[#allocation5 + $0x898] sm:$0xf]  ;;  %v7593_v25 = vor.u32 %v9349_v10, %v7592_v8  ;;  %4660 = vmatpush.bf16.msrb.mxu3 %v7529_v21 }
 0x30f   :  { %v9229_v18 = vld [vmem:[#allocation5 + $0x8b4] sm:$0xf0] }
 0x310   :  { %v7496_v22 = vld [vmem:[#allocation5 + $0xb98] sm:$0xf]  ;;  %v7113_v29 = vor.u32 %v9229_v18, %v7112_v11  ;;  %4679 = vmatpush.bf16.msrb.mxu0 %v7593_v25  ;;  %v6154_v25 = vld [vmem:[#allocation5 + $0x138] sm:$0xf0] }
 0x311   :  { %v7976_v15 = vld [vmem:[#allocation5 + $0xf58] sm:$0xf] }
 0x312   :  { %v9445_v24 = vld [vmem:[#allocation5 + $0xf74] sm:$0xf0]  ;;  %4652 = vmatpush.bf16.msra.mxu1 %v7113_v29 }
 0x313   :  { %v9325_v26 = vld [vmem:[#allocation5 + $0xbb4] sm:$0xf0]  ;;  %v7977_v33 = vor.u32 %v9445_v24, %v7976_v15  ;;  %v6189_v15 = vor.u32 %v8993_v7, %v6186_v19  ;;  %v8985_v24 = vld [vmem:[#allocation5 + $0x11c] sm:$0xf] }
 0x314   :  { %v7560_v27 = vld [vmem:[#allocation5 + $0xc18] sm:$0xf]  ;;  %v7497_v42 = vor.u32 %v9325_v26, %v7496_v22  ;;  %v4398_v22 = vpop.f32.mrf.mxu3  ;;  %v4422_v26 = vpop.f32.mrf.mxu2  ;;  %v6157_v13 = vor.u32 %v8985_v24, %v6154_v25  ;;  %v6058_v24 = vld [vmem:[#allocation5 + $0x78] sm:$0xf0] }
 0x315   :  { %v9341_v28 = vld [vmem:[#allocation5 + $0xc34] sm:$0xf0]  ;;  %4688 = vmatpush.bf16.msra.mxu2 %v7977_v33  ;;  %v4423_v30 = vadd.f32 %v4422_v26, %v4410_v5 }
 0x316   :  { %v7080_v34 = vld [vmem:[#allocation5 + $0x858] sm:$0xf]  ;;  %v7561_v44 = vor.u32 %v9341_v28, %v7560_v27  ;;  %4661 = vmatpush.bf16.msrb.mxu3 %v7497_v42 }
 0x317   :  { %v9221_v40 = vld [vmem:[#allocation5 + $0x874] sm:$0xf0] }
 0x318   :  { %v7944_v43 = vld [vmem:[#allocation5 + $0xf18] sm:$0xf]  ;;  %v7081_v55 = vor.u32 %v9221_v40, %v7080_v34  ;;  %4680 = vmatpush.bf16.msrb.mxu0 %v7561_v44 }
 0x319   :  { %v9437_v37 = vld [vmem:[#allocation5 + $0xf34] sm:$0xf0] }
 0x31a   :  { %v7464_v49 = vld [vmem:[#allocation5 + $0xb58] sm:$0xf]  ;;  %v7945_v59 = vor.u32 %v9437_v37, %v7944_v43  ;;  %4653 = vmatpush.bf16.msra.mxu1 %v7081_v55  ;;  %v4411_v37 = vpop.f32.mrf.mxu1 }
 0x31b   :  { %v9317_v51 = vld [vmem:[#allocation5 + $0xb74] sm:$0xf0]  ;;  %4681 = vmatmul.bf16.vlgmr.msrb.gmra.mxu0 %v9944_v35  ;;  %v8953_v37 = vld [vmem:[#allocation5 + $0x1c] sm:$0xf] }
 0x31c   :  { %v7048_v60 = vld [vmem:[#allocation5 + $0x818] sm:$0xf]  ;;  %v7465_v57 = vor.u32 %v9317_v51, %v7464_v49  ;;  %4725 = vmatpush.bf16.msra.mxu0 %v6253_v53  ;;  %4689 = vmatpush.bf16.msra.mxu2 %v7945_v59  ;;  %v8977_v49 = vld [vmem:[#allocation5 + $0xdc] sm:$0xf]  ;;  %v4424_v7 = vpop.f32.mrf.mxu2 }
 0x31d   :  { %v9213_v61 = vld [vmem:[#allocation5 + $0x834] sm:$0xf0]  ;;  %v6122_v51 = vld [vmem:[#allocation5 + $0xf8] sm:$0xf0] }
 0x31e   :  { %v8296_v62 = vld [vmem:[#allocation5 + $0x11d8] sm:$0xf]  ;;  %v7049_v6 = vor.u32 %v9213_v61, %v7048_v60  ;;  %4662 = vmatpush.bf16.msrb.mxu3 %v7465_v57 }
 0x31f   :  { %v9525_v46 = vld [vmem:[#allocation5 + $0x11f4] sm:$0xf0] }
 0x320   :  { %v7912_v50 = vld [vmem:[#allocation5 + $0xed8] sm:$0xf]  ;;  %v8297_v8 = vor.u32 %v9525_v46, %v8296_v62  ;;  %4726 = vmatpush.bf16.msra.mxu0 %v6221_v52  ;;  %4654 = vmatpush.bf16.msra.mxu1 %v7049_v6  ;;  %v10064_v46 = vadd.f32 %v4435_v58, %v4423_v30  ;;  %v6090_v52 = vld [vmem:[#allocation5 + $0xb8] sm:$0xf0]  ;;  %v4448_v58 = vpop.f32.mrf.mxu3 }
 0x321   :  { %v9429_v1 = vld [vmem:[#allocation5 + $0xef4] sm:$0xf0] }
 0x322   :  { %v7432_v3 = vld [vmem:[#allocation5 + $0xb18] sm:$0xf]  ;;  %v7913_v10 = vor.u32 %v9429_v1, %v7912_v50  ;;  %v9073_v1 = vld [vmem:[#allocation5 + $0x3dc] sm:$0xf]  ;;  %v4461_v22 = vpop.f32.mrf.mxu1 }
 0x323   :  { %v9309_v4 = vld [vmem:[#allocation5 + $0xb34] sm:$0xf0]  ;;  %4655 = vmatmul.bf16.vlgmr.msra.gmra.mxu1 %v9946_v38 }
 0x324   :  { %v8264_v12 = vld [vmem:[#allocation5 + $0x1198] sm:$0xf]  ;;  %v7433_v14 = vor.u32 %v9309_v4, %v7432_v3  ;;  %4699 = vmatpush.bf16.msrb.mxu1 %v8297_v8  ;;  %4690 = vmatpush.bf16.msra.mxu2 %v7913_v10  ;;  %v6125_v3 = vor.u32 %v8977_v49, %v6122_v51  ;;  %v8969_v4 = vld [vmem:[#allocation5 + $0x9c] sm:$0xf]  ;;  %v6509_v8 = vor.u32 %v9073_v1, %v6506_v2 }
 0x325   :  { %v9517_v32 = vld [vmem:[#allocation5 + $0x11b4] sm:$0xf0]  ;;  %4727 = vmatpush.bf16.msra.mxu0 %v6189_v15  ;;  %v8961_v15 = vld [vmem:[#allocation5 + $0x5c] sm:$0xf] }
 0x326   :  { %v7880_v11 = vld [vmem:[#allocation5 + $0xe98] sm:$0xf]  ;;  %v8265_v27 = vor.u32 %v9517_v32, %v8264_v12  ;;  %4663 = vmatpush.bf16.msrb.mxu3 %v7433_v14  ;;  %v9265_v51 = vld [vmem:[#allocation5 + $0x9dc] sm:$0xf] }
 0x327   :  { %v9421_v18 = vld [vmem:[#allocation5 + $0xeb4] sm:$0xf0] }
 0x328   :  { %v7400_v20 = vld [vmem:[#allocation5 + $0xad8] sm:$0xf]  ;;  %v7881_v28 = vor.u32 %v9421_v18, %v7880_v11  ;;  %4700 = vmatpush.bf16.msrb.mxu1 %v8265_v27  ;;  %v9065_v18 = vld [vmem:[#allocation5 + $0x39c] sm:$0xf] }
 0x329   :  { %v9301_v21 = vld [vmem:[#allocation5 + $0xaf4] sm:$0xf0]  ;;  %4728 = vmatpush.bf16.msra.mxu0 %v6157_v13  ;;  %v6026_v13 = vld [vmem:[#allocation5 + $0x38] sm:$0xf0] }
 0x32a   :  { %v8232_v29 = vld [vmem:[#allocation5 + $0x1158] sm:$0xf]  ;;  %v7401_v31 = vor.u32 %v9301_v21, %v7400_v20  ;;  %4691 = vmatpush.bf16.msra.mxu2 %v7881_v28  ;;  %v6474_v20 = vld [vmem:[#allocation5 + $0x3b8] sm:$0xf0]  ;;  %v6093_v21 = vor.u32 %v8969_v4, %v6090_v52 }
 0x32b   :  { %v9509_v33 = vld [vmem:[#allocation5 + $0x1174] sm:$0xf0]  ;;  %v6477_v28 = vor.u32 %v9065_v18, %v6474_v20  ;;  %v9257_v52 = vld [vmem:[#allocation5 + $0x99c] sm:$0xf] }
 0x32c   :  { %v7848_v34 = vld [vmem:[#allocation5 + $0xe58] sm:$0xf]  ;;  %v8233_v53 = vor.u32 %v9509_v33, %v8232_v29  ;;  %4664 = vmatpush.bf16.msrb.mxu3 %v7401_v31  ;;  %v4437_v31 = vpop.f32.mrf.mxu0 }
 0x32d   :  { %v9413_v40 = vld [vmem:[#allocation5 + $0xe74] sm:$0xf0]  ;;  %4729 = vmatpush.bf16.msra.mxu0 %v6125_v3  ;;  %v4463_v3 = vpop.f32.mrf.mxu1  ;;  %v6986_v31 = vld [vmem:[#allocation5 + $0x7b8] sm:$0xf0] }
 0x32e   :  { %v7368_v42 = vld [vmem:[#allocation5 + $0xa98] sm:$0xf]  ;;  %v7849_v45 = vor.u32 %v9413_v40, %v7848_v34  ;;  %4701 = vmatpush.bf16.msrb.mxu1 %v8233_v53  ;;  %v9057_v34 = vld [vmem:[#allocation5 + $0x35c] sm:$0xf] }
 0x32f   :  { %v9293_v43 = vld [vmem:[#allocation5 + $0xab4] sm:$0xf0]  ;;  %v6442_v40 = vld [vmem:[#allocation5 + $0x378] sm:$0xf0] }
 0x330   :  { %v10061_v44 = vld [vmem:[#allocation5 + $0x1318] sm:$0x33]  ;;  %v7369_v59 = vor.u32 %v9293_v43, %v7368_v42  ;;  %4692 = vmatpush.bf16.msra.mxu2 %v7849_v45  ;;  %v6061_v42 = vor.u32 %v8961_v15, %v6058_v24  ;;  %v6445_v45 = vor.u32 %v9057_v34, %v6442_v40  ;;  %v4450_v40 = vpop.f32.mrf.mxu3 }
 0x331   :  { %v7336_v55 = vld [vmem:[#allocation5 + $0xa58] sm:$0xf]  ;;  %v2560_v57 = vunpack.c.l.b16 %v10061_v44  ;;  %4730 = vmatpush.bf16.msra.mxu0 %v6093_v21  ;;  %v7274_v53 = vld [vmem:[#allocation5 + $0x9f8] sm:$0xf0] }
 0x332   :  { %v8200_v56 = vld [vmem:[#allocation5 + $0x1118] sm:$0xf]  ;;  %4665 = vmatpush.bf16.msrb.mxu3 %v7369_v59  ;;  %v7277_v2 = vor.u32 %v9265_v51, %v7274_v53  ;;  %v9249_v15 = vld [vmem:[#allocation5 + $0x95c] sm:$0xf] }
 0x333   :  { %v9501_v60 = vld [vmem:[#allocation5 + $0x1134] sm:$0xf0]  ;;  %v3176_v32 = vpack.c.b16 %v2560_v57, %v2560_v57  ;;  %v4449_v57 = vadd.f32 %v4448_v58, %v10064_v46  ;;  %v7018_v46 = vld [vmem:[#allocation5 + $0x7f8] sm:$0xf0] }
 0x334   :  { %v7816_v61 = vld [vmem:[#allocation5 + $0xe18] sm:$0xf]  ;;  %v8201_v5 = vor.u32 %v9501_v60, %v8200_v56  ;;  %v9049_v60 = vld [vmem:[#allocation5 + $0x31c] sm:$0xf] }
 0x335   :  { %v9405_v62 = vld [vmem:[#allocation5 + $0xe34] sm:$0xf0]  ;;  %v3810_v27 = vsel %vm3790_vm0, %v3176_v32, 0  ;;  %4731 = vmatpush.bf16.msra.mxu0 %v6061_v42  ;;  %v6378_v32 = vld [vmem:[#allocation5 + $0x2f8] sm:$0xf0] }
 0x336   :  { %v9285_v50 = vld [vmem:[#allocation5 + $0xa74] sm:$0xf0]  ;;  %v7817_v6 = vor.u32 %v9405_v62, %v7816_v61  ;;  %4702 = vmatpush.bf16.msrb.mxu1 %v8201_v5  ;;  %v6410_v61 = vld [vmem:[#allocation5 + $0x338] sm:$0xf0]  ;;  %v6029_v62 = vor.u32 %v8953_v37, %v6026_v13 }
 0x337   :  { %v7337_v19 = vor.u32 %v9285_v50, %v7336_v55  ;;  %v7304_v10 = vld [vmem:[#allocation5 + $0xa18] sm:$0xf]  ;;  %v7242_v5 = vld [vmem:[#allocation5 + $0x9b8] sm:$0xf0]  ;;  %v6413_v7 = vor.u32 %v9049_v60, %v6410_v61 }
 0x338   :  { %v8168_v12 = vld [vmem:[#allocation5 + $0x10d8] sm:$0xf]  ;;  %4693 = vmatpush.bf16.msra.mxu2 %v7817_v6  ;;  %v10070_v6 = vadd.f32 %v4461_v22, %v4449_v57  ;;  %v7245_v21 = vor.u32 %v9257_v52, %v7242_v5  ;;  %v7210_v24 = vld [vmem:[#allocation5 + $0x978] sm:$0xf0] }
 0x339   :  { %v9493_v14 = vld [vmem:[#allocation5 + $0x10f4] sm:$0xf0]  ;;  %4666 = vmatpush.bf16.msrb.mxu3 %v7337_v19  ;;  %4732 = vmatpush.bf16.msra.mxu0 %v6029_v62  ;;  %v6346_v34 = vld [vmem:[#allocation5 + $0x2b8] sm:$0xf0]  ;;  %v7213_v13 = vor.u32 %v9249_v15, %v7210_v24 }
 0x33a   :  { %v9277_v11 = vld [vmem:[#allocation5 + $0xa34] sm:$0xf0]  ;;  %v8169_v25 = vor.u32 %v9493_v14, %v8168_v12  ;;  %v9041_v14 = vld [vmem:[#allocation5 + $0x2dc] sm:$0xf]  ;;  %vm4859_vm3 = vcmp.ne.f32.partialorder %v10070_v6, %v10070_v6 }
 0x33b   :  { %v7305_v26 = vor.u32 %v9277_v11, %v7304_v10  ;;  %v8136_v29 = vld [vmem:[#allocation5 + $0x1098] sm:$0xf]  ;;  %4694 = vmatmul.bf16.vlgmr.msra.gmra.mxu2 %v9948_v39  ;;  %v9201_v10 = vld [vmem:[#allocation5 + $0x7dc] sm:$0xf]  ;;  %v4867_v11 = vand.u32 2147483647, %v10070_v6 }
 0x33c   :  { %4738 = vmatpush.bf16.msrb.mxu2 %v6509_v8  ;;  %v9485_v30 = vld [vmem:[#allocation5 + $0x10b4] sm:$0xf0]  ;;  %4703 = vmatpush.bf16.msrb.mxu1 %v8169_v25  ;;  %v9137_v37 = vld [vmem:[#allocation5 + $0x5dc] sm:$0xf] }
 0x33d   :  { %v8424_v33 = vld [vmem:[#allocation5 + $0x12d8] sm:$0xf]  ;;  %v8137_v49 = vor.u32 %v9485_v30, %v8136_v29  ;;  %4667 = vmatpush.bf16.msrb.mxu3 %v7305_v26  ;;  %4777 = vmatpush.bf16.msrb.mxu0 %v7277_v2  ;;  %v4871_v25 = vsub.f32 0.0, %v4867_v11  ;;  %v7021_v26 = vor.u32 %v9201_v10, %v7018_v46  ;;  %v9193_v29 = vld [vmem:[#allocation5 + $0x79c] sm:$0xf] }
 0x33e   :  { %v9557_v43 = vld [vmem:[#allocation5 + $0x12f4] sm:$0xf0]  ;;  %4733 = vmatmul.bf16.vlgmr.msra.gmra.mxu0 %v9931_v9  ;;  %v9241_v51 = vld [vmem:[#allocation5 + $0x91c] sm:$0xf] }
 0x33f   :  { %v8104_v55 = vld [vmem:[#allocation5 + $0x1058] sm:$0xf]  ;;  %v8425_v59 = vor.u32 %v9557_v43, %v8424_v33  ;;  %v9033_v33 = vld [vmem:[#allocation5 + $0x29c] sm:$0xf]  ;;  %v4875_v42 = vmul.f32 1.442695, %v4871_v25 }
 0x340   :  { %4739 = vmatpush.bf16.msrb.mxu2 %v6477_v28  ;;  %v9477_v56 = vld [vmem:[#allocation5 + $0x1074] sm:$0xf0]  ;;  %4668 = vmatmul.bf16.vlgmr.msrb.gmra.mxu3 %v9950_v41  ;;  %v7178_v53 = vld [vmem:[#allocation5 + $0x938] sm:$0xf0]  ;;  %v6349_v9 = vor.u32 %v9033_v33, %v6346_v34 }
 0x341   :  { %4715 = vmatpush.bf16.msra.mxu3 %v3810_v27  ;;  %v8392_v50 = vld [vmem:[#allocation5 + $0x1298] sm:$0xf]  ;;  %4704 = vmatpush.bf16.msrb.mxu1 %v8137_v49  ;;  %v8105_v4 = vor.u32 %v9477_v56, %v8104_v55  ;;  %v6381_v27 = vor.u32 %v9041_v14, %v6378_v32  ;;  %v6762_v49 = vld [vmem:[#allocation5 + $0x5f8] sm:$0xf0]  ;;  %9696 = vpow2.f32 %v4875_v42  ;;  %v10074_v55 = vpop.f32.mrf.mxu2 }
 0x342   :  { %v9549_v1 = vld [vmem:[#allocation5 + $0x12b4] sm:$0xf0]  ;;  %4778 = vmatpush.bf16.msrb.mxu0 %v7245_v21  ;;  %v9185_v58 = vld [vmem:[#allocation5 + $0x75c] sm:$0xf]  ;;  %v6765_v60 = vor.u32 %v9137_v37, %v6762_v49 }
 0x343   :  { %v8072_v19 = vld [vmem:[#allocation5 + $0x1018] sm:$0xf]  ;;  %v8393_v12 = vor.u32 %v9549_v1, %v8392_v50  ;;  %v9025_v61 = vld [vmem:[#allocation5 + $0x25c] sm:$0xf]  ;;  %v7181_v50 = vor.u32 %v9241_v51, %v7178_v53 }
 0x344   :  { %4740 = vmatpush.bf16.msrb.mxu2 %v6445_v45  ;;  %v9469_v8 = vld [vmem:[#allocation5 + $0x1034] sm:$0xf0]  ;;  %v6989_v45 = vor.u32 %v9193_v29, %v6986_v31  ;;  %v6314_v62 = vld [vmem:[#allocation5 + $0x278] sm:$0xf0] }
 0x345   :  { %4716 = vmatpush.bf16.msra.mxu3 %v8425_v59  ;;  %v8360_v18 = vld [vmem:[#allocation5 + $0x1258] sm:$0xf]  ;;  %4705 = vmatpush.bf16.msrb.mxu1 %v8105_v4  ;;  %v8073_v22 = vor.u32 %v9469_v8, %v8072_v19  ;;  %v6954_v59 = vld [vmem:[#allocation5 + $0x778] sm:$0xf0]  ;;  %v6317_v52 = vor.u32 %v9025_v61, %v6314_v62  ;;  %v10077_v8 = vpop.f32.mrf.mxu0 }
 0x346   :  { %v9541_v20 = vld [vmem:[#allocation5 + $0x1274] sm:$0xf0]  ;;  %v9129_v57 = vld [vmem:[#allocation5 + $0x59c] sm:$0xf]  ;;  %4779 = vmatpush.bf16.msrb.mxu0 %v7213_v13  ;;  %v6957_v4 = vor.u32 %v9185_v58, %v6954_v59  ;;  %v10085_v13 = vpop.f32.mrf.mxu1 }
 0x347   :  { %v8328_v28 = vld [vmem:[#allocation5 + $0x1218] sm:$0xf]  ;;  %v8361_v30 = vor.u32 %v9541_v20, %v8360_v18  ;;  %v6730_v1 = vld [vmem:[#allocation5 + $0x5b8] sm:$0xf0]  ;;  %v10079_v10 = vpop.eup %9696 }
 0x348   :  { %4741 = vmatpush.bf16.msrb.mxu2 %v6413_v7  ;;  %v9533_v43 = vld [vmem:[#allocation5 + $0x1234] sm:$0xf0]  ;;  %v9233_v2 = vld [vmem:[#allocation5 + $0x8dc] sm:$0xf]  ;;  %v4883_v18 = vadd.f32 1.0, %v10079_v10 }
 0x349   :  { %4717 = vmatpush.bf16.msra.mxu3 %v8393_v12  ;;  %4706 = vmatpush.bf16.msrb.mxu1 %v8073_v22  ;;  %v8329_v56 = vor.u32 %v9533_v43, %v8328_v28  ;;  %v7146_v3 = vld [vmem:[#allocation5 + $0x8f8] sm:$0xf0]  ;;  %v6733_v12 = vor.u32 %v9129_v57, %v6730_v1  ;;  %v4886_v22 = vmul.f32 -0.5, %v10079_v10 }
 0x34a   :  { %v9177_v5 = vld [vmem:[#allocation5 + $0x71c] sm:$0xf]  ;;  %4780 = vmatpush.bf16.msrb.mxu0 %v7181_v50  ;;  %v7149_v11 = vor.u32 %v9233_v2, %v7146_v3  ;;  %9698 = vlog2.f32 %v4883_v18  ;;  %v4855_v2 = vmax.f32 %v10070_v6, 0.0 }
 0x34b   :  { %v6922_v7 = vld [vmem:[#allocation5 + $0x738] sm:$0xf0]  ;;  %v4887_v49 = vadd.f32 1.0, %v4886_v22  ;;  %v10091_v22 = vpop.f32.mrf.mxu3 }
 0x34c   :  { %4742 = vmatpush.bf16.msrb.mxu2 %v6381_v27  ;;  %4707 = vmatmul.bf16.vlgmr.msrb.gmra.mxu1 %v9960_v23  ;;  %v9017_v19 = vld [vmem:[#allocation5 + $0x21c] sm:$0xf]  ;;  %v6925_v15 = vor.u32 %v9177_v5, %v6922_v7 }
 0x34d   :  { %4764 = vmatpush.bf16.msra.mxu1 %v7021_v26  ;;  %4718 = vmatpush.bf16.msra.mxu3 %v8361_v30  ;;  %v6282_v46 = vld [vmem:[#allocation5 + $0x238] sm:$0xf0]  ;;  %v4476_v26 = vpop.f32.mrf.mxu2  ;;  %v4489_v59 = vpop.f32.mrf.mxu0  ;;  %v4888_v7 = vmul.f32 %v10079_v10, %v4887_v49 }
 0x34e   :  { %v9121_v14 = vld [vmem:[#allocation5 + $0x55c] sm:$0xf]  ;;  %v6285_v27 = vor.u32 %v9017_v19, %v6282_v46  ;;  %4781 = vmatpush.bf16.msrb.mxu0 %v7149_v11 }
 0x34f   :  { %v6698_v32 = vld [vmem:[#allocation5 + $0x578] sm:$0xf0] }
 0x350   :  { %4743 = vmatpush.bf16.msrb.mxu2 %v6349_v9  ;;  %v9329_v20 = vld [vmem:[#allocation5 + $0xbdc] sm:$0xf]  ;;  %v6701_v30 = vor.u32 %v9121_v14, %v6698_v32  ;;  %v4889_v9 = vand.u32 2147483647, %v10079_v10  ;;  %v9699_v1 = vpop.eup %9698 }
 0x351   :  { %4765 = vmatpush.bf16.msra.mxu1 %v6989_v45  ;;  %4719 = vmatpush.bf16.msra.mxu3 %v8329_v56  ;;  %v7530_v21 = vld [vmem:[#allocation5 + $0xbf8] sm:$0xf0]  ;;  %v4885_v5 = vmul.f32 0.6931472, %v9699_v1 }
 0x352   :  { %v9225_v24 = vld [vmem:[#allocation5 + $0x89c] sm:$0xf]  ;;  %v7533_v31 = vor.u32 %v9329_v20, %v7530_v21  ;;  %vm4890_vm2 = vcmp.lt.f32.partialorder %v4889_v9, 0.0004427343 }
 0x353   :  { %v7114_v25 = vld [vmem:[#allocation5 + $0x8b8] sm:$0xf0]  ;;  %v4891_v11 = vsel %vm4890_vm2, %v4888_v7, %v4885_v5  ;;  %v4515_v1 = vpop.f32.mrf.mxu3 }
 0x354   :  { %8436 = vmatmul.msk.bf16.vlgmr.msra.gmra.mxu3 %vm3786_vm1, %v9956_v36  ;;  %4744 = vmatpush.bf16.msrb.mxu2 %v6317_v52  ;;  %v9169_v28 = vld [vmem:[#allocation5 + $0x6dc] sm:$0xf]  ;;  %v7117_v37 = vor.u32 %v9225_v24, %v7114_v25 }
 0x355   :  { %4751 = vmatpush.bf16.msrb.mxu3 %v6765_v60  ;;  %4766 = vmatpush.bf16.msra.mxu1 %v6957_v4  ;;  %v6890_v29 = vld [vmem:[#allocation5 + $0x6f8] sm:$0xf0] }
 0x356   :  { %v9113_v33 = vld [vmem:[#allocation5 + $0x51c] sm:$0xf]  ;;  %v6893_v51 = vor.u32 %v9169_v28, %v6890_v29  ;;  %4782 = vmatpush.bf16.msrb.mxu0 %v7117_v37 }
 0x357   :  { %v6666_v34 = vld [vmem:[#allocation5 + $0x538] sm:$0xf0] }
 0x358   :  { %v9321_v40 = vld [vmem:[#allocation5 + $0xb9c] sm:$0xf]  ;;  %4745 = vmatpush.bf16.msrb.mxu2 %v6285_v27  ;;  %v6669_v60 = vor.u32 %v9113_v33, %v6666_v34 }
 0x359   :  { %4752 = vmatpush.bf16.msrb.mxu3 %v6733_v12  ;;  %v7498_v42 = vld [vmem:[#allocation5 + $0xbb8] sm:$0xf0]  ;;  %4767 = vmatpush.bf16.msra.mxu1 %v6925_v15  ;;  %v4919_v15 = vadd.f32 %v4891_v11, %v4855_v2 }
 0x35a   :  { %v9161_v43 = vld [vmem:[#allocation5 + $0x69c] sm:$0xf]  ;;  %v7501_v61 = vor.u32 %v9321_v40, %v7498_v42 }
 0x35b   :  { %v9217_v53 = vld [vmem:[#allocation5 + $0x85c] sm:$0xf]  ;;  %4746 = vmatmul.bf16.vlgmr.msrb.gmra.mxu2 %v9935_v17  ;;  %v4502_v17 = vpop.f32.mrf.mxu1 }
 0x35c   :  { %v7082_v45 = vld [vmem:[#allocation5 + $0x878] sm:$0xf0]  ;;  %4790 = vmatpush.bf16.msra.mxu2 %v7533_v31 }
 0x35d   :  { %v6858_v56 = vld [vmem:[#allocation5 + $0x6b8] sm:$0xf0]  ;;  %4753 = vmatpush.bf16.msrb.mxu3 %v6701_v30  ;;  %v7085_v52 = vor.u32 %v9217_v53, %v7082_v45  ;;  %4768 = vmatpush.bf16.msra.mxu1 %v6893_v51  ;;  %v4923_v30 = vsel %vm4859_vm3, %v10070_v6, %v4919_v15 }
 0x35e   :  { %v9105_v58 = vld [vmem:[#allocation5 + $0x4dc] sm:$0xf]  ;;  %v6861_v19 = vor.u32 %v9161_v43, %v6858_v56  ;;  %v10097_v40 = vadd.f32 %v4923_v30, %v9999_v0 }
 0x35f   :  { %v6634_v62 = vld [vmem:[#allocation5 + $0x4f8] sm:$0xf0]  ;;  %4783 = vmatpush.bf16.msrb.mxu0 %v7085_v52 }
 0x360   :  { %v9313_v57 = vld [vmem:[#allocation5 + $0xb5c] sm:$0xf]  ;;  %4791 = vmatpush.bf16.msra.mxu2 %v7501_v61  ;;  %v6637_v18 = vor.u32 %v9105_v58, %v6634_v62 }
 0x361   :  { %v7466_v50 = vld [vmem:[#allocation5 + $0xb78] sm:$0xf0]  ;;  %4754 = vmatpush.bf16.msrb.mxu3 %v6669_v60  ;;  %4769 = vmatpush.bf16.msra.mxu1 %v6861_v19 }
 0x362   :  { %v9153_v3 = vld [vmem:[#allocation5 + $0x65c] sm:$0xf]  ;;  %v7469_v20 = vor.u32 %v9313_v57, %v7466_v50 }
 0x363   :  { %v6826_v4 = vld [vmem:[#allocation5 + $0x678] sm:$0xf0] }
 0x364   :  { %v9209_v12 = vld [vmem:[#allocation5 + $0x81c] sm:$0xf]  ;;  %v6829_v27 = vor.u32 %v9153_v3, %v6826_v4  ;;  %4792 = vmatpush.bf16.msra.mxu2 %v7469_v20 }
 0x365   :  { %v7050_v46 = vld [vmem:[#allocation5 + $0x838] sm:$0xf0]  ;;  %4755 = vmatpush.bf16.msrb.mxu3 %v6637_v18 }
 0x366   :  { %v9521_v14 = vld [vmem:[#allocation5 + $0x11dc] sm:$0xf]  ;;  %v7053_v26 = vor.u32 %v9209_v12, %v7050_v46  ;;  %4770 = vmatpush.bf16.msra.mxu1 %v6829_v27  ;;  %v10100_v12 = vpop.f32.mrf.mxu2 }
 0x367   :  { %v8298_v32 = vld [vmem:[#allocation5 + $0x11f8] sm:$0xf0] }
 0x368   :  { %v9097_v21 = vld [vmem:[#allocation5 + $0x49c] sm:$0xf]  ;;  %v8301_v29 = vor.u32 %v9521_v14, %v8298_v32  ;;  %4784 = vmatpush.bf16.msrb.mxu0 %v7053_v26 }
 0x369   :  { %v6602_v24 = vld [vmem:[#allocation5 + $0x4b8] sm:$0xf0] }
 0x36a   :  { %v9305_v10 = vld [vmem:[#allocation5 + $0xb1c] sm:$0xf]  ;;  %v6605_v42 = vor.u32 %v9097_v21, %v6602_v24  ;;  %v2561_v24 = vunpack.c.h.b16 %v10061_v44 }
 0x36b   :  { %v7434_v25 = vld [vmem:[#allocation5 + $0xb38] sm:$0xf0]  ;;  %4785 = vmatmul.bf16.vlgmr.msrb.gmra.mxu0 %v9946_v38 }
 0x36c   :  { %v9145_v28 = vld [vmem:[#allocation5 + $0x61c] sm:$0xf]  ;;  %v7437_v43 = vor.u32 %v9305_v10, %v7434_v25  ;;  %4829 = vmatpush.bf16.msra.mxu0 %v8301_v29  ;;  %4756 = vmatpush.bf16.msrb.mxu3 %v6605_v42 }
 0x36d   :  { %v6794_v31 = vld [vmem:[#allocation5 + $0x638] sm:$0xf0] }
 0x36e   :  { %v9513_v33 = vld [vmem:[#allocation5 + $0x119c] sm:$0xf]  ;;  %v6797_v56 = vor.u32 %v9145_v28, %v6794_v31  ;;  %4793 = vmatpush.bf16.msra.mxu2 %v7437_v43 }
 0x36f   :  { %v8266_v34 = vld [vmem:[#allocation5 + $0x11b8] sm:$0xf0] }
 0x370   :  { %v9089_v37 = vld [vmem:[#allocation5 + $0x45c] sm:$0xf]  ;;  %v8269_v6 = vor.u32 %v9513_v33, %v8266_v34  ;;  %4771 = vmatpush.bf16.msra.mxu1 %v6797_v56  ;;  %v10104_v33 = vpop.f32.mrf.mxu0 }
 0x371   :  { %v9457_v49 = vld [vmem:[#allocation5 + $0xfdc] sm:$0xf] }
 0x372   :  { %v8042_v51 = vld [vmem:[#allocation5 + $0xff8] sm:$0xf0]  ;;  %4830 = vmatpush.bf16.msra.mxu0 %v8269_v6 }
 0x373   :  { %v6570_v53 = vld [vmem:[#allocation5 + $0x478] sm:$0xf0]  ;;  %v8045_v58 = vor.u32 %v9457_v49, %v8042_v51  ;;  %4772 = vmatmul.bf16.vlgmr.msra.gmra.mxu1 %v9933_v16  ;;  %v3177_v16 = vpack.c.b16 %v2561_v24, %v2561_v24  ;;  %v4488_v51 = vadd.f32 %v10077_v8, %v10074_v55 }
 0x374   :  { %v9297_v45 = vld [vmem:[#allocation5 + $0xadc] sm:$0xf]  ;;  %v6573_v0 = vor.u32 %v9089_v37, %v6570_v53 }
 0x375   :  { %v7402_v9 = vld [vmem:[#allocation5 + $0xaf8] sm:$0xf0]  ;;  %4816 = vmatpush.bf16.msrb.mxu1 %v8045_v58 }
 0x376   :  { %v9505_v59 = vld [vmem:[#allocation5 + $0x115c] sm:$0xf]  ;;  %v7405_v61 = vor.u32 %v9297_v45, %v7402_v9  ;;  %4757 = vmatpush.bf16.msrb.mxu3 %v6573_v0  ;;  %v4528_v45 = vpop.f32.mrf.mxu2  ;;  %v3813_v0 = vsel %vm3790_vm0, %v3177_v16, 0 }
 0x377   :  { %v8234_v60 = vld [vmem:[#allocation5 + $0x1178] sm:$0xf0] }
 0x378   :  { %v9081_v62 = vld [vmem:[#allocation5 + $0x41c] sm:$0xf]  ;;  %v8237_v7 = vor.u32 %v9505_v59, %v8234_v60  ;;  %4794 = vmatpush.bf16.msra.mxu2 %v7405_v61 }
 0x379   :  { %v9449_v57 = vld [vmem:[#allocation5 + $0xf9c] sm:$0xf] }
 0x37a   :  { %v8010_v50 = vld [vmem:[#allocation5 + $0xfb8] sm:$0xf0]  ;;  %4831 = vmatpush.bf16.msra.mxu0 %v8237_v7 }
 0x37b   :  { %v6538_v2 = vld [vmem:[#allocation5 + $0x438] sm:$0xf0]  ;;  %v8013_v19 = vor.u32 %v9449_v57, %v8010_v50  ;;  %v10110_v57 = vpop.f32.mrf.mxu1  ;;  %v4501_v50 = vadd.f32 %v10085_v13, %v4488_v51 }
 0x37c   :  { %v9289_v3 = vld [vmem:[#allocation5 + $0xa9c] sm:$0xf]  ;;  %v6541_v32 = vor.u32 %v9081_v62, %v6538_v2 }
 0x37d   :  { %v7370_v4 = vld [vmem:[#allocation5 + $0xab8] sm:$0xf0]  ;;  %4817 = vmatpush.bf16.msrb.mxu1 %v8013_v19  ;;  %v4514_v13 = vadd.f32 %v10091_v22, %v4501_v50 }
 0x37e   :  { %v9393_v52 = vld [vmem:[#allocation5 + $0xddc] sm:$0xf]  ;;  %v7373_v11 = vor.u32 %v9289_v3, %v7370_v4  ;;  %4758 = vmatpush.bf16.msrb.mxu3 %v6541_v32 }
 0x37f   :  { %v7786_v5 = vld [vmem:[#allocation5 + $0xdf8] sm:$0xf0] }
 0x380   :  { %v9497_v46 = vld [vmem:[#allocation5 + $0x111c] sm:$0xf]  ;;  %v7789_v21 = vor.u32 %v9393_v52, %v7786_v5  ;;  %4795 = vmatpush.bf16.msra.mxu2 %v7373_v11  ;;  %v4541_v5 = vpop.f32.mrf.mxu0 }
 0x381   :  { %v8202_v14 = vld [vmem:[#allocation5 + $0x1138] sm:$0xf0]  ;;  %4759 = vmatmul.bf16.vlgmr.msrb.gmra.mxu3 %v9928_v63  ;;  %v8536_v5 = vld [vmem:[#allocation8 + $0xc0] sm:$0xf] }
 0x382   :  { %v9441_v18 = vld [vmem:[#allocation5 + $0xf5c] sm:$0xf]  ;;  %v8205_v26 = vor.u32 %v9497_v46, %v8202_v14  ;;  %4803 = vmatpush.bf16.msra.mxu3 %v7789_v21 }
 0x383   :  { %v7978_v20 = vld [vmem:[#allocation5 + $0xf78] sm:$0xf0]  ;;  %v4554_v22 = vpop.f32.mrf.mxu1 }
 0x384   :  { %v9281_v15 = vld [vmem:[#allocation5 + $0xa5c] sm:$0xf]  ;;  %v7981_v17 = vor.u32 %v9441_v18, %v7978_v20  ;;  %4832 = vmatpush.bf16.msra.mxu0 %v8205_v26 }
 0x385   :  { %v7338_v38 = vld [vmem:[#allocation5 + $0xa78] sm:$0xf0] }
 0x386   :  { %v9385_v10 = vld [vmem:[#allocation5 + $0xd9c] sm:$0xf]  ;;  %v7341_v29 = vor.u32 %v9281_v15, %v7338_v38  ;;  %4818 = vmatpush.bf16.msrb.mxu1 %v7981_v17 }
 0x387   :  { %v7754_v25 = vld [vmem:[#allocation5 + $0xdb8] sm:$0xf0] }
 0x388   :  { %v9489_v27 = vld [vmem:[#allocation5 + $0x10dc] sm:$0xf]  ;;  %v7757_v34 = vor.u32 %v9385_v10, %v7754_v25  ;;  %4796 = vmatpush.bf16.msra.mxu2 %v7341_v29  ;;  %v4565_v10 = vpop.f32.mrf.mxu3 }
 0x389   :  { %v8170_v28 = vld [vmem:[#allocation5 + $0x10f8] sm:$0xf0] }
 0x38a   :  { %v9433_v30 = vld [vmem:[#allocation5 + $0xf1c] sm:$0xf]  ;;  %v8173_v49 = vor.u32 %v9489_v27, %v8170_v28  ;;  %4804 = vmatpush.bf16.msra.mxu3 %v7757_v34 }
 0x38b   :  { %v7946_v31 = vld [vmem:[#allocation5 + $0xf38] sm:$0xf0] }
 0x38c   :  { %v9273_v44 = vld [vmem:[#allocation5 + $0xa1c] sm:$0xf]  ;;  %v7949_v53 = vor.u32 %v9433_v30, %v7946_v31  ;;  %4833 = vmatpush.bf16.msra.mxu0 %v8173_v49  ;;  %v9620_v49 = vld [vmem:[#allocation8 + $0x1ec] sm:$0xf0] }
 0x38d   :  { %v7306_v42 = vld [vmem:[#allocation5 + $0xa38] sm:$0xf0] }
 0x38e   :  { %v9377_v43 = vld [vmem:[#allocation5 + $0xd5c] sm:$0xf]  ;;  %v7309_v6 = vor.u32 %v9273_v44, %v7306_v42  ;;  %4819 = vmatpush.bf16.msrb.mxu1 %v7949_v53 }
 0x38f   :  { %v7722_v37 = vld [vmem:[#allocation5 + $0xd78] sm:$0xf0] }
 0x390   :  { %v9481_v9 = vld [vmem:[#allocation5 + $0x109c] sm:$0xf]  ;;  %v7725_v60 = vor.u32 %v9377_v43, %v7722_v37  ;;  %4797 = vmatpush.bf16.msra.mxu2 %v7309_v6  ;;  %v8680_v37 = vld [vmem:[#allocation8 + $0x1e0] sm:$0xf]  ;;  %v4567_v6 = vpop.f32.mrf.mxu3 }
 0x391   :  { %v8138_v56 = vld [vmem:[#allocation5 + $0x10b8] sm:$0xf0] }
 0x392   :  { %v9425_v58 = vld [vmem:[#allocation5 + $0xedc] sm:$0xf]  ;;  %v8141_v63 = vor.u32 %v9481_v9, %v8138_v56  ;;  %4805 = vmatpush.bf16.msra.mxu3 %v7725_v60  ;;  %v8664_v60 = vld [vmem:[#allocation8 + $0x1c0] sm:$0xf] }
 0x393   :  { %v7914_v59 = vld [vmem:[#allocation5 + $0xef8] sm:$0xf0]  ;;  %4798 = vmatmul.bf16.vlgmr.msra.gmra.mxu2 %v9950_v41  ;;  %v4527_v41 = vadd.f32 %v10100_v12, %v4514_v13  ;;  %v8681_v12 = vor.u32 %v9620_v49, %v8680_v37  ;;  %v9580_v13 = vld [vmem:[#allocation8 + $0xac] sm:$0xf0]  ;;  %v8472_v37 = vld [vmem:[#allocation8 + $0x40] sm:$0xf] }
 0x394   :  { %v9369_v61 = vld [vmem:[#allocation5 + $0xd1c] sm:$0xf]  ;;  %v7917_v1 = vor.u32 %v9425_v58, %v7914_v59  ;;  %4845 = vmatpush.bf16.msrb.mxu2 %v3813_v0  ;;  %4834 = vmatpush.bf16.msra.mxu0 %v8141_v63  ;;  %v9616_v0 = vld [vmem:[#allocation8 + $0x1cc] sm:$0xf0] }
 0x395   :  { %v7690_v62 = vld [vmem:[#allocation5 + $0xd38] sm:$0xf0]  ;;  %v4540_v9 = vadd.f32 %v10104_v33, %v4527_v41  ;;  %v9588_v63 = vld [vmem:[#allocation8 + $0xec] sm:$0xf0]  ;;  %v4578_v33 = vpop.f32.mrf.mxu2  ;;  %v8665_v50 = vor.u32 %v9616_v0, %v8664_v60  ;;  %v8488_v41 = vld [vmem:[#allocation8 + $0x60] sm:$0xf] }
 0x396   :  { %v9553_v55 = vld [vmem:[#allocation5 + $0x12dc] sm:$0xf]  ;;  %v7693_v7 = vor.u32 %v9369_v61, %v7690_v62  ;;  %4820 = vmatpush.bf16.msrb.mxu1 %v7917_v1  ;;  %v9568_v49 = vld [vmem:[#allocation8 + $0x4c] sm:$0xf0]  ;;  %v9618_v60 = vld [vmem:[#allocation8 + $0x1e4] sm:$0xf] }
 0x397   :  { %v8426_v8 = vld [vmem:[#allocation5 + $0x12f8] sm:$0xf0]  ;;  %v8682_v0 = vld [vmem:[#allocation8 + $0x1f0] sm:$0xf0] }
 0x398   :  { %v9473_v2 = vld [vmem:[#allocation5 + $0x105c] sm:$0xf]  ;;  %v8429_v19 = vor.u32 %v9553_v55, %v8426_v8  ;;  %4806 = vmatpush.bf16.msra.mxu3 %v7693_v7  ;;  %v4553_v55 = vadd.f32 %v10110_v57, %v4540_v9  ;;  %v8552_v8 = vld [vmem:[#allocation8 + $0xe0] sm:$0xf]  ;;  %v9584_v7 = vld [vmem:[#allocation8 + $0xcc] sm:$0xf0] }
 0x399   :  { %v8106_v3 = vld [vmem:[#allocation5 + $0x1078] sm:$0xf0] }
 0x39a   :  { %v9417_v4 = vld [vmem:[#allocation5 + $0xe9c] sm:$0xf]  ;;  %v8109_v18 = vor.u32 %v9473_v2, %v8106_v3  ;;  %4846 = vmatpush.bf16.msrb.mxu2 %v8429_v19  ;;  %v8648_v2 = vld [vmem:[#allocation8 + $0x1a0] sm:$0xf]  ;;  %v9612_v3 = vld [vmem:[#allocation8 + $0x1ac] sm:$0xf0] }
 0x39b   :  { %v7882_v52 = vld [vmem:[#allocation5 + $0xeb8] sm:$0xf0]  ;;  %v8632_v19 = vld [vmem:[#allocation8 + $0x180] sm:$0xf] }
 0x39c   :  { %v9361_v46 = vld [vmem:[#allocation5 + $0xcdc] sm:$0xf]  ;;  %v7885_v20 = vor.u32 %v9417_v4, %v7882_v52  ;;  %4835 = vmatpush.bf16.msra.mxu0 %v8109_v18  ;;  %v8553_v4 = vor.u32 %v9588_v63, %v8552_v8  ;;  %v4566_v52 = vadd.f32 %v4565_v10, %v4553_v55  ;;  %v8520_v18 = vld [vmem:[#allocation8 + $0xa0] sm:$0xf]  ;;  %v9564_v55 = vld [vmem:[#allocation8 + $0x2c] sm:$0xf0] }
 0x39d   :  { %v7658_v14 = vld [vmem:[#allocation5 + $0xcf8] sm:$0xf0]  ;;  %v8504_v10 = vld [vmem:[#allocation8 + $0x80] sm:$0xf] }
 0x39e   :  { %v9545_v32 = vld [vmem:[#allocation5 + $0x129c] sm:$0xf]  ;;  %v7661_v25 = vor.u32 %v9361_v46, %v7658_v14  ;;  %4821 = vmatpush.bf16.msrb.mxu1 %v7885_v20  ;;  %v4579_v57 = vadd.f32 %v4578_v33, %v4566_v52  ;;  %v9608_v46 = vld [vmem:[#allocation8 + $0x18c] sm:$0xf0]  ;;  %v4591_v14 = vpop.f32.mrf.mxu3  ;;  %v4580_v20 = vpop.f32.mrf.mxu2  ;;  %v8685_v33 = vor.u32 %v9618_v60, %v8682_v0  ;;  %v8618_v0 = vld [vmem:[#allocation8 + $0x170] sm:$0xf0] }
 0x39f   :  { %v8394_v11 = vld [vmem:[#allocation5 + $0x12b8] sm:$0xf0]  ;;  %v9582_v20 = vld [vmem:[#allocation8 + $0xc4] sm:$0xf] }
 0x3a0   :  { %v9465_v21 = vld [vmem:[#allocation5 + $0x101c] sm:$0xf]  ;;  %v8397_v26 = vor.u32 %v9545_v32, %v8394_v11  ;;  %4807 = vmatpush.bf16.msra.mxu3 %v7661_v25  ;;  %v8537_v32 = vor.u32 %v9584_v7, %v8536_v5  ;;  %v10122_v11 = vadd.f32 %v4591_v14, %v4579_v57  ;;  %v9576_v25 = vld [vmem:[#allocation8 + $0x8c] sm:$0xf0]  ;;  %v8808_v5 = vld [vmem:[#allocation8 + $0x2e0] sm:$0xf] }
 0x3a1   :  { %v8074_v15 = vld [vmem:[#allocation5 + $0x1038] sm:$0xf0]  ;;  %v9652_v7 = vld [vmem:[#allocation8 + $0x2ec] sm:$0xf0]  ;;  %v9586_v57 = vld [vmem:[#allocation8 + $0xe4] sm:$0xf] }
 0x3a2   :  { %v9409_v38 = vld [vmem:[#allocation5 + $0xe5c] sm:$0xf]  ;;  %v8077_v30 = vor.u32 %v9465_v21, %v8074_v15  ;;  %4847 = vmatpush.bf16.msrb.mxu2 %v8397_v26  ;;  %v4868_v21 = vand.u32 2147483647, %v10122_v11  ;;  %v9604_v15 = vld [vmem:[#allocation8 + $0x16c] sm:$0xf0]  ;;  %v10126_v26 = vpop.f32.mrf.mxu1  ;;  %vm4860_vm5 = vcmp.ne.f32.partialorder %v10122_v11, %v10122_v11 }
 0x3a3   :  { %v7850_v24 = vld [vmem:[#allocation5 + $0xe78] sm:$0xf0] }
 0x3a4   :  { %v9353_v17 = vld [vmem:[#allocation5 + $0xc9c] sm:$0xf]  ;;  %v7853_v31 = vor.u32 %v9409_v38, %v7850_v24  ;;  %4836 = vmatpush.bf16.msra.mxu0 %v8077_v30  ;;  %v8521_v38 = vor.u32 %v9580_v13, %v8520_v18  ;;  %v4872_v24 = vsub.f32 0.0, %v4868_v21  ;;  %v8505_v30 = vor.u32 %v9576_v25, %v8504_v10  ;;  %v9610_v13 = vld [vmem:[#allocation8 + $0x1a4] sm:$0xf] }
 0x3a5   :  { %v7626_v27 = vld [vmem:[#allocation5 + $0xcb8] sm:$0xf0]  ;;  %v9648_v10 = vld [vmem:[#allocation8 + $0x2cc] sm:$0xf0]  ;;  %v4856_v25 = vmax.f32 %v10122_v11, 0.0 }
 0x3a6   :  { %v9537_v28 = vld [vmem:[#allocation5 + $0x125c] sm:$0xf]  ;;  %v7629_v42 = vor.u32 %v9353_v17, %v7626_v27  ;;  %4822 = vmatpush.bf16.msrb.mxu1 %v7853_v31  ;;  %v4877_v27 = vmul.f32 1.442695, %v4872_v24  ;;  %v4593_v22 = vpop.f32.mrf.mxu3  ;;  %v9572_v31 = vld [vmem:[#allocation8 + $0x6c] sm:$0xf0]  ;;  %v10134_v21 = vpop.f32.mrf.mxu2 }
 0x3a7   :  { %v8362_v29 = vld [vmem:[#allocation5 + $0x1278] sm:$0xf0]  ;;  %4837 = vmatmul.bf16.vlgmr.msra.gmra.mxu0 %v9960_v23  ;;  %v8649_v23 = vor.u32 %v9612_v3, %v8648_v2  ;;  %v9560_v2 = vld [vmem:[#allocation8 + $0xc] sm:$0xf0]  ;;  %v9614_v3 = vld [vmem:[#allocation8 + $0x1c4] sm:$0xf] }
 0x3a8   :  { %v9401_v34 = vld [vmem:[#allocation5 + $0xe1c] sm:$0xf]  ;;  %v8365_v16 = vor.u32 %v9537_v28, %v8362_v29  ;;  %4808 = vmatpush.bf16.msra.mxu3 %v7629_v42  ;;  %v8600_v28 = vld [vmem:[#allocation8 + $0x140] sm:$0xf]  ;;  %v9600_v29 = vld [vmem:[#allocation8 + $0x14c] sm:$0xf0]  ;;  %9700 = vpow2.f32 %v4877_v27 }
 0x3a9   :  { %v7818_v44 = vld [vmem:[#allocation5 + $0xe38] sm:$0xf0]  ;;  %v9596_v42 = vld [vmem:[#allocation8 + $0x12c] sm:$0xf0]  ;;  %v8792_v24 = vld [vmem:[#allocation8 + $0x2c0] sm:$0xf] }
 0x3aa   :  { %v9345_v43 = vld [vmem:[#allocation5 + $0xc5c] sm:$0xf]  ;;  %v7821_v56 = vor.u32 %v9401_v34, %v7818_v44  ;;  %4848 = vmatpush.bf16.msrb.mxu2 %v8365_v16  ;;  %v8601_v34 = vor.u32 %v9600_v29, %v8600_v28  ;;  %v8584_v44 = vld [vmem:[#allocation8 + $0x120] sm:$0xf]  ;;  %v10130_v16 = vld [vmem:[#allocation7] sm:$0xf]  ;;  %v8793_v27 = vor.u32 %v9648_v10, %v8792_v24 }
 0x3ab   :  { %v7594_v51 = vld [vmem:[#allocation5 + $0xc78] sm:$0xf0]  ;;  %v4933_v9 = vperm.slane %v10130_v16, 0  ;;  %v9606_v22 = vld [vmem:[#allocation8 + $0x184] sm:$0xf] }
 0x3ac   :  { %v9529_v53 = vld [vmem:[#allocation5 + $0x121c] sm:$0xf]  ;;  %v7597_v58 = vor.u32 %v9345_v43, %v7594_v51  ;;  %4823 = vmatpush.bf16.msrb.mxu1 %v7821_v56  ;;  %v8489_v43 = vor.u32 %v9572_v31, %v8488_v41  ;;  %v4606_v51 = vpop.f32.mrf.mxu1  ;;  %v8568_v56 = vld [vmem:[#allocation8 + $0x100] sm:$0xf]  ;;  %v8634_v41 = vld [vmem:[#allocation8 + $0x190] sm:$0xf0] }
 0x3ad   :  { %v8330_v45 = vld [vmem:[#allocation5 + $0x1238] sm:$0xf0]  ;;  %v4941_v63 = vadd.f32 %v4933_v9, %v10097_v40  ;;  %v9590_v24 = vld [vmem:[#allocation8 + $0x104] sm:$0xf]  ;;  %v8570_v10 = vld [vmem:[#allocation8 + $0x110] sm:$0xf0] }
 0x3ae   :  { %v8333_v59 = vor.u32 %v9529_v53, %v8330_v45  ;;  %v9337_v61 = vld [vmem:[#allocation5 + $0xc1c] sm:$0xf]  ;;  %4809 = vmatpush.bf16.msra.mxu3 %v7597_v58  ;;  %v8585_v53 = vor.u32 %v9596_v42, %v8584_v44  ;;  %v9701_v45 = vpop.eup %9700 }
 0x3af   :  { %v7562_v62 = vld [vmem:[#allocation5 + $0xc38] sm:$0xf0]  ;;  %4824 = vmatmul.bf16.vlgmr.msrb.gmra.mxu1 %v9948_v39  ;;  %v8633_v39 = vor.u32 %v9608_v46, %v8632_v19  ;;  %v4892_v58 = vadd.f32 1.0, %v9701_v45  ;;  %v8554_v19 = vld [vmem:[#allocation8 + $0xf0] sm:$0xf0]  ;;  %v8809_v46 = vor.u32 %v9652_v7, %v8808_v5  ;;  %v4945_v14 = vmax.f32 %v4941_v63, 0.0 }
 0x3b0   :  { %5734 = vmatpush.bf16.msra.mxu1 %v8681_v12  ;;  %4849 = vmatpush.bf16.msrb.mxu2 %v8333_v59  ;;  %v7565_v1 = vor.u32 %v9337_v61, %v7562_v62  ;;  %v9592_v12 = vld [vmem:[#allocation8 + $0x10c] sm:$0xf0]  ;;  %v8473_v59 = vor.u32 %v9568_v49, %v8472_v37  ;;  %v4895_v61 = vmul.f32 -0.5, %v9701_v45  ;;  %v8456_v62 = vld [vmem:[#allocation8 + $0x20] sm:$0xf] }
 0x3b1   :  { %9702 = vlog2.f32 %v4892_v58  ;;  %v8569_v8 = vor.u32 %v9592_v12, %v8568_v56  ;;  %v10142_v44 = vpack.c.bf16 %v4945_v14, %v4945_v14  ;;  %v8776_v37 = vld [vmem:[#allocation8 + $0x2a0] sm:$0xf]  ;;  %v9644_v49 = vld [vmem:[#allocation8 + $0x2ac] sm:$0xf0]  ;;  %v8637_v12 = vor.u32 %v9606_v22, %v8634_v41  ;;  %v4645_v58 = vpop.f32.mrf.mxu2  ;;  %v9594_v14 = vld [vmem:[#allocation8 + $0x124] sm:$0xf] }
 0x3b2   :  { %4810 = vmatpush.bf16.msra.mxu3 %v7565_v1  ;;  %v8457_v1 = vor.u32 %v9564_v55, %v8456_v62  ;;  %v4896_v52 = vadd.f32 1.0, %v4895_v61  ;;  %v8777_v9 = vor.u32 %v9644_v49, %v8776_v37  ;;  %v8760_v61 = vld [vmem:[#allocation8 + $0x280] sm:$0xf]  ;;  %v9640_v62 = vld [vmem:[#allocation8 + $0x28c] sm:$0xf0] }
 0x3b3   :  { %8437 = vmatmul.msk.bf16.vlgmr.msrb.gmra.mxu2 %vm3786_vm1, %v9956_v36  ;;  %v8616_v36 = vld [vmem:[#allocation8 + $0x160] sm:$0xf]  ;;  %v9574_v55 = vld [vmem:[#allocation8 + $0x84] sm:$0xf]  ;;  %v8761_v63 = vor.u32 %v9640_v62, %v8760_v61  ;;  %v9636_v7 = vld [vmem:[#allocation8 + $0x26c] sm:$0xf0] }
 0x3b4   :  { %5735 = vmatpush.bf16.msra.mxu1 %v8665_v50  ;;  %v8617_v17 = vor.u32 %v9604_v15, %v8616_v36  ;;  %v8440_v50 = vld [vmem:[#allocation8] sm:$0xf]  ;;  %5747 = vmatpush.bf16.msra.mxu2 %v8809_v46  ;;  %v4897_v15 = vmul.f32 %v9701_v45, %v4896_v52  ;;  %v9621_v22 = vld [vmem:[#allocation8 + $0x1f4] sm:$0xf0]  ;;  %v9558_v37 = vld [vmem:[#allocation8 + $0x4] sm:$0xf] }
 0x3b5   :  { %4811 = vmatmul.bf16.vlgmr.msra.gmra.mxu3 %v9944_v35  ;;  %v10128_v35 = vpop.f32.mrf.mxu0  ;;  %v8441_v40 = vor.u32 %v9560_v2, %v8440_v50  ;;  %v9598_v50 = vld [vmem:[#allocation8 + $0x144] sm:$0xf]  ;;  %v8744_v5 = vld [vmem:[#allocation8 + $0x260] sm:$0xf]  ;;  %v8442_v49 = vld [vmem:[#allocation8 + $0x10] sm:$0xf0] }
 0x3b6   :  { %5721 = vmatpush.bf16.msrb.mxu3 %v8553_v4  ;;  %v8666_v4 = vld [vmem:[#allocation8 + $0x1d0] sm:$0xf0]  ;;  %v9650_v58 = vld [vmem:[#allocation8 + $0x2e4] sm:$0xf] }
 0x3b7   :  { %v9703_v18 = vpop.eup %9702 }
 0x3b8   :  { %5736 = vmatpush.bf16.msra.mxu1 %v8649_v23  ;;  %v4898_v23 = vand.u32 2147483647, %v9701_v45  ;;  %v4894_v36 = vmul.f32 0.6931472, %v9703_v18  ;;  %5748 = vmatpush.bf16.msra.mxu2 %v8793_v27  ;;  %v8522_v45 = vld [vmem:[#allocation8 + $0xb0] sm:$0xf0] }
 0x3b9   :  { %v8586_v18 = vld [vmem:[#allocation8 + $0x130] sm:$0xf0]  ;;  %v8712_v27 = vld [vmem:[#allocation8 + $0x220] sm:$0xf] }
 0x3ba   :  { %5722 = vmatpush.bf16.msrb.mxu3 %v8537_v32  ;;  %v8669_v32 = vor.u32 %v9614_v3, %v8666_v4  ;;  %vm4899_vm4 = vcmp.lt.f32.partialorder %v4898_v23, 0.0004427343  ;;  %v8602_v4 = vld [vmem:[#allocation8 + $0x150] sm:$0xf0]  ;;  %v9570_v23 = vld [vmem:[#allocation8 + $0x64] sm:$0xf] }
 0x3bb   :  { %v4900_v28 = vsel %vm4899_vm4, %v4897_v15, %v4894_v36  ;;  %v8605_v46 = vor.u32 %v9598_v50, %v8602_v4  ;;  %v8794_v50 = vld [vmem:[#allocation8 + $0x2d0] sm:$0xf0] }
 0x3bc   :  { %5737 = vmatpush.bf16.msra.mxu1 %v8633_v39  ;;  %v8650_v39 = vld [vmem:[#allocation8 + $0x1b0] sm:$0xf0]  ;;  %5749 = vmatpush.bf16.msra.mxu2 %v8777_v9  ;;  %v8696_v9 = vld [vmem:[#allocation8 + $0x200] sm:$0xf] }
 0x3bd   :  { %v4632_v6 = vpop.f32.mrf.mxu0  ;;  %v8653_v29 = vor.u32 %v9610_v13, %v8650_v39  ;;  %v9632_v13 = vld [vmem:[#allocation8 + $0x24c] sm:$0xf0]  ;;  %v9566_v39 = vld [vmem:[#allocation8 + $0x44] sm:$0xf] }
 0x3be   :  { %5723 = vmatpush.bf16.msrb.mxu3 %v8521_v38  ;;  %v8557_v38 = vor.u32 %v9586_v57, %v8554_v19  ;;  %v9602_v6 = vld [vmem:[#allocation8 + $0x164] sm:$0xf]  ;;  %v8490_v57 = vld [vmem:[#allocation8 + $0x70] sm:$0xf0]  ;;  %v8745_v19 = vor.u32 %v9636_v7, %v8744_v5  ;;  %v8640_v5 = vld [vmem:[#allocation8 + $0x188] sm:$0xf] }
 0x3c0   :  { %5738 = vmatpush.bf16.msra.mxu1 %v8617_v17  ;;  %v8538_v17 = vld [vmem:[#allocation8 + $0xd0] sm:$0xf0]  ;;  %5750 = vmatpush.bf16.msra.mxu2 %v8761_v63 }
 0x3c1   :  { %v8541_v42 = vor.u32 %v9582_v20, %v8538_v17  ;;  %v8474_v20 = vld [vmem:[#allocation8 + $0x50] sm:$0xf0]  ;;  %v9562_v17 = vld [vmem:[#allocation8 + $0x24] sm:$0xf] }
 0x3c2   :  { %5724 = vmatpush.bf16.msrb.mxu3 %v8505_v30  ;;  %v4920_v30 = vadd.f32 %v4900_v28, %v4856_v25  ;;  %v8477_v25 = vor.u32 %v9566_v39, %v8474_v20  ;;  %v9628_v28 = vld [vmem:[#allocation8 + $0x22c] sm:$0xf0] }
 0x3c3   :  { %v8713_v41 = vor.u32 %v9628_v28, %v8712_v27 }
 0x3c4   :  { %5739 = vmatpush.bf16.msra.mxu1 %v8601_v34  ;;  %v4934_v34 = vperm.slane %v10130_v16, 1  ;;  %v4924_v51 = vsel %vm4860_vm5, %v10122_v11, %v4920_v30  ;;  %v8506_v11 = vld [vmem:[#allocation8 + $0x90] sm:$0xf0]  ;;  %5751 = vmatpush.bf16.msra.mxu2 %v8745_v19  ;;  %v8688_v30 = vld [vmem:[#allocation8 + $0x1e8] sm:$0xf] }
 0x3c5   :  { %v10137_v31 = vpop.f32.mrf.mxu0  ;;  %v4928_v56 = vadd.f32 %v4924_v51, %v10017_v47  ;;  %v8621_v47 = vor.u32 %v9602_v6, %v8618_v0  ;;  %v8509_v3 = vor.u32 %v9574_v55, %v8506_v11  ;;  %v9589_v0 = vld [vmem:[#allocation8 + $0xf4] sm:$0xf0]  ;;  %v8656_v55 = vld [vmem:[#allocation8 + $0x1a8] sm:$0xf]  ;;  %v4695_v11 = vpop.f32.mrf.mxu2  ;;  %v9642_v19 = vld [vmem:[#allocation8 + $0x2a4] sm:$0xf] }
 0x3c6   :  { %5725 = vmatpush.bf16.msrb.mxu3 %v8489_v43  ;;  %v10144_v43 = vpop.f32.mrf.mxu3 }
 0x3c8   :  { %5740 = vmatpush.bf16.msra.mxu1 %v8585_v53  ;;  %v9578_v53 = vld [vmem:[#allocation8 + $0xa4] sm:$0xf] }
 0x3c9   :  { %v8525_v60 = vor.u32 %v9578_v53, %v8522_v45  ;;  %v8689_v53 = vor.u32 %v9621_v22, %v8688_v30  ;;  %v8672_v45 = vld [vmem:[#allocation8 + $0x1c8] sm:$0xf] }
 0x3ca   :  { %5726 = vmatpush.bf16.msrb.mxu3 %v8473_v59  ;;  %v4942_v59 = vadd.f32 %v4934_v34, %v4928_v56  ;;  %v4618_v34 = vadd.f32 %v10144_v43, %v10126_v26  ;;  %v9624_v56 = vld [vmem:[#allocation8 + $0x20c] sm:$0xf0]  ;;  %v8445_v43 = vor.u32 %v9558_v37, %v8442_v49  ;;  %v8746_v37 = vld [vmem:[#allocation8 + $0x270] sm:$0xf0]  ;;  %v8496_v49 = vld [vmem:[#allocation8 + $0x68] sm:$0xf] }
 0x3cb   :  { %v8697_v6 = vor.u32 %v9624_v56, %v8696_v9  ;;  %v8592_v9 = vld [vmem:[#allocation8 + $0x128] sm:$0xf] }
 0x3cc   :  { %5741 = vmatpush.bf16.msra.mxu1 %v8569_v8  ;;  %v10149_v8 = vpop.f32.mrf.mxu1  ;;  %v4631_v26 = vadd.f32 %v10128_v35, %v4618_v34  ;;  %v9601_v34 = vld [vmem:[#allocation8 + $0x154] sm:$0xf0] }
 0x3cd   :  { %v4697_v39 = vpop.f32.mrf.mxu2 }
 0x3ce   :  { %5727 = vmatpush.bf16.msrb.mxu3 %v8457_v1  ;;  %v4684_v1 = vpop.f32.mrf.mxu0  ;;  %v4619_v52 = vpop.f32.mrf.mxu3  ;;  %v4644_v35 = vadd.f32 %v10134_v21, %v4631_v26  ;;  %v9587_v39 = vld [vmem:[#allocation8 + $0xec] sm:$0xf] }
 0x3cf   :  { %v8544_v1 = vld [vmem:[#allocation8 + $0xc8] sm:$0xf] }
 0x3d0   :  { %5786 = vmatpush.bf16.msrb.mxu1 %v8685_v33  ;;  %v4946_v33 = vmax.f32 %v4942_v59, 0.0  ;;  %v8810_v59 = vld [vmem:[#allocation8 + $0x2f0] sm:$0xf0] }
 0x3d1   :  { %v8813_v61 = vor.u32 %v9650_v58, %v8810_v59  ;;  %v9630_v58 = vld [vmem:[#allocation8 + $0x244] sm:$0xf]  ;;  %v8480_v59 = vld [vmem:[#allocation8 + $0x48] sm:$0xf] }
 0x3d2   :  { %5728 = vmatpush.bf16.msrb.mxu3 %v8441_v40  ;;  %v10151_v2 = vpack.c.bf16 %v4946_v33, %v4946_v33  ;;  %v8728_v40 = vld [vmem:[#allocation8 + $0x240] sm:$0xf]  ;;  %v9613_v33 = vld [vmem:[#allocation8 + $0x1b4] sm:$0xf0] }
 0x3d3   :  { %v8729_v15 = vor.u32 %v9632_v13, %v8728_v40  ;;  %v8657_v52 = vor.u32 %v9613_v33, %v8656_v55  ;;  %v4657_v40 = vadd.f32 %v10149_v8, %v4644_v35  ;;  %v8624_v13 = vld [vmem:[#allocation8 + $0x168] sm:$0xf]  ;;  %v9593_v55 = vld [vmem:[#allocation8 + $0x114] sm:$0xf0]  ;;  %v8690_v35 = vld [vmem:[#allocation8 + $0x1f8] sm:$0xf0] }
 0x3d4   :  { %5787 = vmatpush.bf16.msrb.mxu1 %v8669_v32  ;;  %v8493_v32 = vor.u32 %v9570_v23, %v8490_v57  ;;  %v4658_v36 = vpop.f32.mrf.mxu1  ;;  %v9609_v57 = vld [vmem:[#allocation8 + $0x194] sm:$0xf0] }
 0x3d5   :  { %5729 = vmatmul.bf16.vlgmr.msrb.gmra.mxu3 %v10142_v44  ;;  %5742 = vmatmul.bf16.vlgmr.msra.gmra.mxu1 %v10151_v2  ;;  %v8641_v21 = vor.u32 %v9609_v57, %v8640_v5 }
 0x3d6   :  { %5773 = vmatpush.bf16.msra.mxu3 %v8557_v38  ;;  %v8589_v38 = vor.u32 %v9594_v14, %v8586_v18  ;;  %5752 = vmatpush.bf16.msra.mxu2 %v8729_v15  ;;  %v4669_v7 = vpop.f32.mrf.mxu3  ;;  %v8528_v14 = vld [vmem:[#allocation8 + $0xa8] sm:$0xf]  ;;  %v9605_v15 = vld [vmem:[#allocation8 + $0x174] sm:$0xf0]  ;;  %v10161_v27 = vpop.f32.mrf.mxu0 }
 0x3d7   :  { %v4670_v20 = vadd.f32 %v4669_v7, %v4657_v40  ;;  %v8625_v8 = vor.u32 %v9605_v15, %v8624_v13  ;;  %v8674_v40 = vld [vmem:[#allocation8 + $0x1d8] sm:$0xf0] }
 0x3d8   :  { %5788 = vmatpush.bf16.msrb.mxu1 %v8653_v29  ;;  %v8458_v29 = vld [vmem:[#allocation8 + $0x30] sm:$0xf0] }
 0x3d9   :  { %v8461_v51 = vor.u32 %v9562_v17, %v8458_v29  ;;  %v9577_v17 = vld [vmem:[#allocation8 + $0x94] sm:$0xf0]  ;;  %v8608_v29 = vld [vmem:[#allocation8 + $0x148] sm:$0xf]  ;;  %v4683_v30 = vadd.f32 %v10137_v31, %v4670_v20  ;;  %v8730_v31 = vld [vmem:[#allocation8 + $0x250] sm:$0xf0] }
 0x3da   :  { %5774 = vmatpush.bf16.msra.mxu3 %v8541_v42  ;;  %v8573_v42 = vor.u32 %v9590_v24, %v8570_v10  ;;  %5753 = vmatpush.bf16.msra.mxu2 %v8713_v41  ;;  %v8762_v24 = vld [vmem:[#allocation8 + $0x290] sm:$0xf0]  ;;  %v8733_v26 = vor.u32 %v9630_v58, %v8730_v31  ;;  %v8562_v20 = vld [vmem:[#allocation8 + $0xf8] sm:$0xf0]  ;;  %v9680_v58 = vld [vmem:[#allocation8 + $0x3cc] sm:$0xf0] }
 0x3db   :  { %v4696_v56 = vadd.f32 %v4695_v11, %v4683_v30  ;;  %v9626_v11 = vld [vmem:[#allocation8 + $0x224] sm:$0xf]  ;;  %v8546_v30 = vld [vmem:[#allocation8 + $0xd8] sm:$0xf0] }
 0x3dc   :  { %5789 = vmatpush.bf16.msrb.mxu1 %v8637_v12  ;;  %v9617_v12 = vld [vmem:[#allocation8 + $0x1d4] sm:$0xf0]  ;;  %v4708_v10 = vpop.f32.mrf.mxu1 }
 0x3dd   :  { %v8673_v62 = vor.u32 %v9617_v12, %v8672_v45  ;;  %v8609_v45 = vor.u32 %v9601_v34, %v8608_v29  ;;  %v9583_v29 = vld [vmem:[#allocation8 + $0xcc] sm:$0xf]  ;;  %v9684_v34 = vld [vmem:[#allocation8 + $0x3ec] sm:$0xf0] }
 0x3de   :  { %5775 = vmatpush.bf16.msra.mxu3 %v8525_v60  ;;  %v8560_v60 = vld [vmem:[#allocation8 + $0xe8] sm:$0xf]  ;;  %5754 = vmatpush.bf16.msra.mxu2 %v8697_v6  ;;  %v4671_v22 = vpop.f32.mrf.mxu3  ;;  %v9597_v6 = vld [vmem:[#allocation8 + $0x134] sm:$0xf0] }
 0x3df   :  { %v8561_v63 = vor.u32 %v9589_v0, %v8560_v60  ;;  %v9569_v60 = vld [vmem:[#allocation8 + $0x54] sm:$0xf0] }
 0x3e0   :  { %5790 = vmatpush.bf16.msrb.mxu1 %v8621_v47  ;;  %v9646_v47 = vld [vmem:[#allocation8 + $0x2c4] sm:$0xf]  ;;  %v8481_v33 = vor.u32 %v9569_v60, %v8480_v59  ;;  %v9603_v60 = vld [vmem:[#allocation8 + $0x16c] sm:$0xf] }
 0x3e1   :  { %v8797_v4 = vor.u32 %v9646_v47, %v8794_v50  ;;  %v8464_v47 = vld [vmem:[#allocation8 + $0x28] sm:$0xf]  ;;  %v8714_v50 = vld [vmem:[#allocation8 + $0x230] sm:$0xf0] }
 0x3e2   :  { %5776 = vmatpush.bf16.msra.mxu3 %v8509_v3  ;;  %5799 = vmatpush.bf16.msrb.mxu2 %v8813_v61  ;;  %v9585_v3 = vld [vmem:[#allocation8 + $0xd4] sm:$0xf0]  ;;  %v4736_v61 = vpop.f32.mrf.mxu0 }
 0x3e3   :  { %v8545_v23 = vor.u32 %v9585_v3, %v8544_v1  ;;  %v9565_v3 = vld [vmem:[#allocation8 + $0x34] sm:$0xf0] }
 0x3e4   :  { %5791 = vmatpush.bf16.msrb.mxu1 %v8605_v46  ;;  %v8778_v46 = vld [vmem:[#allocation8 + $0x2b0] sm:$0xf0]  ;;  %v4710_v0 = vpop.f32.mrf.mxu1 }
 0x3e5   :  { %v8781_v18 = vor.u32 %v9642_v19, %v8778_v46  ;;  %v8465_v19 = vor.u32 %v9565_v3, %v8464_v47  ;;  %v8626_v0 = vld [vmem:[#allocation8 + $0x178] sm:$0xf0]  ;;  %v8904_v47 = vld [vmem:[#allocation8 + $0x3a0] sm:$0xf] }
 0x3e6   :  { %5777 = vmatpush.bf16.msra.mxu3 %v8493_v32  ;;  %5800 = vmatpush.bf16.msrb.mxu2 %v8797_v4  ;;  %v9581_v32 = vld [vmem:[#allocation8 + $0xb4] sm:$0xf0]  ;;  %v4721_v1 = vpop.f32.mrf.mxu3  ;;  %v9619_v4 = vld [vmem:[#allocation8 + $0x1ec] sm:$0xf]  ;;  %v8610_v3 = vld [vmem:[#allocation8 + $0x158] sm:$0xf0] }
 0x3e7   :  { %v8529_v36 = vor.u32 %v9581_v32, %v8528_v14  ;;  %v8693_v46 = vor.u32 %v9619_v4, %v8690_v35  ;;  %v9561_v14 = vld [vmem:[#allocation8 + $0x14] sm:$0xf0]  ;;  %v9622_v32 = vld [vmem:[#allocation8 + $0x204] sm:$0xf] }
 0x3e8   :  { %5792 = vmatpush.bf16.msrb.mxu1 %v8589_v38  ;;  %v9638_v38 = vld [vmem:[#allocation8 + $0x284] sm:$0xf] }
 0x3e9   :  { %v8765_v28 = vor.u32 %v9638_v38, %v8762_v24 }
 0x3ea   :  { %5778 = vmatpush.bf16.msra.mxu3 %v8477_v25  ;;  %5801 = vmatpush.bf16.msrb.mxu2 %v8781_v18  ;;  %v8512_v25 = vld [vmem:[#allocation8 + $0x88] sm:$0xf]  ;;  %v9615_v18 = vld [vmem:[#allocation8 + $0x1cc] sm:$0xf] }
 0x3eb   :  { %v8513_v41 = vor.u32 %v9577_v17, %v8512_v25  ;;  %v8677_v24 = vor.u32 %v9615_v18, %v8674_v40  ;;  %v9611_v25 = vld [vmem:[#allocation8 + $0x1ac] sm:$0xf]  ;;  %v8658_v17 = vld [vmem:[#allocation8 + $0x1b8] sm:$0xf0] }
 0x3ec   :  { %5793 = vmatpush.bf16.msrb.mxu1 %v8573_v42  ;;  %v9634_v42 = vld [vmem:[#allocation8 + $0x264] sm:$0xf]  ;;  %v8661_v22 = vor.u32 %v9611_v25, %v8658_v17  ;;  %v9595_v40 = vld [vmem:[#allocation8 + $0x12c] sm:$0xf]  ;;  %v8872_v17 = vld [vmem:[#allocation8 + $0x360] sm:$0xf] }
 0x3ee   :  { %5779 = vmatpush.bf16.msra.mxu3 %v8461_v51  ;;  %5802 = vmatpush.bf16.msrb.mxu2 %v8765_v28  ;;  %v9573_v51 = vld [vmem:[#allocation8 + $0x74] sm:$0xf0]  ;;  %v10167_v28 = vpop.f32.mrf.mxu2 }
 0x3ef   :  { %5794 = vmatmul.bf16.vlgmr.msrb.gmra.mxu1 %v10151_v2  ;;  %v8497_v12 = vor.u32 %v9573_v51, %v8496_v49  ;;  %v8642_v49 = vld [vmem:[#allocation8 + $0x198] sm:$0xf0] }
 0x3f0   :  { %5838 = vmatpush.bf16.msra.mxu1 %v8689_v53  ;;  %v8749_v53 = vor.u32 %v9634_v42, %v8746_v37  ;;  %v8549_v42 = vor.u32 %v9583_v29, %v8546_v30  ;;  %v9607_v37 = vld [vmem:[#allocation8 + $0x18c] sm:$0xf] }
 0x3f2   :  { %5780 = vmatpush.bf16.msra.mxu3 %v8445_v43  ;;  %5803 = vmatpush.bf16.msrb.mxu2 %v8749_v53  ;;  %v8593_v43 = vor.u32 %v9597_v6, %v8592_v9  ;;  %v9579_v53 = vld [vmem:[#allocation8 + $0xac] sm:$0xf]  ;;  %v10170_v9 = vpop.f32.mrf.mxu0  ;;  %v8920_v6 = vld [vmem:[#allocation8 + $0x3c0] sm:$0xf] }
 0x3f4   :  { %5839 = vmatpush.bf16.msra.mxu1 %v8673_v62  ;;  %v8576_v62 = vld [vmem:[#allocation8 + $0x108] sm:$0xf] }
 0x3f5   :  { %5781 = vmatmul.bf16.vlgmr.msra.gmra.mxu3 %v10142_v44  ;;  %v8577_v7 = vor.u32 %v9593_v55, %v8576_v62  ;;  %v9575_v62 = vld [vmem:[#allocation8 + $0x8c] sm:$0xf]  ;;  %v8514_v55 = vld [vmem:[#allocation8 + $0x98] sm:$0xf0] }
 0x3f6   :  { %5825 = vmatpush.bf16.msrb.mxu3 %v8561_v63  ;;  %v4709_v63 = vadd.f32 %v4708_v10, %v4696_v56  ;;  %5804 = vmatpush.bf16.msrb.mxu2 %v8733_v26  ;;  %v8565_v10 = vor.u32 %v9587_v39, %v8562_v20  ;;  %v4749_v61 = vpop.f32.mrf.mxu2  ;;  %v8921_v26 = vor.u32 %v9680_v58, %v8920_v6  ;;  %v9664_v6 = vld [vmem:[#allocation8 + $0x34c] sm:$0xf0] }
 0x3f7   :  { %v9559_v61 = vld [vmem:[#allocation8 + $0xc] sm:$0xf] }
 0x3f8   :  { %5840 = vmatpush.bf16.msra.mxu1 %v8657_v52  ;;  %v8717_v52 = vor.u32 %v9626_v11, %v8714_v50  ;;  %v10164_v5 = vadd.f32 %v4721_v1, %v4709_v63  ;;  %v10173_v63 = vpop.f32.mrf.mxu1  ;;  %v9676_v11 = vld [vmem:[#allocation8 + $0x3ac] sm:$0xf0]  ;;  %v8517_v50 = vor.u32 %v9575_v62, %v8514_v55  ;;  %v9599_v1 = vld [vmem:[#allocation8 + $0x14c] sm:$0xf] }
 0x3f9   :  { %v8905_v4 = vor.u32 %v9676_v11, %v8904_v47 }
 0x3fa   :  { %5826 = vmatpush.bf16.msrb.mxu3 %v8545_v23  ;;  %v8448_v23 = vld [vmem:[#allocation8 + $0x8] sm:$0xf]  ;;  %v4869_v57 = vand.u32 2147483647, %v10164_v5  ;;  %5805 = vmatpush.bf16.msrb.mxu2 %v8717_v52  ;;  %v9571_v52 = vld [vmem:[#allocation8 + $0x6c] sm:$0xf]  ;;  %vm4861_vm7 = vcmp.ne.f32.partialorder %v10164_v5, %v10164_v5 }
 0x3fb   :  { %v8449_v38 = vor.u32 %v9561_v14, %v8448_v23  ;;  %v4788_v23 = vpop.f32.mrf.mxu0  ;;  %v9672_v14 = vld [vmem:[#allocation8 + $0x38c] sm:$0xf0] }
 0x3fc   :  { %5841 = vmatpush.bf16.msra.mxu1 %v8641_v21  ;;  %v8698_v21 = vld [vmem:[#allocation8 + $0x210] sm:$0xf0]  ;;  %v4873_v13 = vsub.f32 0.0, %v4869_v57 }
 0x3fd   :  { %v8938_v23 = vld [vmem:[#allocation8 + $0x3f0] sm:$0xf0] }
 0x3fe   :  { %5827 = vmatpush.bf16.msrb.mxu3 %v8529_v36  ;;  %v8701_v36 = vor.u32 %v9622_v32, %v8698_v21  ;;  %v4879_v15 = vmul.f32 1.442695, %v4873_v13  ;;  %v8594_v21 = vld [vmem:[#allocation8 + $0x138] sm:$0xf0] }
 0x3ff   :  { %v8597_v25 = vor.u32 %v9595_v40, %v8594_v21  ;;  %v8922_v40 = vld [vmem:[#allocation8 + $0x3d0] sm:$0xf0] }
 0x400   :  { %5842 = vmatpush.bf16.msra.mxu1 %v8625_v8  ;;  %v4723_v8 = vpop.f32.mrf.mxu3  ;;  %5806 = vmatpush.bf16.msrb.mxu2 %v8701_v36  ;;  %9704 = vpow2.f32 %v4879_v15  ;;  %v9567_v36 = vld [vmem:[#allocation8 + $0x4c] sm:$0xf]  ;;  %v8482_v15 = vld [vmem:[#allocation8 + $0x58] sm:$0xf0] }
 0x401   :  { %v9668_v8 = vld [vmem:[#allocation8 + $0x36c] sm:$0xf0]  ;;  %v8485_v30 = vor.u32 %v9567_v36, %v8482_v15 }
 0x402   :  { %5828 = vmatpush.bf16.msrb.mxu3 %v8513_v41  ;;  %v8936_v41 = vld [vmem:[#allocation8 + $0x3e0] sm:$0xf] }
 0x403   :  { %v8937_v51 = vor.u32 %v9684_v34, %v8936_v41  ;;  %v8578_v41 = vld [vmem:[#allocation8 + $0x118] sm:$0xf0]  ;;  %v8873_v34 = vor.u32 %v9668_v8, %v8872_v17 }
 0x404   :  { %5843 = vmatpush.bf16.msra.mxu1 %v8609_v45  ;;  %v8530_v45 = vld [vmem:[#allocation8 + $0xb8] sm:$0xf0] }
 0x405   :  { %5760 = vmatpush.bf16.msrb.mxu0 %v8937_v51  ;;  %v8533_v59 = vor.u32 %v9579_v53, %v8530_v45  ;;  %v8466_v51 = vld [vmem:[#allocation8 + $0x38] sm:$0xf0] }
 0x406   :  { %5829 = vmatpush.bf16.msrb.mxu3 %v8497_v12  ;;  %v9705_v56 = vpop.eup %9704  ;;  %v8645_v12 = vor.u32 %v9607_v37, %v8642_v49  ;;  %v9563_v49 = vld [vmem:[#allocation8 + $0x2c] sm:$0xf] }
 0x407   :  { %v4901_v31 = vadd.f32 1.0, %v9705_v56  ;;  %v4907_v57 = vand.u32 2147483647, %v9705_v56  ;;  %v8469_v58 = vor.u32 %v9563_v49, %v8466_v51  ;;  %v9666_v51 = vld [vmem:[#allocation8 + $0x364] sm:$0xf] }
 0x408   :  { %5844 = vmatpush.bf16.msra.mxu1 %v8593_v43  ;;  %v4904_v43 = vmul.f32 -0.5, %v9705_v56  ;;  %v4760_v37 = vpop.f32.mrf.mxu3 }
 0x409   :  { %9706 = vlog2.f32 %v4901_v31  ;;  %5761 = vmatpush.bf16.msrb.mxu0 %v8921_v26  ;;  %vm4908_vm6 = vcmp.lt.f32.partialorder %v4907_v57, 0.0004427343  ;;  %v8816_v31 = vld [vmem:[#allocation8 + $0x2e8] sm:$0xf]  ;;  %v4748_v57 = vadd.f32 %v10167_v28, %v10161_v27  ;;  %v9674_v28 = vld [vmem:[#allocation8 + $0x3a4] sm:$0xf] }
 0x40a   :  { %5830 = vmatpush.bf16.msrb.mxu3 %v8481_v33  ;;  %v8629_v33 = vor.u32 %v9603_v60, %v8626_v0  ;;  %v4905_v35 = vadd.f32 1.0, %v4904_v43  ;;  %v9653_v0 = vld [vmem:[#allocation8 + $0x2f4] sm:$0xf0]  ;;  %v8840_v43 = vld [vmem:[#allocation8 + $0x320] sm:$0xf] }
 0x40b   :  { %v8817_v62 = vor.u32 %v9653_v0, %v8816_v31  ;;  %v4761_v21 = vadd.f32 %v4760_v37, %v4748_v57  ;;  %v8826_v57 = vld [vmem:[#allocation8 + $0x310] sm:$0xf0] }
 0x40c   :  { %5845 = vmatpush.bf16.msra.mxu1 %v8577_v7  ;;  %v8498_v7 = vld [vmem:[#allocation8 + $0x78] sm:$0xf0]  ;;  %v4906_v20 = vmul.f32 %v9705_v56, %v4905_v35 }
 0x40d   :  { %5762 = vmatpush.bf16.msrb.mxu0 %v8905_v4  ;;  %v8501_v18 = vor.u32 %v9571_v52, %v8498_v7  ;;  %v9656_v4 = vld [vmem:[#allocation8 + $0x30c] sm:$0xf0]  ;;  %v9682_v7 = vld [vmem:[#allocation8 + $0x3e4] sm:$0xf] }
 0x40e   :  { %5831 = vmatpush.bf16.msrb.mxu3 %v8465_v19  ;;  %v8613_v19 = vor.u32 %v9599_v1, %v8610_v3  ;;  %v9649_v1 = vld [vmem:[#allocation8 + $0x2d4] sm:$0xf0]  ;;  %v8824_v3 = vld [vmem:[#allocation8 + $0x300] sm:$0xf] }
 0x40f   :  { %5846 = vmatmul.bf16.vlgmr.msra.gmra.mxu1 %v10151_v2  ;;  %v9707_v32 = vpop.eup %9706  ;;  %v8825_v52 = vor.u32 %v9656_v4, %v8824_v3 }
 0x410   :  { %5890 = vmatpush.bf16.msrb.mxu1 %v8693_v46  ;;  %v8888_v46 = vld [vmem:[#allocation8 + $0x380] sm:$0xf]  ;;  %v4903_v39 = vmul.f32 0.6931472, %v9707_v32  ;;  %v4762_v11 = vpop.f32.mrf.mxu3 }
 0x411   :  { %v8889_v13 = vor.u32 %v9672_v14, %v8888_v46  ;;  %v9645_v46 = vld [vmem:[#allocation8 + $0x2b4] sm:$0xf0]  ;;  %v8941_v14 = vor.u32 %v9682_v7, %v8938_v23  ;;  %v8842_v11 = vld [vmem:[#allocation8 + $0x330] sm:$0xf0]  ;;  %v9654_v23 = vld [vmem:[#allocation8 + $0x304] sm:$0xf] }
 0x412   :  { %5832 = vmatpush.bf16.msrb.mxu3 %v8449_v38  ;;  %v4775_v38 = vpop.f32.mrf.mxu1 }
 0x413   :  { %5763 = vmatpush.bf16.msrb.mxu0 %v8889_v13  ;;  %v8906_v38 = vld [vmem:[#allocation8 + $0x3b0] sm:$0xf0] }
 0x414   :  { %5891 = vmatpush.bf16.msrb.mxu1 %v8677_v24  ;;  %v4857_v24 = vmax.f32 %v10164_v5, 0.0 }
 0x415   :  { %5833 = vmatmul.bf16.vlgmr.msrb.gmra.mxu3 %v10142_v44 }
 0x416   :  { %5877 = vmatpush.bf16.msra.mxu3 %v8565_v10  ;;  %v4909_v10 = vsel %vm4908_vm6, %v4906_v20, %v4903_v39  ;;  %v8768_v39 = vld [vmem:[#allocation8 + $0x288] sm:$0xf]  ;;  %v9641_v20 = vld [vmem:[#allocation8 + $0x294] sm:$0xf0] }
 0x417   :  { %v4921_v29 = vadd.f32 %v4909_v10, %v4857_v24  ;;  %5764 = vmatpush.bf16.msrb.mxu0 %v8873_v34  ;;  %v8769_v27 = vor.u32 %v9641_v20, %v8768_v39  ;;  %v4774_v24 = vadd.f32 %v10173_v63, %v4761_v21  ;;  %v8752_v10 = vld [vmem:[#allocation8 + $0x268] sm:$0xf]  ;;  %v9633_v34 = vld [vmem:[#allocation8 + $0x254] sm:$0xf0]  ;;  %v9639_v21 = vld [vmem:[#allocation8 + $0x28c] sm:$0xf] }
 0x418   :  { %5892 = vmatpush.bf16.msrb.mxu1 %v8661_v22  ;;  %v9591_v22 = vld [vmem:[#allocation8 + $0x10c] sm:$0xf] }
 0x419   :  { %v4925_v53 = vsel %vm4861_vm7, %v10164_v5, %v4921_v29  ;;  %v8581_v56 = vor.u32 %v9591_v22, %v8578_v41  ;;  %v9660_v5 = vld [vmem:[#allocation8 + $0x32c] sm:$0xf0]  ;;  %v9670_v29 = vld [vmem:[#allocation8 + $0x384] sm:$0xf]  ;;  %v4787_v22 = vadd.f32 %v10170_v9, %v4774_v24  ;;  %v8736_v41 = vld [vmem:[#allocation8 + $0x248] sm:$0xf] }
 0x41a   :  { %5878 = vmatpush.bf16.msra.mxu3 %v8549_v42  ;;  %v4935_v42 = vperm.slane %v10130_v16, 2  ;;  %v4929_v45 = vadd.f32 %v4925_v53, %v10032_v48  ;;  %v8450_v16 = vld [vmem:[#allocation8 + $0x18] sm:$0xf0]  ;;  %v8841_v55 = vor.u32 %v9660_v5, %v8840_v43  ;;  %v8737_v63 = vor.u32 %v9633_v34, %v8736_v41  ;;  %v8874_v53 = vld [vmem:[#allocation8 + $0x370] sm:$0xf0] }
 0x41b   :  { %v8453_v48 = vor.u32 %v9559_v61, %v8450_v16  ;;  %v8704_v61 = vld [vmem:[#allocation8 + $0x208] sm:$0xf]  ;;  %v9625_v16 = vld [vmem:[#allocation8 + $0x214] sm:$0xf0]  ;;  %v9651_v5 = vld [vmem:[#allocation8 + $0x2ec] sm:$0xf] }
 0x41c   :  { %5893 = vmatpush.bf16.msrb.mxu1 %v8645_v12  ;;  %v8856_v12 = vld [vmem:[#allocation8 + $0x340] sm:$0xf]  ;;  %v4943_v60 = vadd.f32 %v4935_v42, %v4929_v45  ;;  %v9635_v20 = vld [vmem:[#allocation8 + $0x26c] sm:$0xf] }
 0x41d   :  { %v9631_v24 = vld [vmem:[#allocation8 + $0x24c] sm:$0xf] }
 0x41e   :  { %5879 = vmatpush.bf16.msra.mxu3 %v8533_v59  ;;  %v8857_v59 = vor.u32 %v9664_v6, %v8856_v12  ;;  %v4947_v26 = vmax.f32 %v4943_v60, 0.0  ;;  %v9629_v12 = vld [vmem:[#allocation8 + $0x234] sm:$0xf0]  ;;  %v8877_v6 = vor.u32 %v9666_v51, %v8874_v53  ;;  %v8858_v60 = vld [vmem:[#allocation8 + $0x350] sm:$0xf0] }
 0x41f   :  { %v8706_v53 = vld [vmem:[#allocation8 + $0x218] sm:$0xf0] }
 0x420   :  { %5894 = vmatpush.bf16.msrb.mxu1 %v8629_v33  ;;  %5765 = vmatpush.bf16.msrb.mxu0 %v8857_v59  ;;  %v4799_v33 = vpop.f32.mrf.mxu2  ;;  %v10181_v47 = vpack.c.bf16 %v4947_v26, %v4947_v26  ;;  %v9662_v59 = vld [vmem:[#allocation8 + $0x344] sm:$0xf] }
 0x421   :  { %v4800_v45 = vadd.f32 %v4799_v33, %v4787_v22  ;;  %v8861_v26 = vor.u32 %v9662_v59, %v8858_v60  ;;  %v9658_v33 = vld [vmem:[#allocation8 + $0x324] sm:$0xf] }
 0x422   :  { %5880 = vmatpush.bf16.msra.mxu3 %v8517_v50  ;;  %v8800_v50 = vld [vmem:[#allocation8 + $0x2c8] sm:$0xf]  ;;  %5755 = vmatmul.bf16.vlgmr.msra.gmra.mxu2 %v10181_v47  ;;  %v8845_v3 = vor.u32 %v9658_v33, %v8842_v11 }
 0x423   :  { %5851 = vmatpush.bf16.msra.mxu2 %v8817_v62  ;;  %v8801_v35 = vor.u32 %v9649_v1, %v8800_v50  ;;  %v8818_v62 = vld [vmem:[#allocation8 + $0x2f8] sm:$0xf0]  ;;  %v8912_v11 = vld [vmem:[#allocation8 + $0x3a8] sm:$0xf] }
 0x424   :  { %5895 = vmatpush.bf16.msrb.mxu1 %v8613_v19  ;;  %5766 = vmatpush.bf16.msrb.mxu0 %v8841_v55  ;;  %v8784_v19 = vld [vmem:[#allocation8 + $0x2a8] sm:$0xf]  ;;  %v4838_v32 = vpop.f32.mrf.mxu0  ;;  %v8705_v55 = vor.u32 %v9625_v16, %v8704_v61  ;;  %v8821_v1 = vor.u32 %v9651_v5, %v8818_v62  ;;  %v9685_v16 = vld [vmem:[#allocation8 + $0x3f4] sm:$0xf0] }
 0x425   :  { %v8944_v61 = vld [vmem:[#allocation8 + $0x3e8] sm:$0xf] }
 0x426   :  { %5881 = vmatpush.bf16.msra.mxu3 %v8501_v18  ;;  %v9678_v18 = vld [vmem:[#allocation8 + $0x3c4] sm:$0xf]  ;;  %v8928_v62 = vld [vmem:[#allocation8 + $0x3c8] sm:$0xf] }
 0x427   :  { %5852 = vmatpush.bf16.msra.mxu2 %v8801_v35  ;;  %v8925_v36 = vor.u32 %v9678_v18, %v8922_v40  ;;  %v9647_v35 = vld [vmem:[#allocation8 + $0x2cc] sm:$0xf] }
 0x428   :  { %5896 = vmatpush.bf16.msrb.mxu1 %v8597_v25  ;;  %5767 = vmatpush.bf16.msrb.mxu0 %v8825_v52  ;;  %v4801_v13 = vpop.f32.mrf.mxu2  ;;  %v8909_v25 = vor.u32 %v9674_v28, %v8906_v38  ;;  %v8802_v52 = vld [vmem:[#allocation8 + $0x2d8] sm:$0xf0] }
 0x429   :  { %v8770_v13 = vld [vmem:[#allocation8 + $0x298] sm:$0xf0] }
 0x42a   :  { %5882 = vmatpush.bf16.msra.mxu3 %v8485_v30  ;;  %v8890_v30 = vld [vmem:[#allocation8 + $0x390] sm:$0xf0]  ;;  %v8773_v39 = vor.u32 %v9639_v21, %v8770_v13  ;;  %v8832_v21 = vld [vmem:[#allocation8 + $0x308] sm:$0xf]  ;;  %v9657_v13 = vld [vmem:[#allocation8 + $0x314] sm:$0xf0] }
 0x42b   :  { %v8893_v42 = vor.u32 %v9670_v29, %v8890_v30  ;;  %v8722_v29 = vld [vmem:[#allocation8 + $0x238] sm:$0xf0] }
 0x42c   :  { %5897 = vmatpush.bf16.msrb.mxu1 %v8581_v56  ;;  %5812 = vmatpush.bf16.msra.mxu0 %v8941_v14  ;;  %v4825_v15 = vpop.f32.mrf.mxu1  ;;  %v4840_v17 = vpop.f32.mrf.mxu0  ;;  %v8720_v56 = vld [vmem:[#allocation8 + $0x228] sm:$0xf]  ;;  %v8829_v14 = vor.u32 %v9654_v23, %v8826_v57 }
 0x42d   :  { %v8721_v9 = vor.u32 %v9629_v12, %v8720_v56 }
 0x42e   :  { %5883 = vmatpush.bf16.msra.mxu3 %v8469_v58 }
 0x42f   :  { %5898 = vmatmul.bf16.vlgmr.msrb.gmra.mxu1 %v10151_v2  ;;  %v8785_v2 = vor.u32 %v9645_v46, %v8784_v19  ;;  %v8805_v46 = vor.u32 %v9647_v35, %v8802_v52  ;;  %v9669_v52 = vld [vmem:[#allocation8 + $0x374] sm:$0xf0] }
 0x430   :  { %5813 = vmatpush.bf16.msra.mxu0 %v8925_v36  ;;  %v8754_v36 = vld [vmem:[#allocation8 + $0x278] sm:$0xf0] }
 0x431   :  { %5853 = vmatpush.bf16.msra.mxu2 %v8785_v2  ;;  %v8786_v2 = vld [vmem:[#allocation8 + $0x2b8] sm:$0xf0]  ;;  %v8757_v38 = vor.u32 %v9635_v20, %v8754_v36  ;;  %v8833_v36 = vor.u32 %v9657_v13, %v8832_v21 }
 0x432   :  { %5884 = vmatpush.bf16.msra.mxu3 %v8453_v48  ;;  %5807 = vmatmul.bf16.vlgmr.msrb.gmra.mxu2 %v10181_v47  ;;  %v8946_v20 = vld [vmem:[#allocation8 + $0x3f8] sm:$0xf0] }
 0x434   :  { %5814 = vmatpush.bf16.msra.mxu0 %v8909_v25  ;;  %v4827_v49 = vpop.f32.mrf.mxu1 }
 0x435   :  { %5885 = vmatmul.bf16.vlgmr.msra.gmra.mxu3 %v10142_v44  ;;  %v9637_v44 = vld [vmem:[#allocation8 + $0x274] sm:$0xf0]  ;;  %5854 = vmatpush.bf16.msra.mxu2 %v8769_v27  ;;  %v9623_v49 = vld [vmem:[#allocation8 + $0x20c] sm:$0xf] }
 0x436   :  { %v8753_v8 = vor.u32 %v9637_v44, %v8752_v10  ;;  %v4851_v37 = vpop.f32.mrf.mxu2  ;;  %v8738_v10 = vld [vmem:[#allocation8 + $0x258] sm:$0xf0]  ;;  %v8709_v12 = vor.u32 %v9623_v49, %v8706_v53  ;;  %v9663_v49 = vld [vmem:[#allocation8 + $0x34c] sm:$0xf] }
 0x437   :  { %v8741_v25 = vor.u32 %v9631_v24, %v8738_v10  ;;  %v9675_v10 = vld [vmem:[#allocation8 + $0x3ac] sm:$0xf] }
 0x438   :  { %5815 = vmatpush.bf16.msra.mxu0 %v8893_v42  ;;  %v4812_v58 = vpop.f32.mrf.mxu3 }
 0x439   :  { %5855 = vmatpush.bf16.msra.mxu2 %v8753_v8  ;;  %v4813_v31 = vadd.f32 %v4812_v58, %v4800_v45  ;;  %v9627_v8 = vld [vmem:[#allocation8 + $0x22c] sm:$0xf] }
 0x43b   :  { %v4826_v0 = vadd.f32 %v4825_v15, %v4813_v31 }
 0x43c   :  { %5816 = vmatpush.bf16.msra.mxu0 %v8877_v6  ;;  %v9720_v6 = vld [vmem:[#allocation7] sm:$0xf] }
 0x43d   :  { %5856 = vmatpush.bf16.msra.mxu2 %v8737_v63  ;;  %v4839_v48 = vadd.f32 %v4838_v32, %v4826_v0  ;;  %v9643_v32 = vld [vmem:[#allocation8 + $0x2ac] sm:$0xf]  ;;  %v4936_v58 = vperm.slane %v9720_v6, 3 }
 0x43e   :  { %v4853_v43 = vpop.f32.mrf.mxu2  ;;  %v8789_v40 = vor.u32 %v9643_v32, %v8786_v2  ;;  %v8848_v32 = vld [vmem:[#allocation8 + $0x328] sm:$0xf]  ;;  %v9661_v2 = vld [vmem:[#allocation8 + $0x334] sm:$0xf0] }
 0x43f   :  { %v10191_v50 = vadd.f32 %v4851_v37, %v4839_v48  ;;  %v8725_v37 = vor.u32 %v9627_v8, %v8722_v29  ;;  %v8945_v43 = vor.u32 %v9685_v16, %v8944_v61  ;;  %v9681_v48 = vld [vmem:[#allocation8 + $0x3d4] sm:$0xf0]  ;;  %v8898_v8 = vld [vmem:[#allocation8 + $0x398] sm:$0xf0] }
 0x440   :  { %5817 = vmatpush.bf16.msra.mxu0 %v8861_v26  ;;  %v4814_v4 = vpop.f32.mrf.mxu3 }
 0x441   :  { %5857 = vmatpush.bf16.msra.mxu2 %v8721_v9  ;;  %v4870_v7 = vand.u32 2147483647, %v10191_v50  ;;  %v4858_v63 = vmax.f32 %v10191_v50, 0.0  ;;  %vm4862_vm9 = vcmp.ne.f32.partialorder %v10191_v50, %v10191_v50 }
 0x443   :  { %v4874_v19 = vsub.f32 0.0, %v4870_v7 }
 0x444   :  { %5818 = vmatpush.bf16.msra.mxu0 %v8845_v3  ;;  %v9673_v3 = vld [vmem:[#allocation8 + $0x394] sm:$0xf0] }
 0x445   :  { %5858 = vmatpush.bf16.msra.mxu2 %v8705_v55  ;;  %v4881_v18 = vmul.f32 1.442695, %v4874_v19  ;;  %v8929_v55 = vor.u32 %v9681_v48, %v8928_v62  ;;  %v8864_v19 = vld [vmem:[#allocation8 + $0x348] sm:$0xf] }
 0x447   :  { %9708 = vpow2.f32 %v4881_v18 }
 0x448   :  { %5859 = vmatmul.bf16.vlgmr.msra.gmra.mxu2 %v10181_v47  ;;  %5819 = vmatpush.bf16.msra.mxu0 %v8829_v14 }
 0x449   :  { %5903 = vmatpush.bf16.msrb.mxu2 %v8821_v1  ;;  %v8896_v1 = vld [vmem:[#allocation8 + $0x388] sm:$0xf] }
 0x44a   :  { %v8897_v4 = vor.u32 %v9673_v3, %v8896_v1 }
 0x44d   :  { %5904 = vmatpush.bf16.msrb.mxu2 %v8805_v46  ;;  %v9709_v15 = vpop.eup %9708  ;;  %v9665_v46 = vld [vmem:[#allocation8 + $0x354] sm:$0xf0] }
 0x44e   :  { %v4910_v27 = vadd.f32 1.0, %v9709_v15  ;;  %v4913_v28 = vmul.f32 -0.5, %v9709_v15  ;;  %v4916_v17 = vand.u32 2147483647, %v9709_v15  ;;  %v8865_v14 = vor.u32 %v9665_v46, %v8864_v19 }
 0x450   :  { %9710 = vlog2.f32 %v4910_v27  ;;  %v4914_v44 = vadd.f32 1.0, %v4913_v28  ;;  %vm4917_vm8 = vcmp.lt.f32.partialorder %v4916_v17, 0.0004427343  ;;  %v9679_v27 = vld [vmem:[#allocation8 + $0x3cc] sm:$0xf] }
 0x451   :  { %5905 = vmatpush.bf16.msrb.mxu2 %v8789_v40  ;;  %v8849_v40 = vor.u32 %v9661_v2, %v8848_v32  ;;  %v8930_v28 = vld [vmem:[#allocation8 + $0x3d8] sm:$0xf0]  ;;  %v9671_v17 = vld [vmem:[#allocation8 + $0x38c] sm:$0xf] }
 0x452   :  { %v4915_v34 = vmul.f32 %v9709_v15, %v4914_v44  ;;  %v5743_v42 = vpop.f32.mrf.mxu1  ;;  %v8914_v44 = vld [vmem:[#allocation8 + $0x3b8] sm:$0xf0]  ;;  %v8901_v29 = vor.u32 %v9671_v17, %v8898_v8 }
 0x455   :  { %5906 = vmatpush.bf16.msrb.mxu2 %v8773_v39  ;;  %v9683_v39 = vld [vmem:[#allocation8 + $0x3ec] sm:$0xf] }
 0x456   :  { %v9711_v22 = vpop.eup %9710  ;;  %v8949_v15 = vor.u32 %v9683_v39, %v8946_v20 }
 0x457   :  { %v4912_v41 = vmul.f32 0.6931472, %v9711_v22  ;;  %v9667_v22 = vld [vmem:[#allocation8 + $0x36c] sm:$0xf] }
 0x458   :  { %v5730_v30 = vpop.f32.mrf.mxu3 }
 0x459   :  { %5907 = vmatpush.bf16.msrb.mxu2 %v8757_v38  ;;  %v10196_v51 = vadd.f32 %v5743_v42, %v5730_v30  ;;  %v4918_v45 = vsel %vm4917_vm8, %v4915_v34, %v4912_v41  ;;  %v8933_v38 = vor.u32 %v9679_v27, %v8930_v28  ;;  %v8882_v41 = vld [vmem:[#allocation8 + $0x378] sm:$0xf0] }
 0x45a   :  { %v4922_v56 = vadd.f32 %v4918_v45, %v4858_v63  ;;  %v5745_v60 = vpop.f32.mrf.mxu1  ;;  %v8885_v42 = vor.u32 %v9667_v22, %v8882_v41  ;;  %v8866_v63 = vld [vmem:[#allocation8 + $0x358] sm:$0xf0]  ;;  %v9659_v45 = vld [vmem:[#allocation8 + $0x32c] sm:$0xf] }
 0x45b   :  { %v8869_v53 = vor.u32 %v9663_v49, %v8866_v63 }
 0x45c   :  { %v4926_v31 = vsel %vm4862_vm9, %v10191_v50, %v4922_v56  ;;  %v8850_v56 = vld [vmem:[#allocation8 + $0x338] sm:$0xf0] }
 0x45d   :  { %5908 = vmatpush.bf16.msrb.mxu2 %v8741_v25  ;;  %v4930_v59 = vadd.f32 %v4926_v31, %v10047_v54  ;;  %v9677_v54 = vld [vmem:[#allocation8 + $0x3b4] sm:$0xf0]  ;;  %v8917_v25 = vor.u32 %v9675_v10, %v8914_v44  ;;  %v8853_v6 = vor.u32 %v9659_v45, %v8850_v56  ;;  %v8834_v31 = vld [vmem:[#allocation8 + $0x318] sm:$0xf0] }
 0x45e   :  { %v8913_v50 = vor.u32 %v9677_v54, %v8912_v11 }
 0x45f   :  { %v4944_v0 = vadd.f32 %v4936_v58, %v4930_v59  ;;  %v9655_v58 = vld [vmem:[#allocation8 + $0x30c] sm:$0xf] }
 0x460   :  { %v5732_v9 = vpop.f32.mrf.mxu3 }
 0x461   :  { %5909 = vmatpush.bf16.msrb.mxu2 %v8725_v37  ;;  %v4948_v26 = vmax.f32 %v4944_v0, 0.0  ;;  %v8837_v9 = vor.u32 %v9655_v58, %v8834_v31 }
 0x463   :  { %v10203_v5 = vpack.c.bf16 %v4948_v26, %v4948_v26 }
 0x465   :  { %5910 = vmatpush.bf16.msrb.mxu2 %v8709_v12  ;;  %5768 = vmatmul.bf16.vlgmr.msrb.gmra.mxu0 %v10203_v5 }
 0x466   :  { %5864 = vmatpush.bf16.msrb.mxu0 %v8945_v43 }
 0x468   :  { %5911 = vmatmul.bf16.vlgmr.msrb.gmra.mxu2 %v10181_v47  ;;  %v8880_v47 = vld [vmem:[#allocation8 + $0x368] sm:$0xf] }
 0x469   :  { %v8881_v23 = vor.u32 %v9669_v52, %v8880_v47 }
 0x46a   :  { %5865 = vmatpush.bf16.msrb.mxu0 %v8929_v55 }
 0x46c   :  { %v5795_v33 = vpop.f32.mrf.mxu1 }
 0x46e   :  { %5866 = vmatpush.bf16.msrb.mxu0 %v8913_v50 }
 0x472   :  { %5867 = vmatpush.bf16.msrb.mxu0 %v8897_v4 }
 0x474   :  { %v5797_v35 = vpop.f32.mrf.mxu1 }
 0x475   :  { %5820 = vmatmul.bf16.vlgmr.msra.gmra.mxu0 %v10203_v5 }
 0x476   :  { %5868 = vmatpush.bf16.msrb.mxu0 %v8881_v23 }
 0x478   :  { %v5782_v7 = vpop.f32.mrf.mxu3 }
 0x479   :  { %v10206_v57 = vadd.f32 %v5795_v33, %v5782_v7 }
 0x47a   :  { %5869 = vmatpush.bf16.msrb.mxu0 %v8865_v14 }
 0x47e   :  { %5870 = vmatpush.bf16.msrb.mxu0 %v8849_v40 }
 0x480   :  { %v5784_v18 = vpop.f32.mrf.mxu3 }
 0x482   :  { %5871 = vmatpush.bf16.msrb.mxu0 %v8833_v36  ;;  %v5967_v36 = vld [vmem:[#allocation10] sm:$0x3] }
 0x483   :  { %v5969_v10 = vperm.slane %v5967_v36, 0 }
 0x485   :  { %5872 = vmatmul.bf16.vlgmr.msrb.gmra.mxu0 %v10203_v5 }
 0x486   :  { %5916 = vmatpush.bf16.msra.mxu0 %v8949_v15 }
 0x48a   :  { %5917 = vmatpush.bf16.msra.mxu0 %v8933_v38 }
 0x48c   :  { %v5847_v24 = vpop.f32.mrf.mxu1 }
 0x48e   :  { %5918 = vmatpush.bf16.msra.mxu0 %v8917_v25 }
 0x492   :  { %5919 = vmatpush.bf16.msra.mxu0 %v8901_v29 }
 0x494   :  { %v5849_v30 = vpop.f32.mrf.mxu1 }
 0x496   :  { %5920 = vmatpush.bf16.msra.mxu0 %v8885_v42 }
 0x498   :  { %v5834_v34 = vpop.f32.mrf.mxu3 }
 0x499   :  { %v5848_v37 = vadd.f32 %v5847_v24, %v5834_v34 }
 0x49a   :  { %5921 = vmatpush.bf16.msra.mxu0 %v8869_v53 }
 0x49e   :  { %5922 = vmatpush.bf16.msra.mxu0 %v8853_v6 }
 0x4a0   :  { %v5836_v12 = vpop.f32.mrf.mxu3 }
 0x4a2   :  { %5923 = vmatpush.bf16.msra.mxu0 %v8837_v9  ;;  %v5970_v9 = vperm.slane %v5967_v36, 1 }
 0x4a5   :  { %5924 = vmatmul.bf16.vlgmr.msra.gmra.mxu0 %v10203_v5  ;;  %v5756_v60 = vpop.f32.mrf.mxu2 }
 0x4a6   :  { %v5757_v0 = vadd.f32 %v5756_v60, %v10196_v51 }
 0x4ac   :  { %v5899_v59 = vpop.f32.mrf.mxu1 }
 0x4ad   :  { %v5758_v43 = vpop.f32.mrf.mxu2 }
 0x4b4   :  { %v5901_v61 = vpop.f32.mrf.mxu1 }
 0x4b5   :  { %v5808_v48 = vpop.f32.mrf.mxu2 }
 0x4b6   :  { %v5809_v55 = vadd.f32 %v5808_v48, %v10206_v57 }
 0x4b8   :  { %v5886_v16 = vpop.f32.mrf.mxu3 }
 0x4b9   :  { %v5900_v26 = vadd.f32 %v5899_v59, %v5886_v16 }
 0x4bd   :  { %v5810_v33 = vpop.f32.mrf.mxu2 }
 0x4c0   :  { %v5888_v62 = vpop.f32.mrf.mxu3 }
 0x4cb   :  { %v5860_v11 = vpop.f32.mrf.mxu2 }
 0x4cc   :  { %v5861_v52 = vadd.f32 %v5860_v11, %v5848_v37 }
 0x4d3   :  { %v5862_v54 = vpop.f32.mrf.mxu2 }
 0x4e2   :  { %v5769_v50 = vpop.f32.mrf.mxu0 }
 0x4e3   :  { %v5770_v38 = vadd.f32 %v5769_v50, %v5757_v0 }
 0x4ea   :  { %v5771_v3 = vpop.f32.mrf.mxu0 }
 0x4eb   :  { %v5912_v1 = vpop.f32.mrf.mxu2 }
 0x4ec   :  { %v5913_v27 = vadd.f32 %v5912_v1, %v5900_v26 }
 0x4f2   :  { %v5821_v35 = vpop.f32.mrf.mxu0 }
 0x4f3   :  { %v5914_v4 = vpop.f32.mrf.mxu2  ;;  %v5822_v5 = vadd.f32 %v5821_v35, %v5809_v55 }
 0x4fa   :  { %v5823_v47 = vpop.f32.mrf.mxu0 }
 0x502   :  { %v5873_v51 = vpop.f32.mrf.mxu0 }
 0x503   :  { %v5874_v7 = vadd.f32 %v5873_v51, %v5861_v52 }
 0x505   :  { %v5935_v23 = vand.u32 2147483647, %v5874_v7  ;;  %v5929_v20 = vmax.f32 %v5874_v7, 0.0  ;;  %vm5931_vm11 = vcmp.ne.f32.partialorder %v5874_v7, %v5874_v7 }
 0x507   :  { %v5937_v19 = vsub.f32 0.0, %v5935_v23 }
 0x509   :  { %v5939_v46 = vmul.f32 1.442695, %v5937_v19 }
 0x50a   :  { %v5875_v14 = vpop.f32.mrf.mxu0 }
 0x50b   :  { %9712 = vpow2.f32 %v5939_v46 }
 0x511   :  { %v9713_v32 = vpop.eup %9712 }
 0x512   :  { %v5943_v57 = vadd.f32 1.0, %v9713_v32  ;;  %v5946_v2 = vmul.f32 -0.5, %v9713_v32  ;;  %v5949_v40 = vand.u32 2147483647, %v9713_v32 }
 0x514   :  { %9714 = vlog2.f32 %v5943_v57  ;;  %v5947_v18 = vadd.f32 1.0, %v5946_v2  ;;  %vm5950_vm10 = vcmp.lt.f32.partialorder %v5949_v40, 0.0004427343 }
 0x516   :  { %v5948_v39 = vmul.f32 %v9713_v32, %v5947_v18 }
 0x51a   :  { %v9715_v21 = vpop.eup %9714 }
 0x51b   :  { %v5945_v13 = vmul.f32 0.6931472, %v9715_v21 }
 0x51d   :  { %v5951_v15 = vsel %vm5950_vm10, %v5948_v39, %v5945_v13 }
 0x51e   :  { %v5961_v28 = vadd.f32 %v5951_v15, %v5929_v20 }
 0x520   :  { %v5963_v44 = vsel %vm5931_vm11, %v5874_v7, %v5961_v28 }
 0x521   :  { %v5965_v17 = vadd.f32 %v5963_v44, %v5770_v38 }
 0x522   :  { %v5925_v24 = vpop.f32.mrf.mxu0 }
 0x523   :  { %v5926_v25 = vadd.f32 %v5925_v24, %v5913_v27  ;;  %v5973_v29 = vadd.f32 %v5969_v10, %v5965_v17 }
 0x525   :  { %v5936_v8 = vand.u32 2147483647, %v5926_v25  ;;  %v5975_v22 = vmax.f32 %v5973_v29, 0.0  ;;  %v5930_v6 = vmax.f32 %v5926_v25, 0.0  ;;  %vm5932_vm13 = vcmp.ne.f32.partialorder %v5926_v25, %v5926_v25 }
 0x527   :  { %v5938_v30 = vsub.f32 0.0, %v5936_v8  ;;  %5977 = vst [vmem:[#allocation11] sm:$0xff] %v5975_v22 }
 0x529   :  { %v5941_v41 = vmul.f32 1.442695, %v5938_v30 }
 0x52a   :  { %v5927_v34 = vpop.f32.mrf.mxu0 }
 0x52b   :  { %9716 = vpow2.f32 %v5941_v41 }
 0x531   :  { %v9717_v42 = vpop.eup %9716 }
 0x532   :  { %v5952_v37 = vadd.f32 1.0, %v9717_v42  ;;  %v5955_v49 = vmul.f32 -0.5, %v9717_v42  ;;  %v5958_v53 = vand.u32 2147483647, %v9717_v42 }
 0x534   :  { %9718 = vlog2.f32 %v5952_v37  ;;  %v5956_v63 = vadd.f32 1.0, %v5955_v49  ;;  %vm5959_vm12 = vcmp.lt.f32.partialorder %v5958_v53, 0.0004427343 }
 0x536   :  { %v5957_v12 = vmul.f32 %v9717_v42, %v5956_v63 }
 0x53a   :  { %v9719_v45 = vpop.eup %9718 }
 0x53b   :  { %v5954_v56 = vmul.f32 0.6931472, %v9719_v45 }
 0x53d   :  { %v5960_v58 = vsel %vm5959_vm12, %v5957_v12, %v5954_v56 }
 0x53e   :  { %v5962_v31 = vadd.f32 %v5960_v58, %v5930_v6 }
 0x540   :  { %v5964_v59 = vsel %vm5932_vm13, %v5926_v25, %v5962_v31 }
 0x541   :  { %v5966_v60 = vadd.f32 %v5964_v59, %v5822_v5 }
 0x543   :  { %v5974_v0 = vadd.f32 %v5970_v9, %v5966_v60 }
 0x545   :  { %v5976_v61 = vmax.f32 %v5974_v0, 0.0 }
 0x547   :  { %5978 = vst [vmem:[#allocation11 + $0x8] sm:$0xff] %v5976_v61 }
 0x548   :  { %5989 = dma.vmem_to_hbm [thread:$0]  %s5985_s4, 256, %s5987_s21, [#allocation4]  }
 0x549   :  { %9871 = dma.done.wait [#allocation4], 256  }
 0x54a   :  { %9872 = vsyncadd [#allocation4], 4294967040 }
 0x54b   :  { %5994 = vsyncpa [#allocation3], 1 }
 0x54c   :  { %5995 = vsyncpa [#allocation6], 1 }
 0x54d   :  { %5996 = vsyncpa [#allocation9], 1 }
 0x54e   :  { %5997 = vsyncpa [#allocation4], 1 }

</bundles_post_ra>
